<compile_context>
chip_gen: v7x
topology: tpu7x:2x2x1
jax: 0.10.0
libtpu: 0.0.40
codegen_flags: <defaults>
</compile_context>

<pallas_src>
import functools

import numpy as np

import jax
import jax.numpy as jnp
from jax import lax
from jax.experimental import pallas as pl
from jax.experimental.pallas import tpu as pltpu


# ----------------------------- helpers --------------------------------------

def _largest_divisor(n, cap):
    best = 1
    for s in range(1, min(n, cap) + 1):
        if n % s == 0:
            best = s
    return best


def _vmem_budget():
    """(working-set budget, vmem_limit cap) per TPU generation."""
    kind = ""
    try:
        kind = jax.devices()[0].device_kind.lower()
    except Exception:
        pass
    if "v7" in kind:                      # 64 MiB physical VMEM
        return 20 * 2**20, 40 * 2**20
    if ("v2" in kind) or ("v3" in kind):  # tiny VMEM on very old parts
        return 6 * 2**20, 12 * 2**20
    return 40 * 2**20, 72 * 2**20         # v4 / v5e / v5p / v6e: 128 MiB


def _conv_vmem_estimate(td, H, WC, G=16):
    """Rough per-step VMEM working set of the conv kernel (bytes)."""
    tR = td * H
    sub = _largest_divisor(tR, 128)
    return (2 * tR * WC * 2              # main input block, double-buffered, bf16
            + 2 * tR * WC * 2            # output block, double-buffered, bf16
            + (2 * G + (td + 2) * H) * WC * 2   # halo scratch (bf16)
            + 2 * 9 * WC * WC * 2        # banded weights (x2 buffers)
            + 2 * 8 * WC * 4             # pool partial block
            + 4 * sub * WC * 4)          # live f32 accumulators / partials


def _pick_td(D, H, WC, budget_bytes):
    """Largest divisor of D whose conv working set fits the VMEM budget."""
    best = 1
    for t in range(1, D + 1):
        if D % t == 0 and _conv_vmem_estimate(t, H, WC) <= budget_bytes:
            best = t
    return best


def _banded_conv_weights(w, W, C):
    """(3,3,3,Cin,Cout) conv weights -> (9, W*Cin, W*Cout) banded matrices.

    Band g = kd*3 + kh maps the lane-dense input (lane = w_in*Cin + ci) to the
    lane-dense output (lane = w_out*Cout + co) and already encodes the kw taps
    plus the W-dimension 'same' zero padding (missing w_in columns are zero).
    """
    P = np.zeros((3, W, W), np.float32)
    for kw in range(3):
        for wo in range(W):
            wi = wo + kw - 1
            if 0 <= wi < W:
                P[kw, wi, wo] = 1.0
    P = jnp.asarray(P)
    wb = jnp.einsum("kio,dhkcf->dhicof", P, w.astype(jnp.float32))
    cin, cout = w.shape[3], w.shape[4]
    return wb.reshape(9, W * cin, W * cout)


# ----------------------------- conv3d kernel --------------------------------

def _conv_tile_body(x_main_ref, x_hbm, wb_ref, b_ref, o_ref, pool_ref,
                    buf_ref, sem, *, H, td, G, sub, relu):
    """One (td*H)-row lane-dense tile of a 3x3x3 'same' conv + bias (+relu).

    Layout: rows = d*H + h, lanes = w*C + c.  The (kd, kh) taps are constant
    row shifts of (kd-1)*H + (kh-1); the (kw, ci)->co contraction is one
    (rows, W*C) @ (W*C, W*C) banded matmul per (kd, kh).
    """
    n = pl.program_id(0)
    i = pl.program_id(1)
    n_tiles = pl.num_programs(1)
    WC = buf_ref.shape[1]
    tR = td * H
    lead0 = G                 # lead halo plane rows  [lead0, lead0+H)
    main0 = G + H             # main rows             [main0, main0+tR)
    trail0 = G + H + tR       # trail halo plane rows [trail0, trail0+H)

    def lead_copy():          # previous D plane (from HBM)
        return pltpu.make_async_copy(
            x_hbm.at[n, pl.ds(i * tR - H, H), :],
            buf_ref.at[pl.ds(lead0, H), :],
            sem.at[0])

    def trail_copy():         # next D plane (from HBM)
        return pltpu.make_async_copy(
            x_hbm.at[n, pl.ds((i + 1) * tR, H), :],
            buf_ref.at[pl.ds(trail0, H), :],
            sem.at[1])

    @pl.when(i > 0)
    def _start_lead():
        lead_copy().start()

    @pl.when(i < n_tiles - 1)
    def _start_trail():
        trail_copy().start()

    # Stage the auto-pipelined main slab into the halo buffer and zero the
    # guard rows while the (small) halo DMAs are in flight.
    buf_ref[pl.ds(main0, tR), :] = x_main_ref[0]
    zguard = jnp.zeros((G, WC), buf_ref.dtype)
    buf_ref[pl.ds(0, G), :] = zguard
    buf_ref[pl.ds(trail0 + H, G), :] = zguard

    zplane = jnp.zeros((H, WC), buf_ref.dtype)

    @pl.when(i == 0)
    def _zero_lead():         # 'same' padding at the front of the volume
        buf_ref[pl.ds(lead0, H), :] = zplane

    @pl.when(i == n_tiles - 1)
    def _zero_trail():        # 'same' padding at the back of the volume
        buf_ref[pl.ds(trail0, H), :] = zplane

    @pl.when(i > 0)
    def _wait_lead():
        lead_copy().wait()

    @pl.when(i < n_tiles - 1)
    def _wait_trail():
        trail_copy().wait()

    bias = b_ref[...]                                   # (1, WC) f32
    pool_acc = None
    for c0 in range(0, tR, sub):
        # Row predicates for the H boundary (hoisted: 2 selects per chunk).
        h_idx = (lax.broadcasted_iota(jnp.int32, (sub, 1), 0) + c0) % H
        mask_lo = h_idx >= 1          # kh == 0 needs h-1
        mask_hi = h_idx <= H - 2      # kh == 2 needs h+1

        acc = None
        for kh in range(3):
            part = None
            for kd in range(3):
                off = main0 + c0 + (kd - 1) * H + (kh - 1)
                lhs = buf_ref[pl.ds(off, sub), :]       # (sub, WC) bf16
                p = jnp.dot(lhs, wb_ref[kd * 3 + kh],
                            preferred_element_type=jnp.float32)
                part = p if part is None else part + p
            if kh == 0:
                part = jnp.where(mask_lo, part, 0.0)
            elif kh == 2:
                part = jnp.where(mask_hi, part, 0.0)
            acc = part if acc is None else acc + part

        acc = acc + bias
        if relu:
            acc = jnp.maximum(acc, 0.0)
        o_ref[0, pl.ds(c0, sub), :] = acc.astype(o_ref.dtype)

        if pool_ref is not None:
            csum = jnp.sum(acc, axis=0, keepdims=True)  # (1, WC) f32
            pool_acc = csum if pool_acc is None else pool_acc + csum

    if pool_ref is not None:
        # Per-tile pool partial (own output block -> both grid axes parallel).
        pool_ref[0] = jnp.broadcast_to(pool_acc, (8, WC))


def _conv_kernel(x_main_ref, x_hbm, wb_ref, b_ref, o_ref, buf_ref, sem, **kw):
    _conv_tile_body(x_main_ref, x_hbm, wb_ref, b_ref, o_ref, None,
                    buf_ref, sem, **kw)


def _conv_pool_kernel(x_main_ref, x_hbm, wb_ref, b_ref, o_ref, pool_ref,
                      buf_ref, sem, **kw):
    _conv_tile_body(x_main_ref, x_hbm, wb_ref, b_ref, o_ref, pool_ref,
                    buf_ref, sem, **kw)


def conv3d_lane(x, wb, b_lane, *, D, H, td, relu, with_pool, vmem_limit):
    """3x3x3 'same' conv + bias (+relu) on lane-dense (N, D*H, W*C) input.

    x: (N, D*H, W*C) bf16; wb: (9, W*C, W*C) bf16 banded weights;
    b_lane: (1, W*C) f32.  If with_pool, also returns per-D-tile pool partial
    sums of shape (N, n_tiles*8, W*C) (row 0 of each 8-row slab is the sum).
    """
    N, DH, WC = x.shape
    assert DH == D * H and D % td == 0
    n_tiles = D // td
    tR = td * H
    G = 16                                   # guard rows each side (>= 1)
    sub = _largest_divisor(tR, 128)          # sub-chunk rows (vreg pressure)

    common = dict(H=H, td=td, G=G, sub=sub, relu=relu)
    in_specs = [
        pl.BlockSpec((1, tR, WC), lambda n, i: (n, i, 0)),   # main slab (auto)
        pl.BlockSpec(memory_space=pl.ANY),                   # raw HBM (halo)
        pl.BlockSpec((9, WC, WC), lambda n, i: (0, 0, 0)),   # banded weights
        pl.BlockSpec((1, WC), lambda n, i: (0, 0)),          # lane bias
    ]
    scratch = [
        pltpu.VMEM((2 * G + (td + 2) * H, WC), x.dtype),
        pltpu.SemaphoreType.DMA((2,)),
    ]
    cparams = pltpu.CompilerParams(
        dimension_semantics=("parallel", "parallel"),
        vmem_limit_bytes=vmem_limit)

    if with_pool:
        return pl.pallas_call(
            functools.partial(_conv_pool_kernel, **common),
            out_shape=(jax.ShapeDtypeStruct((N, DH, WC), jnp.bfloat16),
                       jax.ShapeDtypeStruct((N, n_tiles * 8, WC), jnp.float32)),
            grid=(N, n_tiles),
            in_specs=in_specs,
            out_specs=(pl.BlockSpec((1, tR, WC), lambda n, i: (n, i, 0)),
                       pl.BlockSpec((1, 8, WC), lambda n, i: (n, i, 0))),
            scratch_shapes=scratch,
            compiler_params=cparams,
        )(x, x, wb, b_lane)

    return pl.pallas_call(
        functools.partial(_conv_kernel, **common),
        out_shape=jax.ShapeDtypeStruct((N, DH, WC), jnp.bfloat16),
        grid=(N, n_tiles),
        in_specs=in_specs,
        out_specs=pl.BlockSpec((1, tR, WC), lambda n, i: (n, i, 0)),
        scratch_shapes=scratch,
        compiler_params=cparams,
    )(x, x, wb, b_lane)


# ----------------------- channel attention + residual -----------------------

def _ca_kernel(h2_ref, res_ref, attn_ref, o_ref):
    y = h2_ref[0].astype(jnp.float32)                     # (tR, WC)
    o_ref[0] = (y * attn_ref[0] + res_ref[0]).astype(o_ref.dtype)


def ca_residual(h2, res, attn_lane, *, tR, vmem_limit):
    """out = h2 * attn_lane + res (attn already includes residual_scaling)."""
    N, DH, WC = h2.shape
    assert DH % tR == 0
    n_tiles = DH // tR
    return pl.pallas_call(
        _ca_kernel,
        out_shape=jax.ShapeDtypeStruct((N, DH, WC), res.dtype),
        grid=(N, n_tiles),
        in_specs=[
            pl.BlockSpec((1, tR, WC), lambda n, i: (n, i, 0)),   # h2 (bf16)
            pl.BlockSpec((1, tR, WC), lambda n, i: (n, i, 0)),   # residual f32
            pl.BlockSpec((1, 1, WC), lambda n, i: (n, 0, 0)),    # attn lanes
        ],
        out_specs=pl.BlockSpec((1, tR, WC), lambda n, i: (n, i, 0)),
        compiler_params=pltpu.CompilerParams(
            dimension_semantics=("parallel", "parallel"),
            vmem_limit_bytes=vmem_limit),
    )(h2, res, attn_lane)


# --------------------------------- forward ----------------------------------

def rcab3d_forward(x_ncdhw, params, residual_scaling, d_tile=None):
    """ResidualChannelAttentionBlock3D forward. Input/output: NCDHW float32."""
    N, C, D, H, W = x_ncdhw.shape
    WC = W * C
    DH = D * H

    budget, cap = _vmem_budget()
    td = _pick_td(D, H, WC, budget) if d_tile is None else int(d_tile)
    assert D % td == 0
    vmem_limit = int(min(cap, max(16 * 2**20,
                                  2 * _conv_vmem_estimate(td, H, WC))))

    # NCDHW -> lane-dense (N, D*H, W*C): minor dim W*C (=128 for the target
    # shapes) so every kernel store / vector op is lane-dense.
    x_ld = jnp.transpose(x_ncdhw, (0, 2, 3, 4, 1)).reshape(N, DH, WC)
    x_bf = x_ld.astype(jnp.bfloat16)

    wb1 = _banded_conv_weights(params["conv1_w"], W, C).astype(jnp.bfloat16)
    wb2 = _banded_conv_weights(params["conv2_w"], W, C).astype(jnp.bfloat16)
    b1 = jnp.tile(params["conv1_b"].astype(jnp.float32), W).reshape(1, WC)
    b2 = jnp.tile(params["conv2_b"].astype(jnp.float32), W).reshape(1, WC)

    # conv1 (3x3x3, same) + relu
    h1 = conv3d_lane(x_bf, wb1, b1, D=D, H=H, td=td, relu=True,
                     with_pool=False, vmem_limit=vmem_limit)
    # TODO(synk): fuse conv1+conv2 per D-tile to skip the h1 HBM round trip.

    # conv2 (3x3x3, same) with fused per-tile global-average-pool partials
    h2, pool_parts = conv3d_lane(h1, wb2, b2, D=D, H=H, td=td, relu=False,
                                 with_pool=True, vmem_limit=vmem_limit)

    # Channel-attention MLP hoisted out of the tiled kernels (once per sample).
    n_tiles = D // td
    pool_rows = pool_parts.reshape(N, n_tiles, 8, WC)[:, :, 0, :]
    pooled = pool_rows.sum(axis=1).reshape(N, W, C).sum(axis=1) / float(D * H * W)
    z = jnp.maximum(pooled @ params["fc1_w"] + params["fc1_b"], 0.0)
    attn = jax.nn.sigmoid(z @ params["fc2_w"] + params["fc2_b"])     # (N, C)
    attn_lane = jnp.tile(attn * residual_scaling, (1, W)).reshape(N, 1, WC)
    attn_lane = attn_lane.astype(jnp.float32)

    out_ld = ca_residual(h2, x_ld, attn_lane, tR=td * H, vmem_limit=vmem_limit)

    # TODO(synk): store NCDHW directly from the CA kernel to kill this
    #             full-volume HBM transpose.
    out = out_ld.reshape(N, D, H, W, C)
    return jnp.transpose(out, (0, 4, 1, 2, 3))


# --------------------------- pure-JAX reference ------------------------------

def _reference_forward(x_ncdhw, params, residual_scaling):
    x = jnp.transpose(x_ncdhw, (0, 2, 3, 4, 1))              # NDHWC

    def conv3(inp, w, b):
        y = lax.conv_general_dilated(
            inp, w, window_strides=(1, 1, 1), padding="SAME",
            dimension_numbers=("NDHWC", "DHWIO", "NDHWC"))
        return y + b

    h = jnp.maximum(conv3(x, params["conv1_w"], params["conv1_b"]), 0.0)
    h = conv3(h, params["conv2_w"], params["conv2_b"])
    pooled = jnp.mean(h, axis=(1, 2, 3))                     # (N, C)
    z = jnp.maximum(pooled @ params["fc1_w"] + params["fc1_b"], 0.0)
    attn = jax.nn.sigmoid(z @ params["fc2_w"] + params["fc2_b"])  # (N, C)
    out = h * attn[:, None, None, None, :] * residual_scaling + x
    return jnp.transpose(out, (0, 4, 1, 2, 3))


# --------------------------------- main --------------------------------------

if __name__ == "__main__":
    N, C, D, H, W = 2, 8, 8, 16, 16
    reduction = 4
    residual_scaling = 0.1
    Cr = C // reduction

    key = jax.random.PRNGKey(0)
    ks = jax.random.split(key, 9)
    x = jax.random.normal(ks[0], (N, C, D, H, W), jnp.float32)

    params = dict(
        conv1_w=0.05 * jax.random.normal(ks[1], (3, 3, 3, C, C), jnp.float32),
        conv1_b=0.05 * jax.random.normal(ks[2], (C,), jnp.float32),
        conv2_w=0.05 * jax.random.normal(ks[3], (3, 3, 3, C, C), jnp.float32),
        conv2_b=0.05 * jax.random.normal(ks[4], (C,), jnp.float32),
        fc1_w=0.2 * jax.random.normal(ks[5], (C, Cr), jnp.float32),
        fc1_b=0.05 * jax.random.normal(ks[6], (Cr,), jnp.float32),
        fc2_w=0.2 * jax.random.normal(ks[7], (Cr, C), jnp.float32),
        fc2_b=0.05 * jax.random.normal(ks[8], (C,), jnp.float32),
    )

    ref = jax.block_until_ready(
        _reference_forward(x, params, residual_scaling))

    # Default tiling (VMEM-budget-driven; whole D per tile at this size).
    fwd = jax.jit(functools.partial(rcab3d_forward,
                                    residual_scaling=residual_scaling))
    out = jax.block_until_ready(fwd(x, params))
    assert out.shape == x.shape and out.dtype == x.dtype
    max_err = float(jnp.max(jnp.abs(out - ref)))
    assert max_err < 2e-2, f"mismatch vs reference: {max_err}"

    # Forced multi-tile run: exercises the halo DMA + per-tile pool partials.
    fwd_mt = jax.jit(functools.partial(rcab3d_forward,
                                       residual_scaling=residual_scaling,
                                       d_tile=2))
    out_mt = jax.block_until_ready(fwd_mt(x, params))
    max_err_mt = float(jnp.max(jnp.abs(out_mt - ref)))
    assert max_err_mt < 2e-2, f"multi-tile mismatch vs reference: {max_err_mt}"

    print("KERNEL_OK")
</pallas_src>

<mosaic_0001>
module attributes {stable_mosaic.version = 11 : i64} {
  func.func @_conv_kernel(%arg0: i32, %arg1: i32, %arg2: memref<1x128x128xbf16, #tpu.memory_space<vmem>>, %arg3: memref<2x128x128xbf16, #tpu.memory_space<any>>, %arg4: memref<9x128x128xbf16, #tpu.memory_space<vmem>>, %arg5: memref<1x128xf32, #tpu.memory_space<vmem>>, %arg6: memref<1x128x128xbf16, #tpu.memory_space<vmem>>, %arg7: memref<192x128xbf16, #tpu.memory_space<vmem>>, %arg8: memref<2x!tpu.dma_semaphore, #tpu.memory_space<semaphore_mem>>) attributes {dimension_semantics = [#tpu.dimension_semantics<parallel>, #tpu.dimension_semantics<parallel>], iteration_bounds = array<i64: 2, 1>, scalar_prefetch = 0 : i64, scratch_operands = 2 : i64, tpu.core_type = #tpu.core_type<tc>, window_params = [{transform_indices = @transform_0, window_bounds = array<i64: 1, 128, 128>}, {}, {pipeline_mode = #tpu.pipeline_mode<synchronous>, transform_indices = @transform_2, window_bounds = array<i64: 9, 128, 128>}, {pipeline_mode = #tpu.pipeline_mode<synchronous>, transform_indices = @transform_3, window_bounds = array<i64: 1, 128>}, {transform_indices = @transform_4, window_bounds = array<i64: 1, 128, 128>}]} {
    %c0_i32 = arith.constant 0 : i32
    %0 = arith.cmpi sgt, %arg1, %c0_i32 : i32
    %1 = arith.extui %0 : i1 to i32
    %c0_i32_0 = arith.constant 0 : i32
    %2 = arith.cmpi ne, %1, %c0_i32_0 : i32
    scf.if %2 {
      %c128_i32 = arith.constant 128 : i32
      %109 = arith.muli %arg1, %c128_i32 : i32
      %c16_i32_70 = arith.constant 16 : i32
      %110 = arith.subi %109, %c16_i32_70 : i32
      %c0_i32_71 = arith.constant 0 : i32
      %c0_i32_72 = arith.constant 0 : i32
      %111 = tpu.memref_slice %arg3[%arg0, %110, %c0_i32_72] : memref<2x128x128xbf16, #tpu.memory_space<any>> -> memref<1x16x128xbf16, #tpu.memory_space<any>>
      %112 = tpu.memref_squeeze %111 : memref<1x16x128xbf16, #tpu.memory_space<any>> -> memref<16x128xbf16, #tpu.memory_space<any>>
      %c16_i32_73 = arith.constant 16 : i32
      %c0_i32_74 = arith.constant 0 : i32
      %113 = tpu.memref_slice %arg7[%c16_i32_73, %c0_i32_74] : memref<192x128xbf16, #tpu.memory_space<vmem>> -> memref<16x128xbf16, #tpu.memory_space<vmem>>
      %114 = tpu.memref_slice %arg8[%c0_i32_71] : memref<2x!tpu.dma_semaphore, #tpu.memory_space<semaphore_mem>> -> memref<1x!tpu.dma_semaphore, #tpu.memory_space<semaphore_mem>>
      %115 = tpu.memref_squeeze %114 : memref<1x!tpu.dma_semaphore, #tpu.memory_space<semaphore_mem>> -> memref<!tpu.dma_semaphore, #tpu.memory_space<semaphore_mem>>
      tpu.enqueue_dma source(%112 : memref<16x128xbf16, #tpu.memory_space<any>>) target(%113 : memref<16x128xbf16, #tpu.memory_space<vmem>>) target_semaphore(%115 : memref<!tpu.dma_semaphore, #tpu.memory_space<semaphore_mem>>)
    } else {
    }
    %c0_i32_1 = arith.constant 0 : i32
    %3 = arith.cmpi slt, %arg1, %c0_i32_1 : i32
    %4 = arith.extui %3 : i1 to i32
    %c0_i32_2 = arith.constant 0 : i32
    %5 = arith.cmpi ne, %4, %c0_i32_2 : i32
    scf.if %5 {
      %c1_i32_70 = arith.constant 1 : i32
      %109 = arith.addi %arg1, %c1_i32_70 : i32
      %c128_i32 = arith.constant 128 : i32
      %110 = arith.muli %109, %c128_i32 : i32
      %c1_i32_71 = arith.constant 1 : i32
      %c0_i32_72 = arith.constant 0 : i32
      %111 = tpu.memref_slice %arg3[%arg0, %110, %c0_i32_72] : memref<2x128x128xbf16, #tpu.memory_space<any>> -> memref<1x16x128xbf16, #tpu.memory_space<any>>
      %112 = tpu.memref_squeeze %111 : memref<1x16x128xbf16, #tpu.memory_space<any>> -> memref<16x128xbf16, #tpu.memory_space<any>>
      %c160_i32 = arith.constant 160 : i32
      %c0_i32_73 = arith.constant 0 : i32
      %113 = tpu.memref_slice %arg7[%c160_i32, %c0_i32_73] : memref<192x128xbf16, #tpu.memory_space<vmem>> -> memref<16x128xbf16, #tpu.memory_space<vmem>>
      %114 = tpu.memref_slice %arg8[%c1_i32_71] : memref<2x!tpu.dma_semaphore, #tpu.memory_space<semaphore_mem>> -> memref<1x!tpu.dma_semaphore, #tpu.memory_space<semaphore_mem>>
      %115 = tpu.memref_squeeze %114 : memref<1x!tpu.dma_semaphore, #tpu.memory_space<semaphore_mem>> -> memref<!tpu.dma_semaphore, #tpu.memory_space<semaphore_mem>>
      tpu.enqueue_dma source(%112 : memref<16x128xbf16, #tpu.memory_space<any>>) target(%113 : memref<16x128xbf16, #tpu.memory_space<vmem>>) target_semaphore(%115 : memref<!tpu.dma_semaphore, #tpu.memory_space<semaphore_mem>>)
    } else {
    }
    %c0 = arith.constant 0 : index
    %c0_3 = arith.constant 0 : index
    %c0_4 = arith.constant 0 : index
    %6 = vector.load %arg2[%c0, %c0_3, %c0_4] : memref<1x128x128xbf16, #tpu.memory_space<vmem>>, vector<1x128x128xbf16>
    %7 = vector.shape_cast %6 : vector<1x128x128xbf16> to vector<128x128xbf16>
    %c32 = arith.constant 32 : index
    %c0_5 = arith.constant 0 : index
    %8 = vector.load %arg7[%c32, %c0_5] : memref<192x128xbf16, #tpu.memory_space<vmem>>, vector<128x128xbf16>
    tpu.vector_store %arg7[%c32, %c0_5], %7 {strides = array<i32>} : memref<192x128xbf16, #tpu.memory_space<vmem>>, vector<128x128xbf16>,
    %cst = arith.constant 0.000000e+00 : bf16
    %9 = vector.broadcast %cst : bf16 to vector<16x128xbf16>
    %c0_6 = arith.constant 0 : index
    %c0_7 = arith.constant 0 : index
    %10 = vector.load %arg7[%c0_6, %c0_7] : memref<192x128xbf16, #tpu.memory_space<vmem>>, vector<16x128xbf16>
    tpu.vector_store %arg7[%c0_6, %c0_7], %9 {strides = array<i32>} : memref<192x128xbf16, #tpu.memory_space<vmem>>, vector<16x128xbf16>,
    %c176 = arith.constant 176 : index
    %c0_8 = arith.constant 0 : index
    %11 = vector.load %arg7[%c176, %c0_8] : memref<192x128xbf16, #tpu.memory_space<vmem>>, vector<16x128xbf16>
    tpu.vector_store %arg7[%c176, %c0_8], %9 {strides = array<i32>} : memref<192x128xbf16, #tpu.memory_space<vmem>>, vector<16x128xbf16>,
    %cst_9 = arith.constant 0.000000e+00 : bf16
    %12 = vector.broadcast %cst_9 : bf16 to vector<16x128xbf16>
    %c0_i32_10 = arith.constant 0 : i32
    %13 = arith.cmpi eq, %arg1, %c0_i32_10 : i32
    %14 = arith.extui %13 : i1 to i32
    %c0_i32_11 = arith.constant 0 : i32
    %15 = arith.cmpi ne, %14, %c0_i32_11 : i32
    scf.if %15 {
      %c16_70 = arith.constant 16 : index
      %c0_71 = arith.constant 0 : index
      %109 = vector.load %arg7[%c16_70, %c0_71] : memref<192x128xbf16, #tpu.memory_space<vmem>>, vector<16x128xbf16>
      tpu.vector_store %arg7[%c16_70, %c0_71], %12 {strides = array<i32>} : memref<192x128xbf16, #tpu.memory_space<vmem>>, vector<16x128xbf16>,
    } else {
    }
    %c0_i32_12 = arith.constant 0 : i32
    %16 = arith.cmpi eq, %arg1, %c0_i32_12 : i32
    %17 = arith.extui %16 : i1 to i32
    %c0_i32_13 = arith.constant 0 : i32
    %18 = arith.cmpi ne, %17, %c0_i32_13 : i32
    scf.if %18 {
      %c160 = arith.constant 160 : index
      %c0_70 = arith.constant 0 : index
      %109 = vector.load %arg7[%c160, %c0_70] : memref<192x128xbf16, #tpu.memory_space<vmem>>, vector<16x128xbf16>
      tpu.vector_store %arg7[%c160, %c0_70], %12 {strides = array<i32>} : memref<192x128xbf16, #tpu.memory_space<vmem>>, vector<16x128xbf16>,
    } else {
    }
    %c0_i32_14 = arith.constant 0 : i32
    %19 = arith.cmpi sgt, %arg1, %c0_i32_14 : i32
    %20 = arith.extui %19 : i1 to i32
    %c0_i32_15 = arith.constant 0 : i32
    %21 = arith.cmpi ne, %20, %c0_i32_15 : i32
    scf.if %21 {
      %c128_i32 = arith.constant 128 : i32
      %109 = arith.muli %arg1, %c128_i32 : i32
      %c16_i32_70 = arith.constant 16 : i32
      %110 = arith.subi %109, %c16_i32_70 : i32
      %c0_i32_71 = arith.constant 0 : i32
      %c0_i32_72 = arith.constant 0 : i32
      %111 = tpu.memref_slice %arg3[%arg0, %110, %c0_i32_72] : memref<2x128x128xbf16, #tpu.memory_space<any>> -> memref<1x16x128xbf16, #tpu.memory_space<any>>
      %112 = tpu.memref_squeeze %111 : memref<1x16x128xbf16, #tpu.memory_space<any>> -> memref<16x128xbf16, #tpu.memory_space<any>>
      %c16_i32_73 = arith.constant 16 : i32
      %c0_i32_74 = arith.constant 0 : i32
      %113 = tpu.memref_slice %arg7[%c16_i32_73, %c0_i32_74] : memref<192x128xbf16, #tpu.memory_space<vmem>> -> memref<16x128xbf16, #tpu.memory_space<vmem>>
      %114 = tpu.memref_slice %arg8[%c0_i32_71] : memref<2x!tpu.dma_semaphore, #tpu.memory_space<semaphore_mem>> -> memref<1x!tpu.dma_semaphore, #tpu.memory_space<semaphore_mem>>
      %115 = tpu.memref_squeeze %114 : memref<1x!tpu.dma_semaphore, #tpu.memory_space<semaphore_mem>> -> memref<!tpu.dma_semaphore, #tpu.memory_space<semaphore_mem>>
      tpu.wait_dma2 semaphore(%115 : memref<!tpu.dma_semaphore, #tpu.memory_space<semaphore_mem>>) src(%112 : memref<16x128xbf16, #tpu.memory_space<any>>) dst(%113 : memref<16x128xbf16, #tpu.memory_space<vmem>>)
    } else {
    }
    %c0_i32_16 = arith.constant 0 : i32
    %22 = arith.cmpi slt, %arg1, %c0_i32_16 : i32
    %23 = arith.extui %22 : i1 to i32
    %c0_i32_17 = arith.constant 0 : i32
    %24 = arith.cmpi ne, %23, %c0_i32_17 : i32
    scf.if %24 {
      %c1_i32_70 = arith.constant 1 : i32
      %109 = arith.addi %arg1, %c1_i32_70 : i32
      %c128_i32 = arith.constant 128 : i32
      %110 = arith.muli %109, %c128_i32 : i32
      %c1_i32_71 = arith.constant 1 : i32
      %c0_i32_72 = arith.constant 0 : i32
      %111 = tpu.memref_slice %arg3[%arg0, %110, %c0_i32_72] : memref<2x128x128xbf16, #tpu.memory_space<any>> -> memref<1x16x128xbf16, #tpu.memory_space<any>>
      %112 = tpu.memref_squeeze %111 : memref<1x16x128xbf16, #tpu.memory_space<any>> -> memref<16x128xbf16, #tpu.memory_space<any>>
      %c160_i32 = arith.constant 160 : i32
      %c0_i32_73 = arith.constant 0 : i32
      %113 = tpu.memref_slice %arg7[%c160_i32, %c0_i32_73] : memref<192x128xbf16, #tpu.memory_space<vmem>> -> memref<16x128xbf16, #tpu.memory_space<vmem>>
      %114 = tpu.memref_slice %arg8[%c1_i32_71] : memref<2x!tpu.dma_semaphore, #tpu.memory_space<semaphore_mem>> -> memref<1x!tpu.dma_semaphore, #tpu.memory_space<semaphore_mem>>
      %115 = tpu.memref_squeeze %114 : memref<1x!tpu.dma_semaphore, #tpu.memory_space<semaphore_mem>> -> memref<!tpu.dma_semaphore, #tpu.memory_space<semaphore_mem>>
      tpu.wait_dma2 semaphore(%115 : memref<!tpu.dma_semaphore, #tpu.memory_space<semaphore_mem>>) src(%112 : memref<16x128xbf16, #tpu.memory_space<any>>) dst(%113 : memref<16x128xbf16, #tpu.memory_space<vmem>>)
    } else {
    }
    %c0_18 = arith.constant 0 : index
    %c0_19 = arith.constant 0 : index
    %25 = vector.load %arg5[%c0_18, %c0_19] : memref<1x128xf32, #tpu.memory_space<vmem>>, vector<1x128xf32>
    %26 = tpu.iota {dimensions = array<i32: 0>} : vector<128x1xi32>
    %c0_i32_20 = arith.constant 0 : i32
    %27 = vector.broadcast %c0_i32_20 : i32 to vector<128x1xi32>
    %28 = arith.addi %26, %27 : vector<128x1xi32>
    %c16_i32 = arith.constant 16 : i32
    %c0_i32_21 = arith.constant 0 : i32
    %29 = arith.cmpi eq, %c16_i32, %c0_i32_21 : i32
    %c1_i32 = arith.constant 1 : i32
    %30 = arith.select %29, %c1_i32, %c16_i32 : i32
    %31 = vector.broadcast %30 : i32 to vector<128x1xi32>
    %32 = arith.remsi %28, %31 : vector<128x1xi32>
    %c0_i32_22 = arith.constant 0 : i32
    %33 = vector.broadcast %c0_i32_22 : i32 to vector<128x1xi32>
    %34 = arith.cmpi ne, %32, %33 : vector<128x1xi32>
    %c0_i32_23 = arith.constant 0 : i32
    %35 = vector.broadcast %c0_i32_23 : i32 to vector<128x1xi32>
    %36 = arith.cmpi slt, %32, %35 : vector<128x1xi32>
    %c0_i32_24 = arith.constant 0 : i32
    %37 = arith.cmpi slt, %30, %c0_i32_24 : i32
    %38 = vector.broadcast %37 : i1 to vector<128x1xi1>
    %39 = vector.broadcast %38 : vector<128x1xi1> to vector<128x1xi1>
    %40 = arith.xori %36, %39 : vector<128x1xi1>
    %41 = arith.andi %40, %34 : vector<128x1xi1>
    %42 = vector.broadcast %30 : i32 to vector<128x1xi32>
    %43 = arith.addi %32, %42 : vector<128x1xi32>
    %44 = arith.select %41, %43, %32 : vector<128x1xi1>, vector<128x1xi32>
    %c1_i32_25 = arith.constant 1 : i32
    %45 = vector.broadcast %c1_i32_25 : i32 to vector<128x1xi32>
    %46 = arith.cmpi sge, %44, %45 : vector<128x1xi32>
    %c14_i32 = arith.constant 14 : i32
    %47 = vector.broadcast %c14_i32 : i32 to vector<128x1xi32>
    %48 = arith.cmpi sle, %44, %47 : vector<128x1xi32>
    %c15 = arith.constant 15 : index
    %c0_26 = arith.constant 0 : index
    %49 = vector.load %arg7[%c15, %c0_26] : memref<192x128xbf16, #tpu.memory_space<vmem>>, vector<128x128xbf16>
    %c0_27 = arith.constant 0 : index
    %c0_28 = arith.constant 0 : index
    %c0_29 = arith.constant 0 : index
    %50 = vector.load %arg4[%c0_27, %c0_28, %c0_29] : memref<9x128x128xbf16, #tpu.memory_space<vmem>>, vector<1x128x128xbf16>
    %51 = vector.shape_cast %50 : vector<1x128x128xbf16> to vector<128x128xbf16>
    %cst_30 = arith.constant dense<0.000000e+00> : vector<128x128xf32>
    %52 = tpu.matmul %49, %51, %cst_30 {dimension_numbers = #tpu.dot_dimension_numbers<[1], [0], [0], [1], [0, 0, 1, 1], [], []>} : vector<128x128xbf16>, vector<128x128xbf16>, vector<128x128xf32> -> vector<128x128xf32>
    %c31 = arith.constant 31 : index
    %c0_31 = arith.constant 0 : index
    %53 = vector.load %arg7[%c31, %c0_31] : memref<192x128xbf16, #tpu.memory_space<vmem>>, vector<128x128xbf16>
    %c3 = arith.constant 3 : index
    %c0_32 = arith.constant 0 : index
    %c0_33 = arith.constant 0 : index
    %54 = vector.load %arg4[%c3, %c0_32, %c0_33] : memref<9x128x128xbf16, #tpu.memory_space<vmem>>, vector<1x128x128xbf16>
    %55 = vector.shape_cast %54 : vector<1x128x128xbf16> to vector<128x128xbf16>
    %cst_34 = arith.constant dense<0.000000e+00> : vector<128x128xf32>
    %56 = tpu.matmul %53, %55, %cst_34 {dimension_numbers = #tpu.dot_dimension_numbers<[1], [0], [0], [1], [0, 0, 1, 1], [], []>} : vector<128x128xbf16>, vector<128x128xbf16>, vector<128x128xf32> -> vector<128x128xf32>
    %57 = arith.addf %52, %56 : vector<128x128xf32>
    %c47 = arith.constant 47 : index
    %c0_35 = arith.constant 0 : index
    %58 = vector.load %arg7[%c47, %c0_35] : memref<192x128xbf16, #tpu.memory_space<vmem>>, vector<128x128xbf16>
    %c6 = arith.constant 6 : index
    %c0_36 = arith.constant 0 : index
    %c0_37 = arith.constant 0 : index
    %59 = vector.load %arg4[%c6, %c0_36, %c0_37] : memref<9x128x128xbf16, #tpu.memory_space<vmem>>, vector<1x128x128xbf16>
    %60 = vector.shape_cast %59 : vector<1x128x128xbf16> to vector<128x128xbf16>
    %cst_38 = arith.constant dense<0.000000e+00> : vector<128x128xf32>
    %61 = tpu.matmul %58, %60, %cst_38 {dimension_numbers = #tpu.dot_dimension_numbers<[1], [0], [0], [1], [0, 0, 1, 1], [], []>} : vector<128x128xbf16>, vector<128x128xbf16>, vector<128x128xf32> -> vector<128x128xf32>
    %62 = arith.addf %57, %61 : vector<128x128xf32>
    %cst_39 = arith.constant 0.000000e+00 : f32
    %63 = vector.shape_cast %46 : vector<128x1xi1> to vector<128x1xi1>
    %64 = vector.broadcast %63 : vector<128x1xi1> to vector<128x128xi1>
    %65 = vector.broadcast %cst_39 : f32 to vector<128x128xf32>
    %66 = arith.select %64, %62, %65 : vector<128x128xi1>, vector<128x128xf32>
    %c16 = arith.constant 16 : index
    %c0_40 = arith.constant 0 : index
    %67 = vector.load %arg7[%c16, %c0_40] : memref<192x128xbf16, #tpu.memory_space<vmem>>, vector<128x128xbf16>
    %c1 = arith.constant 1 : index
    %c0_41 = arith.constant 0 : index
    %c0_42 = arith.constant 0 : index
    %68 = vector.load %arg4[%c1, %c0_41, %c0_42] : memref<9x128x128xbf16, #tpu.memory_space<vmem>>, vector<1x128x128xbf16>
    %69 = vector.shape_cast %68 : vector<1x128x128xbf16> to vector<128x128xbf16>
    %cst_43 = arith.constant dense<0.000000e+00> : vector<128x128xf32>
    %70 = tpu.matmul %67, %69, %cst_43 {dimension_numbers = #tpu.dot_dimension_numbers<[1], [0], [0], [1], [0, 0, 1, 1], [], []>} : vector<128x128xbf16>, vector<128x128xbf16>, vector<128x128xf32> -> vector<128x128xf32>
    %c32_44 = arith.constant 32 : index
    %c0_45 = arith.constant 0 : index
    %71 = vector.load %arg7[%c32_44, %c0_45] : memref<192x128xbf16, #tpu.memory_space<vmem>>, vector<128x128xbf16>
    %c4 = arith.constant 4 : index
    %c0_46 = arith.constant 0 : index
    %c0_47 = arith.constant 0 : index
    %72 = vector.load %arg4[%c4, %c0_46, %c0_47] : memref<9x128x128xbf16, #tpu.memory_space<vmem>>, vector<1x128x128xbf16>
    %73 = vector.shape_cast %72 : vector<1x128x128xbf16> to vector<128x128xbf16>
    %cst_48 = arith.constant dense<0.000000e+00> : vector<128x128xf32>
    %74 = tpu.matmul %71, %73, %cst_48 {dimension_numbers = #tpu.dot_dimension_numbers<[1], [0], [0], [1], [0, 0, 1, 1], [], []>} : vector<128x128xbf16>, vector<128x128xbf16>, vector<128x128xf32> -> vector<128x128xf32>
    %75 = arith.addf %70, %74 : vector<128x128xf32>
    %c48 = arith.constant 48 : index
    %c0_49 = arith.constant 0 : index
    %76 = vector.load %arg7[%c48, %c0_49] : memref<192x128xbf16, #tpu.memory_space<vmem>>, vector<128x128xbf16>
    %c7 = arith.constant 7 : index
    %c0_50 = arith.constant 0 : index
    %c0_51 = arith.constant 0 : index
    %77 = vector.load %arg4[%c7, %c0_50, %c0_51] : memref<9x128x128xbf16, #tpu.memory_space<vmem>>, vector<1x128x128xbf16>
    %78 = vector.shape_cast %77 : vector<1x128x128xbf16> to vector<128x128xbf16>
    %cst_52 = arith.constant dense<0.000000e+00> : vector<128x128xf32>
    %79 = tpu.matmul %76, %78, %cst_52 {dimension_numbers = #tpu.dot_dimension_numbers<[1], [0], [0], [1], [0, 0, 1, 1], [], []>} : vector<128x128xbf16>, vector<128x128xbf16>, vector<128x128xf32> -> vector<128x128xf32>
    %80 = arith.addf %75, %79 : vector<128x128xf32>
    %81 = arith.addf %66, %80 : vector<128x128xf32>
    %c17 = arith.constant 17 : index
    %c0_53 = arith.constant 0 : index
    %82 = vector.load %arg7[%c17, %c0_53] : memref<192x128xbf16, #tpu.memory_space<vmem>>, vector<128x128xbf16>
    %c2 = arith.constant 2 : index
    %c0_54 = arith.constant 0 : index
    %c0_55 = arith.constant 0 : index
    %83 = vector.load %arg4[%c2, %c0_54, %c0_55] : memref<9x128x128xbf16, #tpu.memory_space<vmem>>, vector<1x128x128xbf16>
    %84 = vector.shape_cast %83 : vector<1x128x128xbf16> to vector<128x128xbf16>
    %cst_56 = arith.constant dense<0.000000e+00> : vector<128x128xf32>
    %85 = tpu.matmul %82, %84, %cst_56 {dimension_numbers = #tpu.dot_dimension_numbers<[1], [0], [0], [1], [0, 0, 1, 1], [], []>} : vector<128x128xbf16>, vector<128x128xbf16>, vector<128x128xf32> -> vector<128x128xf32>
    %c33 = arith.constant 33 : index
    %c0_57 = arith.constant 0 : index
    %86 = vector.load %arg7[%c33, %c0_57] : memref<192x128xbf16, #tpu.memory_space<vmem>>, vector<128x128xbf16>
    %c5 = arith.constant 5 : index
    %c0_58 = arith.constant 0 : index
    %c0_59 = arith.constant 0 : index
    %87 = vector.load %arg4[%c5, %c0_58, %c0_59] : memref<9x128x128xbf16, #tpu.memory_space<vmem>>, vector<1x128x128xbf16>
    %88 = vector.shape_cast %87 : vector<1x128x128xbf16> to vector<128x128xbf16>
    %cst_60 = arith.constant dense<0.000000e+00> : vector<128x128xf32>
    %89 = tpu.matmul %86, %88, %cst_60 {dimension_numbers = #tpu.dot_dimension_numbers<[1], [0], [0], [1], [0, 0, 1, 1], [], []>} : vector<128x128xbf16>, vector<128x128xbf16>, vector<128x128xf32> -> vector<128x128xf32>
    %90 = arith.addf %85, %89 : vector<128x128xf32>
    %c49 = arith.constant 49 : index
    %c0_61 = arith.constant 0 : index
    %91 = vector.load %arg7[%c49, %c0_61] : memref<192x128xbf16, #tpu.memory_space<vmem>>, vector<128x128xbf16>
    %c8 = arith.constant 8 : index
    %c0_62 = arith.constant 0 : index
    %c0_63 = arith.constant 0 : index
    %92 = vector.load %arg4[%c8, %c0_62, %c0_63] : memref<9x128x128xbf16, #tpu.memory_space<vmem>>, vector<1x128x128xbf16>
    %93 = vector.shape_cast %92 : vector<1x128x128xbf16> to vector<128x128xbf16>
    %cst_64 = arith.constant dense<0.000000e+00> : vector<128x128xf32>
    %94 = tpu.matmul %91, %93, %cst_64 {dimension_numbers = #tpu.dot_dimension_numbers<[1], [0], [0], [1], [0, 0, 1, 1], [], []>} : vector<128x128xbf16>, vector<128x128xbf16>, vector<128x128xf32> -> vector<128x128xf32>
    %95 = arith.addf %90, %94 : vector<128x128xf32>
    %cst_65 = arith.constant 0.000000e+00 : f32
    %96 = vector.shape_cast %48 : vector<128x1xi1> to vector<128x1xi1>
    %97 = vector.broadcast %96 : vector<128x1xi1> to vector<128x128xi1>
    %98 = vector.broadcast %cst_65 : f32 to vector<128x128xf32>
    %99 = arith.select %97, %95, %98 : vector<128x128xi1>, vector<128x128xf32>
    %100 = arith.addf %81, %99 : vector<128x128xf32>
    %101 = vector.broadcast %25 : vector<1x128xf32> to vector<128x128xf32>
    %102 = arith.addf %100, %101 : vector<128x128xf32>
    %cst_66 = arith.constant 0.000000e+00 : f32
    %103 = vector.broadcast %cst_66 : f32 to vector<128x128xf32>
    %104 = arith.maximumf %102, %103 : vector<128x128xf32>
    %105 = arith.truncf %104 : vector<128x128xf32> to vector<128x128xbf16>
    %c0_67 = arith.constant 0 : index
    %c0_68 = arith.constant 0 : index
    %c0_69 = arith.constant 0 : index
    %106 = vector.load %arg6[%c0_67, %c0_68, %c0_69] : memref<1x128x128xbf16, #tpu.memory_space<vmem>>, vector<1x128x128xbf16>
    %107 = vector.shape_cast %106 : vector<1x128x128xbf16> to vector<128x128xbf16>
    %108 = vector.shape_cast %105 : vector<128x128xbf16> to vector<1x128x128xbf16>
    tpu.vector_store %arg6[%c0_67, %c0_68, %c0_69], %108 {strides = array<i32>} : memref<1x128x128xbf16, #tpu.memory_space<vmem>>, vector<1x128x128xbf16>,
    return
  }
  func.func @transform_0(%arg0: i32, %arg1: i32) -> (i32, i32, i32) {
    %c0_i32 = arith.constant 0 : i32
    %c0_i32_0 = arith.constant 0 : i32
    return %arg0, %arg1, %c0_i32 : i32, i32, i32
  }
  func.func @transform_2(%arg0: i32, %arg1: i32) -> (i32, i32, i32) {
    %c0_i32 = arith.constant 0 : i32
    %c0_i32_0 = arith.constant 0 : i32
    %c0_i32_1 = arith.constant 0 : i32
    %c0_i32_2 = arith.constant 0 : i32
    return %c0_i32, %c0_i32_0, %c0_i32_1 : i32, i32, i32
  }
  func.func @transform_3(%arg0: i32, %arg1: i32) -> (i32, i32) {
    %c0_i32 = arith.constant 0 : i32
    %c0_i32_0 = arith.constant 0 : i32
    %c0_i32_1 = arith.constant 0 : i32
    return %c0_i32, %c0_i32_0 : i32, i32
  }
  func.func @transform_4(%arg0: i32, %arg1: i32) -> (i32, i32, i32) {
    %c0_i32 = arith.constant 0 : i32
    %c0_i32_0 = arith.constant 0 : i32
    return %arg0, %arg1, %c0_i32 : i32, i32, i32
  }
}

module attributes {stable_mosaic.version = 11 : i64} {
  func.func @_conv_pool_kernel(%arg0: i32, %arg1: i32, %arg2: memref<1x128x128xbf16, #tpu.memory_space<vmem>>, %arg3: memref<2x128x128xbf16, #tpu.memory_space<any>>, %arg4: memref<9x128x128xbf16, #tpu.memory_space<vmem>>, %arg5: memref<1x128xf32, #tpu.memory_space<vmem>>, %arg6: memref<1x128x128xbf16, #tpu.memory_space<vmem>>, %arg7: memref<1x8x128xf32, #tpu.memory_space<vmem>>, %arg8: memref<192x128xbf16, #tpu.memory_space<vmem>>, %arg9: memref<2x!tpu.dma_semaphore, #tpu.memory_space<semaphore_mem>>) attributes {dimension_semantics = [#tpu.dimension_semantics<parallel>, #tpu.dimension_semantics<parallel>], iteration_bounds = array<i64: 2, 1>, scalar_prefetch = 0 : i64, scratch_operands = 2 : i64, tpu.core_type = #tpu.core_type<tc>, window_params = [{transform_indices = @transform_0, window_bounds = array<i64: 1, 128, 128>}, {}, {pipeline_mode = #tpu.pipeline_mode<synchronous>, transform_indices = @transform_2, window_bounds = array<i64: 9, 128, 128>}, {pipeline_mode = #tpu.pipeline_mode<synchronous>, transform_indices = @transform_3, window_bounds = array<i64: 1, 128>}, {transform_indices = @transform_4, window_bounds = array<i64: 1, 128, 128>}, {transform_indices = @transform_5, window_bounds = array<i64: 1, 8, 128>}]} {
    %c0_i32 = arith.constant 0 : i32
    %0 = arith.cmpi sgt, %arg1, %c0_i32 : i32
    %1 = arith.extui %0 : i1 to i32
    %c0_i32_0 = arith.constant 0 : i32
    %2 = arith.cmpi ne, %1, %c0_i32_0 : i32
    scf.if %2 {
      %c128_i32 = arith.constant 128 : i32
      %114 = arith.muli %arg1, %c128_i32 : i32
      %c16_i32_73 = arith.constant 16 : i32
      %115 = arith.subi %114, %c16_i32_73 : i32
      %c0_i32_74 = arith.constant 0 : i32
      %c0_i32_75 = arith.constant 0 : i32
      %116 = tpu.memref_slice %arg3[%arg0, %115, %c0_i32_75] : memref<2x128x128xbf16, #tpu.memory_space<any>> -> memref<1x16x128xbf16, #tpu.memory_space<any>>
      %117 = tpu.memref_squeeze %116 : memref<1x16x128xbf16, #tpu.memory_space<any>> -> memref<16x128xbf16, #tpu.memory_space<any>>
      %c16_i32_76 = arith.constant 16 : i32
      %c0_i32_77 = arith.constant 0 : i32
      %118 = tpu.memref_slice %arg8[%c16_i32_76, %c0_i32_77] : memref<192x128xbf16, #tpu.memory_space<vmem>> -> memref<16x128xbf16, #tpu.memory_space<vmem>>
      %119 = tpu.memref_slice %arg9[%c0_i32_74] : memref<2x!tpu.dma_semaphore, #tpu.memory_space<semaphore_mem>> -> memref<1x!tpu.dma_semaphore, #tpu.memory_space<semaphore_mem>>
      %120 = tpu.memref_squeeze %119 : memref<1x!tpu.dma_semaphore, #tpu.memory_space<semaphore_mem>> -> memref<!tpu.dma_semaphore, #tpu.memory_space<semaphore_mem>>
      tpu.enqueue_dma source(%117 : memref<16x128xbf16, #tpu.memory_space<any>>) target(%118 : memref<16x128xbf16, #tpu.memory_space<vmem>>) target_semaphore(%120 : memref<!tpu.dma_semaphore, #tpu.memory_space<semaphore_mem>>)
    } else {
    }
    %c0_i32_1 = arith.constant 0 : i32
    %3 = arith.cmpi slt, %arg1, %c0_i32_1 : i32
    %4 = arith.extui %3 : i1 to i32
    %c0_i32_2 = arith.constant 0 : i32
    %5 = arith.cmpi ne, %4, %c0_i32_2 : i32
    scf.if %5 {
      %c1_i32_73 = arith.constant 1 : i32
      %114 = arith.addi %arg1, %c1_i32_73 : i32
      %c128_i32 = arith.constant 128 : i32
      %115 = arith.muli %114, %c128_i32 : i32
      %c1_i32_74 = arith.constant 1 : i32
      %c0_i32_75 = arith.constant 0 : i32
      %116 = tpu.memref_slice %arg3[%arg0, %115, %c0_i32_75] : memref<2x128x128xbf16, #tpu.memory_space<any>> -> memref<1x16x128xbf16, #tpu.memory_space<any>>
      %117 = tpu.memref_squeeze %116 : memref<1x16x128xbf16, #tpu.memory_space<any>> -> memref<16x128xbf16, #tpu.memory_space<any>>
      %c160_i32 = arith.constant 160 : i32
      %c0_i32_76 = arith.constant 0 : i32
      %118 = tpu.memref_slice %arg8[%c160_i32, %c0_i32_76] : memref<192x128xbf16, #tpu.memory_space<vmem>> -> memref<16x128xbf16, #tpu.memory_space<vmem>>
      %119 = tpu.memref_slice %arg9[%c1_i32_74] : memref<2x!tpu.dma_semaphore, #tpu.memory_space<semaphore_mem>> -> memref<1x!tpu.dma_semaphore, #tpu.memory_space<semaphore_mem>>
      %120 = tpu.memref_squeeze %119 : memref<1x!tpu.dma_semaphore, #tpu.memory_space<semaphore_mem>> -> memref<!tpu.dma_semaphore, #tpu.memory_space<semaphore_mem>>
      tpu.enqueue_dma source(%117 : memref<16x128xbf16, #tpu.memory_space<any>>) target(%118 : memref<16x128xbf16, #tpu.memory_space<vmem>>) target_semaphore(%120 : memref<!tpu.dma_semaphore, #tpu.memory_space<semaphore_mem>>)
    } else {
    }
    %c0 = arith.constant 0 : index
    %c0_3 = arith.constant 0 : index
    %c0_4 = arith.constant 0 : index
    %6 = vector.load %arg2[%c0, %c0_3, %c0_4] : memref<1x128x128xbf16, #tpu.memory_space<vmem>>, vector<1x128x128xbf16>
    %7 = vector.shape_cast %6 : vector<1x128x128xbf16> to vector<128x128xbf16>
    %c32 = arith.constant 32 : index
    %c0_5 = arith.constant 0 : index
    %8 = vector.load %arg8[%c32, %c0_5] : memref<192x128xbf16, #tpu.memory_space<vmem>>, vector<128x128xbf16>
    tpu.vector_store %arg8[%c32, %c0_5], %7 {strides = array<i32>} : memref<192x128xbf16, #tpu.memory_space<vmem>>, vector<128x128xbf16>,
    %cst = arith.constant 0.000000e+00 : bf16
    %9 = vector.broadcast %cst : bf16 to vector<16x128xbf16>
    %c0_6 = arith.constant 0 : index
    %c0_7 = arith.constant 0 : index
    %10 = vector.load %arg8[%c0_6, %c0_7] : memref<192x128xbf16, #tpu.memory_space<vmem>>, vector<16x128xbf16>
    tpu.vector_store %arg8[%c0_6, %c0_7], %9 {strides = array<i32>} : memref<192x128xbf16, #tpu.memory_space<vmem>>, vector<16x128xbf16>,
    %c176 = arith.constant 176 : index
    %c0_8 = arith.constant 0 : index
    %11 = vector.load %arg8[%c176, %c0_8] : memref<192x128xbf16, #tpu.memory_space<vmem>>, vector<16x128xbf16>
    tpu.vector_store %arg8[%c176, %c0_8], %9 {strides = array<i32>} : memref<192x128xbf16, #tpu.memory_space<vmem>>, vector<16x128xbf16>,
    %cst_9 = arith.constant 0.000000e+00 : bf16
    %12 = vector.broadcast %cst_9 : bf16 to vector<16x128xbf16>
    %c0_i32_10 = arith.constant 0 : i32
    %13 = arith.cmpi eq, %arg1, %c0_i32_10 : i32
    %14 = arith.extui %13 : i1 to i32
    %c0_i32_11 = arith.constant 0 : i32
    %15 = arith.cmpi ne, %14, %c0_i32_11 : i32
    scf.if %15 {
      %c16_73 = arith.constant 16 : index
      %c0_74 = arith.constant 0 : index
      %114 = vector.load %arg8[%c16_73, %c0_74] : memref<192x128xbf16, #tpu.memory_space<vmem>>, vector<16x128xbf16>
      tpu.vector_store %arg8[%c16_73, %c0_74], %12 {strides = array<i32>} : memref<192x128xbf16, #tpu.memory_space<vmem>>, vector<16x128xbf16>,
    } else {
    }
    %c0_i32_12 = arith.constant 0 : i32
    %16 = arith.cmpi eq, %arg1, %c0_i32_12 : i32
    %17 = arith.extui %16 : i1 to i32
    %c0_i32_13 = arith.constant 0 : i32
    %18 = arith.cmpi ne, %17, %c0_i32_13 : i32
    scf.if %18 {
      %c160 = arith.constant 160 : index
      %c0_73 = arith.constant 0 : index
      %114 = vector.load %arg8[%c160, %c0_73] : memref<192x128xbf16, #tpu.memory_space<vmem>>, vector<16x128xbf16>
      tpu.vector_store %arg8[%c160, %c0_73], %12 {strides = array<i32>} : memref<192x128xbf16, #tpu.memory_space<vmem>>, vector<16x128xbf16>,
    } else {
    }
    %c0_i32_14 = arith.constant 0 : i32
    %19 = arith.cmpi sgt, %arg1, %c0_i32_14 : i32
    %20 = arith.extui %19 : i1 to i32
    %c0_i32_15 = arith.constant 0 : i32
    %21 = arith.cmpi ne, %20, %c0_i32_15 : i32
    scf.if %21 {
      %c128_i32 = arith.constant 128 : i32
      %114 = arith.muli %arg1, %c128_i32 : i32
      %c16_i32_73 = arith.constant 16 : i32
      %115 = arith.subi %114, %c16_i32_73 : i32
      %c0_i32_74 = arith.constant 0 : i32
      %c0_i32_75 = arith.constant 0 : i32
      %116 = tpu.memref_slice %arg3[%arg0, %115, %c0_i32_75] : memref<2x128x128xbf16, #tpu.memory_space<any>> -> memref<1x16x128xbf16, #tpu.memory_space<any>>
      %117 = tpu.memref_squeeze %116 : memref<1x16x128xbf16, #tpu.memory_space<any>> -> memref<16x128xbf16, #tpu.memory_space<any>>
      %c16_i32_76 = arith.constant 16 : i32
      %c0_i32_77 = arith.constant 0 : i32
      %118 = tpu.memref_slice %arg8[%c16_i32_76, %c0_i32_77] : memref<192x128xbf16, #tpu.memory_space<vmem>> -> memref<16x128xbf16, #tpu.memory_space<vmem>>
      %119 = tpu.memref_slice %arg9[%c0_i32_74] : memref<2x!tpu.dma_semaphore, #tpu.memory_space<semaphore_mem>> -> memref<1x!tpu.dma_semaphore, #tpu.memory_space<semaphore_mem>>
      %120 = tpu.memref_squeeze %119 : memref<1x!tpu.dma_semaphore, #tpu.memory_space<semaphore_mem>> -> memref<!tpu.dma_semaphore, #tpu.memory_space<semaphore_mem>>
      tpu.wait_dma2 semaphore(%120 : memref<!tpu.dma_semaphore, #tpu.memory_space<semaphore_mem>>) src(%117 : memref<16x128xbf16, #tpu.memory_space<any>>) dst(%118 : memref<16x128xbf16, #tpu.memory_space<vmem>>)
    } else {
    }
    %c0_i32_16 = arith.constant 0 : i32
    %22 = arith.cmpi slt, %arg1, %c0_i32_16 : i32
    %23 = arith.extui %22 : i1 to i32
    %c0_i32_17 = arith.constant 0 : i32
    %24 = arith.cmpi ne, %23, %c0_i32_17 : i32
    scf.if %24 {
      %c1_i32_73 = arith.constant 1 : i32
      %114 = arith.addi %arg1, %c1_i32_73 : i32
      %c128_i32 = arith.constant 128 : i32
      %115 = arith.muli %114, %c128_i32 : i32
      %c1_i32_74 = arith.constant 1 : i32
      %c0_i32_75 = arith.constant 0 : i32
      %116 = tpu.memref_slice %arg3[%arg0, %115, %c0_i32_75] : memref<2x128x128xbf16, #tpu.memory_space<any>> -> memref<1x16x128xbf16, #tpu.memory_space<any>>
      %117 = tpu.memref_squeeze %116 : memref<1x16x128xbf16, #tpu.memory_space<any>> -> memref<16x128xbf16, #tpu.memory_space<any>>
      %c160_i32 = arith.constant 160 : i32
      %c0_i32_76 = arith.constant 0 : i32
      %118 = tpu.memref_slice %arg8[%c160_i32, %c0_i32_76] : memref<192x128xbf16, #tpu.memory_space<vmem>> -> memref<16x128xbf16, #tpu.memory_space<vmem>>
      %119 = tpu.memref_slice %arg9[%c1_i32_74] : memref<2x!tpu.dma_semaphore, #tpu.memory_space<semaphore_mem>> -> memref<1x!tpu.dma_semaphore, #tpu.memory_space<semaphore_mem>>
      %120 = tpu.memref_squeeze %119 : memref<1x!tpu.dma_semaphore, #tpu.memory_space<semaphore_mem>> -> memref<!tpu.dma_semaphore, #tpu.memory_space<semaphore_mem>>
      tpu.wait_dma2 semaphore(%120 : memref<!tpu.dma_semaphore, #tpu.memory_space<semaphore_mem>>) src(%117 : memref<16x128xbf16, #tpu.memory_space<any>>) dst(%118 : memref<16x128xbf16, #tpu.memory_space<vmem>>)
    } else {
    }
    %c0_18 = arith.constant 0 : index
    %c0_19 = arith.constant 0 : index
    %25 = vector.load %arg5[%c0_18, %c0_19] : memref<1x128xf32, #tpu.memory_space<vmem>>, vector<1x128xf32>
    %26 = tpu.iota {dimensions = array<i32: 0>} : vector<128x1xi32>
    %c0_i32_20 = arith.constant 0 : i32
    %27 = vector.broadcast %c0_i32_20 : i32 to vector<128x1xi32>
    %28 = arith.addi %26, %27 : vector<128x1xi32>
    %c16_i32 = arith.constant 16 : i32
    %c0_i32_21 = arith.constant 0 : i32
    %29 = arith.cmpi eq, %c16_i32, %c0_i32_21 : i32
    %c1_i32 = arith.constant 1 : i32
    %30 = arith.select %29, %c1_i32, %c16_i32 : i32
    %31 = vector.broadcast %30 : i32 to vector<128x1xi32>
    %32 = arith.remsi %28, %31 : vector<128x1xi32>
    %c0_i32_22 = arith.constant 0 : i32
    %33 = vector.broadcast %c0_i32_22 : i32 to vector<128x1xi32>
    %34 = arith.cmpi ne, %32, %33 : vector<128x1xi32>
    %c0_i32_23 = arith.constant 0 : i32
    %35 = vector.broadcast %c0_i32_23 : i32 to vector<128x1xi32>
    %36 = arith.cmpi slt, %32, %35 : vector<128x1xi32>
    %c0_i32_24 = arith.constant 0 : i32
    %37 = arith.cmpi slt, %30, %c0_i32_24 : i32
    %38 = vector.broadcast %37 : i1 to vector<128x1xi1>
    %39 = vector.broadcast %38 : vector<128x1xi1> to vector<128x1xi1>
    %40 = arith.xori %36, %39 : vector<128x1xi1>
    %41 = arith.andi %40, %34 : vector<128x1xi1>
    %42 = vector.broadcast %30 : i32 to vector<128x1xi32>
    %43 = arith.addi %32, %42 : vector<128x1xi32>
    %44 = arith.select %41, %43, %32 : vector<128x1xi1>, vector<128x1xi32>
    %c1_i32_25 = arith.constant 1 : i32
    %45 = vector.broadcast %c1_i32_25 : i32 to vector<128x1xi32>
    %46 = arith.cmpi sge, %44, %45 : vector<128x1xi32>
    %c14_i32 = arith.constant 14 : i32
    %47 = vector.broadcast %c14_i32 : i32 to vector<128x1xi32>
    %48 = arith.cmpi sle, %44, %47 : vector<128x1xi32>
    %c15 = arith.constant 15 : index
    %c0_26 = arith.constant 0 : index
    %49 = vector.load %arg8[%c15, %c0_26] : memref<192x128xbf16, #tpu.memory_space<vmem>>, vector<128x128xbf16>
    %c0_27 = arith.constant 0 : index
    %c0_28 = arith.constant 0 : index
    %c0_29 = arith.constant 0 : index
    %50 = vector.load %arg4[%c0_27, %c0_28, %c0_29] : memref<9x128x128xbf16, #tpu.memory_space<vmem>>, vector<1x128x128xbf16>
    %51 = vector.shape_cast %50 : vector<1x128x128xbf16> to vector<128x128xbf16>
    %cst_30 = arith.constant dense<0.000000e+00> : vector<128x128xf32>
    %52 = tpu.matmul %49, %51, %cst_30 {dimension_numbers = #tpu.dot_dimension_numbers<[1], [0], [0], [1], [0, 0, 1, 1], [], []>} : vector<128x128xbf16>, vector<128x128xbf16>, vector<128x128xf32> -> vector<128x128xf32>
    %c31 = arith.constant 31 : index
    %c0_31 = arith.constant 0 : index
    %53 = vector.load %arg8[%c31, %c0_31] : memref<192x128xbf16, #tpu.memory_space<vmem>>, vector<128x128xbf16>
    %c3 = arith.constant 3 : index
    %c0_32 = arith.constant 0 : index
    %c0_33 = arith.constant 0 : index
    %54 = vector.load %arg4[%c3, %c0_32, %c0_33] : memref<9x128x128xbf16, #tpu.memory_space<vmem>>, vector<1x128x128xbf16>
    %55 = vector.shape_cast %54 : vector<1x128x128xbf16> to vector<128x128xbf16>
    %cst_34 = arith.constant dense<0.000000e+00> : vector<128x128xf32>
    %56 = tpu.matmul %53, %55, %cst_34 {dimension_numbers = #tpu.dot_dimension_numbers<[1], [0], [0], [1], [0, 0, 1, 1], [], []>} : vector<128x128xbf16>, vector<128x128xbf16>, vector<128x128xf32> -> vector<128x128xf32>
    %57 = arith.addf %52, %56 : vector<128x128xf32>
    %c47 = arith.constant 47 : index
    %c0_35 = arith.constant 0 : index
    %58 = vector.load %arg8[%c47, %c0_35] : memref<192x128xbf16, #tpu.memory_space<vmem>>, vector<128x128xbf16>
    %c6 = arith.constant 6 : index
    %c0_36 = arith.constant 0 : index
    %c0_37 = arith.constant 0 : index
    %59 = vector.load %arg4[%c6, %c0_36, %c0_37] : memref<9x128x128xbf16, #tpu.memory_space<vmem>>, vector<1x128x128xbf16>
    %60 = vector.shape_cast %59 : vector<1x128x128xbf16> to vector<128x128xbf16>
    %cst_38 = arith.constant dense<0.000000e+00> : vector<128x128xf32>
    %61 = tpu.matmul %58, %60, %cst_38 {dimension_numbers = #tpu.dot_dimension_numbers<[1], [0], [0], [1], [0, 0, 1, 1], [], []>} : vector<128x128xbf16>, vector<128x128xbf16>, vector<128x128xf32> -> vector<128x128xf32>
    %62 = arith.addf %57, %61 : vector<128x128xf32>
    %cst_39 = arith.constant 0.000000e+00 : f32
    %63 = vector.shape_cast %46 : vector<128x1xi1> to vector<128x1xi1>
    %64 = vector.broadcast %63 : vector<128x1xi1> to vector<128x128xi1>
    %65 = vector.broadcast %cst_39 : f32 to vector<128x128xf32>
    %66 = arith.select %64, %62, %65 : vector<128x128xi1>, vector<128x128xf32>
    %c16 = arith.constant 16 : index
    %c0_40 = arith.constant 0 : index
    %67 = vector.load %arg8[%c16, %c0_40] : memref<192x128xbf16, #tpu.memory_space<vmem>>, vector<128x128xbf16>
    %c1 = arith.constant 1 : index
    %c0_41 = arith.constant 0 : index
    %c0_42 = arith.constant 0 : index
    %68 = vector.load %arg4[%c1, %c0_41, %c0_42] : memref<9x128x128xbf16, #tpu.memory_space<vmem>>, vector<1x128x128xbf16>
    %69 = vector.shape_cast %68 : vector<1x128x128xbf16> to vector<128x128xbf16>
    %cst_43 = arith.constant dense<0.000000e+00> : vector<128x128xf32>
    %70 = tpu.matmul %67, %69, %cst_43 {dimension_numbers = #tpu.dot_dimension_numbers<[1], [0], [0], [1], [0, 0, 1, 1], [], []>} : vector<128x128xbf16>, vector<128x128xbf16>, vector<128x128xf32> -> vector<128x128xf32>
    %c32_44 = arith.constant 32 : index
    %c0_45 = arith.constant 0 : index
    %71 = vector.load %arg8[%c32_44, %c0_45] : memref<192x128xbf16, #tpu.memory_space<vmem>>, vector<128x128xbf16>
    %c4 = arith.constant 4 : index
    %c0_46 = arith.constant 0 : index
    %c0_47 = arith.constant 0 : index
    %72 = vector.load %arg4[%c4, %c0_46, %c0_47] : memref<9x128x128xbf16, #tpu.memory_space<vmem>>, vector<1x128x128xbf16>
    %73 = vector.shape_cast %72 : vector<1x128x128xbf16> to vector<128x128xbf16>
    %cst_48 = arith.constant dense<0.000000e+00> : vector<128x128xf32>
    %74 = tpu.matmul %71, %73, %cst_48 {dimension_numbers = #tpu.dot_dimension_numbers<[1], [0], [0], [1], [0, 0, 1, 1], [], []>} : vector<128x128xbf16>, vector<128x128xbf16>, vector<128x128xf32> -> vector<128x128xf32>
    %75 = arith.addf %70, %74 : vector<128x128xf32>
    %c48 = arith.constant 48 : index
    %c0_49 = arith.constant 0 : index
    %76 = vector.load %arg8[%c48, %c0_49] : memref<192x128xbf16, #tpu.memory_space<vmem>>, vector<128x128xbf16>
    %c7 = arith.constant 7 : index
    %c0_50 = arith.constant 0 : index
    %c0_51 = arith.constant 0 : index
    %77 = vector.load %arg4[%c7, %c0_50, %c0_51] : memref<9x128x128xbf16, #tpu.memory_space<vmem>>, vector<1x128x128xbf16>
    %78 = vector.shape_cast %77 : vector<1x128x128xbf16> to vector<128x128xbf16>
    %cst_52 = arith.constant dense<0.000000e+00> : vector<128x128xf32>
    %79 = tpu.matmul %76, %78, %cst_52 {dimension_numbers = #tpu.dot_dimension_numbers<[1], [0], [0], [1], [0, 0, 1, 1], [], []>} : vector<128x128xbf16>, vector<128x128xbf16>, vector<128x128xf32> -> vector<128x128xf32>
    %80 = arith.addf %75, %79 : vector<128x128xf32>
    %81 = arith.addf %66, %80 : vector<128x128xf32>
    %c17 = arith.constant 17 : index
    %c0_53 = arith.constant 0 : index
    %82 = vector.load %arg8[%c17, %c0_53] : memref<192x128xbf16, #tpu.memory_space<vmem>>, vector<128x128xbf16>
    %c2 = arith.constant 2 : index
    %c0_54 = arith.constant 0 : index
    %c0_55 = arith.constant 0 : index
    %83 = vector.load %arg4[%c2, %c0_54, %c0_55] : memref<9x128x128xbf16, #tpu.memory_space<vmem>>, vector<1x128x128xbf16>
    %84 = vector.shape_cast %83 : vector<1x128x128xbf16> to vector<128x128xbf16>
    %cst_56 = arith.constant dense<0.000000e+00> : vector<128x128xf32>
    %85 = tpu.matmul %82, %84, %cst_56 {dimension_numbers = #tpu.dot_dimension_numbers<[1], [0], [0], [1], [0, 0, 1, 1], [], []>} : vector<128x128xbf16>, vector<128x128xbf16>, vector<128x128xf32> -> vector<128x128xf32>
    %c33 = arith.constant 33 : index
    %c0_57 = arith.constant 0 : index
    %86 = vector.load %arg8[%c33, %c0_57] : memref<192x128xbf16, #tpu.memory_space<vmem>>, vector<128x128xbf16>
    %c5 = arith.constant 5 : index
    %c0_58 = arith.constant 0 : index
    %c0_59 = arith.constant 0 : index
    %87 = vector.load %arg4[%c5, %c0_58, %c0_59] : memref<9x128x128xbf16, #tpu.memory_space<vmem>>, vector<1x128x128xbf16>
    %88 = vector.shape_cast %87 : vector<1x128x128xbf16> to vector<128x128xbf16>
    %cst_60 = arith.constant dense<0.000000e+00> : vector<128x128xf32>
    %89 = tpu.matmul %86, %88, %cst_60 {dimension_numbers = #tpu.dot_dimension_numbers<[1], [0], [0], [1], [0, 0, 1, 1], [], []>} : vector<128x128xbf16>, vector<128x128xbf16>, vector<128x128xf32> -> vector<128x128xf32>
    %90 = arith.addf %85, %89 : vector<128x128xf32>
    %c49 = arith.constant 49 : index
    %c0_61 = arith.constant 0 : index
    %91 = vector.load %arg8[%c49, %c0_61] : memref<192x128xbf16, #tpu.memory_space<vmem>>, vector<128x128xbf16>
    %c8 = arith.constant 8 : index
    %c0_62 = arith.constant 0 : index
    %c0_63 = arith.constant 0 : index
    %92 = vector.load %arg4[%c8, %c0_62, %c0_63] : memref<9x128x128xbf16, #tpu.memory_space<vmem>>, vector<1x128x128xbf16>
    %93 = vector.shape_cast %92 : vector<1x128x128xbf16> to vector<128x128xbf16>
    %cst_64 = arith.constant dense<0.000000e+00> : vector<128x128xf32>
    %94 = tpu.matmul %91, %93, %cst_64 {dimension_numbers = #tpu.dot_dimension_numbers<[1], [0], [0], [1], [0, 0, 1, 1], [], []>} : vector<128x128xbf16>, vector<128x128xbf16>, vector<128x128xf32> -> vector<128x128xf32>
    %95 = arith.addf %90, %94 : vector<128x128xf32>
    %cst_65 = arith.constant 0.000000e+00 : f32
    %96 = vector.shape_cast %48 : vector<128x1xi1> to vector<128x1xi1>
    %97 = vector.broadcast %96 : vector<128x1xi1> to vector<128x128xi1>
    %98 = vector.broadcast %cst_65 : f32 to vector<128x128xf32>
    %99 = arith.select %97, %95, %98 : vector<128x128xi1>, vector<128x128xf32>
    %100 = arith.addf %81, %99 : vector<128x128xf32>
    %101 = vector.broadcast %25 : vector<1x128xf32> to vector<128x128xf32>
    %102 = arith.addf %100, %101 : vector<128x128xf32>
    %103 = arith.truncf %102 : vector<128x128xf32> to vector<128x128xbf16>
    %c0_66 = arith.constant 0 : index
    %c0_67 = arith.constant 0 : index
    %c0_68 = arith.constant 0 : index
    %104 = vector.load %arg6[%c0_66, %c0_67, %c0_68] : memref<1x128x128xbf16, #tpu.memory_space<vmem>>, vector<1x128x128xbf16>
    %105 = vector.shape_cast %104 : vector<1x128x128xbf16> to vector<128x128xbf16>
    %106 = vector.shape_cast %103 : vector<128x128xbf16> to vector<1x128x128xbf16>
    tpu.vector_store %arg6[%c0_66, %c0_67, %c0_68], %106 {strides = array<i32>} : memref<1x128x128xbf16, #tpu.memory_space<vmem>>, vector<1x128x128xbf16>,
    %cst_69 = arith.constant dense<0.000000e+00> : vector<128xf32>
    %107 = vector.multi_reduction <add>, %102, %cst_69 [0] : vector<128x128xf32> to vector<128xf32>
    %108 = vector.shape_cast %107 : vector<128xf32> to vector<1x128xf32>
    %109 = vector.shape_cast %108 : vector<1x128xf32> to vector<1x128xf32>
    %110 = vector.broadcast %109 : vector<1x128xf32> to vector<8x128xf32>
    %c0_70 = arith.constant 0 : index
    %c0_71 = arith.constant 0 : index
    %c0_72 = arith.constant 0 : index
    %111 = vector.load %arg7[%c0_70, %c0_71, %c0_72] : memref<1x8x128xf32, #tpu.memory_space<vmem>>, vector<1x8x128xf32>
    %112 = vector.shape_cast %111 : vector<1x8x128xf32> to vector<8x128xf32>
    %113 = vector.shape_cast %110 : vector<8x128xf32> to vector<1x8x128xf32>
    tpu.vector_store %arg7[%c0_70, %c0_71, %c0_72], %113 {strides = array<i32>} : memref<1x8x128xf32, #tpu.memory_space<vmem>>, vector<1x8x128xf32>,
    return
  }
  func.func @transform_0(%arg0: i32, %arg1: i32) -> (i32, i32, i32) {
    %c0_i32 = arith.constant 0 : i32
    %c0_i32_0 = arith.constant 0 : i32
    return %arg0, %arg1, %c0_i32 : i32, i32, i32
  }
  func.func @transform_2(%arg0: i32, %arg1: i32) -> (i32, i32, i32) {
    %c0_i32 = arith.constant 0 : i32
    %c0_i32_0 = arith.constant 0 : i32
    %c0_i32_1 = arith.constant 0 : i32
    %c0_i32_2 = arith.constant 0 : i32
    return %c0_i32, %c0_i32_0, %c0_i32_1 : i32, i32, i32
  }
  func.func @transform_3(%arg0: i32, %arg1: i32) -> (i32, i32) {
    %c0_i32 = arith.constant 0 : i32
    %c0_i32_0 = arith.constant 0 : i32
    %c0_i32_1 = arith.constant 0 : i32
    return %c0_i32, %c0_i32_0 : i32, i32
  }
  func.func @transform_4(%arg0: i32, %arg1: i32) -> (i32, i32, i32) {
    %c0_i32 = arith.constant 0 : i32
    %c0_i32_0 = arith.constant 0 : i32
    return %arg0, %arg1, %c0_i32 : i32, i32, i32
  }
  func.func @transform_5(%arg0: i32, %arg1: i32) -> (i32, i32, i32) {
    %c0_i32 = arith.constant 0 : i32
    %c0_i32_0 = arith.constant 0 : i32
    return %arg0, %arg1, %c0_i32 : i32, i32, i32
  }
}

module attributes {stable_mosaic.version = 11 : i64} {
  func.func @_ca_kernel(%arg0: i32, %arg1: i32, %arg2: memref<1x128x128xbf16, #tpu.memory_space<vmem>>, %arg3: memref<1x128x128xf32, #tpu.memory_space<vmem>>, %arg4: memref<1x1x128xf32, #tpu.memory_space<vmem>>, %arg5: memref<1x128x128xf32, #tpu.memory_space<vmem>>) attributes {dimension_semantics = [#tpu.dimension_semantics<parallel>, #tpu.dimension_semantics<parallel>], iteration_bounds = array<i64: 2, 1>, scalar_prefetch = 0 : i64, scratch_operands = 0 : i64, tpu.core_type = #tpu.core_type<tc>, window_params = [{transform_indices = @transform_0, window_bounds = array<i64: 1, 128, 128>}, {transform_indices = @transform_1, window_bounds = array<i64: 1, 128, 128>}, {transform_indices = @transform_2, window_bounds = array<i64: 1, 1, 128>}, {transform_indices = @transform_3, window_bounds = array<i64: 1, 128, 128>}]} {
    %c0 = arith.constant 0 : index
    %c0_0 = arith.constant 0 : index
    %c0_1 = arith.constant 0 : index
    %0 = vector.load %arg2[%c0, %c0_0, %c0_1] : memref<1x128x128xbf16, #tpu.memory_space<vmem>>, vector<1x128x128xbf16>
    %1 = vector.shape_cast %0 : vector<1x128x128xbf16> to vector<128x128xbf16>
    %2 = arith.extf %1 : vector<128x128xbf16> to vector<128x128xf32>
    %c0_2 = arith.constant 0 : index
    %c0_3 = arith.constant 0 : index
    %c0_4 = arith.constant 0 : index
    %3 = vector.load %arg4[%c0_2, %c0_3, %c0_4] : memref<1x1x128xf32, #tpu.memory_space<vmem>>, vector<1x1x128xf32>
    %4 = vector.shape_cast %3 : vector<1x1x128xf32> to vector<1x128xf32>
    %5 = vector.broadcast %4 : vector<1x128xf32> to vector<128x128xf32>
    %6 = arith.mulf %2, %5 : vector<128x128xf32>
    %c0_5 = arith.constant 0 : index
    %c0_6 = arith.constant 0 : index
    %c0_7 = arith.constant 0 : index
    %7 = vector.load %arg3[%c0_5, %c0_6, %c0_7] : memref<1x128x128xf32, #tpu.memory_space<vmem>>, vector<1x128x128xf32>
    %8 = vector.shape_cast %7 : vector<1x128x128xf32> to vector<128x128xf32>
    %9 = arith.addf %6, %8 : vector<128x128xf32>
    %c0_8 = arith.constant 0 : index
    %c0_9 = arith.constant 0 : index
    %c0_10 = arith.constant 0 : index
    %10 = vector.load %arg5[%c0_8, %c0_9, %c0_10] : memref<1x128x128xf32, #tpu.memory_space<vmem>>, vector<1x128x128xf32>
    %11 = vector.shape_cast %10 : vector<1x128x128xf32> to vector<128x128xf32>
    %12 = vector.shape_cast %9 : vector<128x128xf32> to vector<1x128x128xf32>
    tpu.vector_store %arg5[%c0_8, %c0_9, %c0_10], %12 {strides = array<i32>} : memref<1x128x128xf32, #tpu.memory_space<vmem>>, vector<1x128x128xf32>,
    return
  }
  func.func @transform_0(%arg0: i32, %arg1: i32) -> (i32, i32, i32) {
    %c0_i32 = arith.constant 0 : i32
    %c0_i32_0 = arith.constant 0 : i32
    return %arg0, %arg1, %c0_i32 : i32, i32, i32
  }
  func.func @transform_1(%arg0: i32, %arg1: i32) -> (i32, i32, i32) {
    %c0_i32 = arith.constant 0 : i32
    %c0_i32_0 = arith.constant 0 : i32
    return %arg0, %arg1, %c0_i32 : i32, i32, i32
  }
  func.func @transform_2(%arg0: i32, %arg1: i32) -> (i32, i32, i32) {
    %c0_i32 = arith.constant 0 : i32
    %c0_i32_0 = arith.constant 0 : i32
    %c0_i32_1 = arith.constant 0 : i32
    return %arg0, %c0_i32, %c0_i32_0 : i32, i32, i32
  }
  func.func @transform_3(%arg0: i32, %arg1: i32) -> (i32, i32, i32) {
    %c0_i32 = arith.constant 0 : i32
    %c0_i32_0 = arith.constant 0 : i32
    return %arg0, %arg1, %c0_i32 : i32, i32, i32
  }
}

</mosaic_0001>

<bundles_post_ra>
// kernel: tile.18
= control target key start
LH: loop header
LB: loop body
LE: loop exit
PB: predicated region body
PF: predicated region fallthrough
CT: control target
= control target key end

     0   :  { %s28_s0 = inlined_call_operand.vmem [shape: f32[8], index: 0, kind: input, shape index: {}]   ;;  %s29_s1 = inlined_call_operand.vmem [shape: f32[16,8], index: 1, kind: output, shape index: {}]  }
   0x1   :  { %v4_v0 = vld [vmem:[%s28_s0] ss:$0 sm:$0xff] }
   0x2   :  { %5 = vst [vmem:[%s29_s1] sm:$0xff] %v4_v0  ;;  %8 = vst [vmem:[%s29_s1 + $0x8] sm:$0xff] %v4_v0 }

// kernel: tile.19
= control target key start
LH: loop header
LB: loop body
LE: loop exit
PB: predicated region body
PF: predicated region fallthrough
CT: control target
= control target key end

     0   :  { %s131_s10 = smov 120   ;;  %s132_s11 = smov 104   ;;  %vm3_vm0 = vcmask 64512   ;;  %vm9_vm1 = vcmask 1048512   ;;  %vm15_vm2 = vcmask 982912   ;;  %vm21_vm3 = vcmask 917312   ;;  %s207_s0 = inlined_call_operand.vmem [shape: f32[16,8], index: 0, kind: input, shape index: {}]   ;;  %s208_s1 = inlined_call_operand.vmem [shape: f32[1,128], index: 1, kind: output, shape index: {}]  }
   0x1   :  { %v101_v0 = vld [vmem:[%s207_s0 + $0xf] sm:$0x1]   ;;  %v103_v1 = vld [vmem:[%s207_s0 + $0xd] sm:$0x1]   ;;  %v102_v2 = vld [vmem:[%s207_s0 + $0xe] sm:$0x1]  }
   0x2   :  { %7 = vrot.lane.b32.xlu0 %v101_v0, %s131_s10  ;;  %19 = vrot.lane.b32.xlu1 %v103_v1, %s132_s11  ;;  %v104_v3 = vld [vmem:[%s207_s0 + $0xc] sm:$0x1]   ;;  %s133_s16 = smov 112   ;;  %s134_s17 = smov 96   ;;  %v105_v4 = vld [vmem:[%s207_s0 + $0xb] sm:$0x1]  }
   0x3   :  { %v106_v5 = vld [vmem:[%s207_s0 + $0xa] sm:$0x1]   ;;  %v2_v6 = vld [vmem:[%s207_s0] sm:$0x1]   ;;  %s135_s24 = smov 88   ;;  %s136_s25 = smov 80  }
   0x4   :  { %4 = vst.msk [vmem:[#allocation0] sm:$0x1] %vm3_vm0, %v2_v6   ;;  %v107_v7 = vld [vmem:[%s207_s0 + $0x9] sm:$0x1]   ;;  %v108_v8 = vld [vmem:[%s207_s0 + $0x8] sm:$0x1]  }
   0x5   :  { %s137_s30 = smov 72   ;;  %s138_s2 = smov 64   ;;  %v109_v9 = vld [vmem:[%s207_s0 + $0x7] sm:$0x1]   ;;  %v110_v10 = vld [vmem:[%s207_s0 + $0x6] sm:$0x1]  }
   0x6   :  { %13 = vrot.lane.b32.xlu0 %v102_v2, %s133_s16  ;;  %25 = vrot.lane.b32.xlu1 %v104_v3, %s134_s17  ;;  %s139_s7 = smov 56   ;;  %s140_s8 = smov 48   ;;  %v111_v11 = vld [vmem:[%s207_s0 + $0x5] sm:$0x1]   ;;  %v112_v12 = vld [vmem:[%s207_s0 + $0x4] sm:$0x1]  }
   0x7   :  { %s141_s13 = smov 40   ;;  %s142_s14 = smov 32   ;;  %v113_v13 = vld [vmem:[%s207_s0 + $0x3] sm:$0x1]   ;;  %v114_v14 = vld [vmem:[%s207_s0 + $0x2] sm:$0x1]  }
   0x8   :  { %s143_s19 = smov 24   ;;  %s144_s20 = smov 16   ;;  %v115_v15 = vld [vmem:[%s207_s0 + $0x1] sm:$0x1]   ;;  %vm27_vm4 = vcmask 851712   ;;  %vm33_vm5 = vcmask 786112  }
   0x9   :  { %s145_s0 = smov 8   ;;  %vm39_vm6 = vcmask 720512   ;;  %vm45_vm7 = vcmask 654912   ;;  %vm51_vm8 = vcmask 589312   ;;  %vm57_vm9 = vcmask 523712  }
   0xa   :  { %31 = vrot.lane.b32.xlu0 %v105_v4, %s135_s24  ;;  %37 = vrot.lane.b32.xlu1 %v106_v5, %s136_s25  ;;  %vm63_vm10 = vcmask 458112   ;;  %vm69_vm11 = vcmask 392512   ;;  %vm75_vm12 = vcmask 326912   ;;  %vm81_vm13 = vcmask 261312  }
   0xb   :  { %vm87_vm14 = vcmask 195712   ;;  %vm93_vm15 = vcmask 130112  }
   0xe   :  { %43 = vrot.lane.b32.xlu0 %v107_v7, %s137_s30  ;;  %49 = vrot.lane.b32.xlu1 %v108_v8, %s138_s2 }
  0x12   :  { %55 = vrot.lane.b32.xlu0 %v109_v9, %s139_s7  ;;  %61 = vrot.lane.b32.xlu1 %v110_v10, %s140_s8 }
  0x16   :  { %67 = vrot.lane.b32.xlu0 %v111_v11, %s141_s13  ;;  %73 = vrot.lane.b32.xlu1 %v112_v12, %s142_s14 }
  0x1a   :  { %79 = vrot.lane.b32.xlu0 %v113_v13, %s143_s19  ;;  %85 = vrot.lane.b32.xlu1 %v114_v14, %s144_s20 }
  0x1e   :  { %91 = vrot.lane.b32.xlu0 %v115_v15, %s145_s0 }
  0x74   :  { %v8_v16 = vpop.permute.xlu0 %7   ;;  %v20_v17 = vpop.permute.xlu1 %19  }
  0x75   :  { %10 = vst.msk [vmem:[#allocation0] sm:$0x1] %vm9_vm1, %v8_v16  }
  0x78   :  { %v14_v18 = vpop.permute.xlu0 %13   ;;  %v26_v19 = vpop.permute.xlu1 %25  }
  0x79   :  { %16 = vst.msk [vmem:[#allocation0] sm:$0x1] %vm15_vm2, %v14_v18  }
  0x7a   :  { %22 = vst.msk [vmem:[#allocation0] sm:$0x1] %vm21_vm3, %v20_v17  }
  0x7b   :  { %28 = vst.msk [vmem:[#allocation0] sm:$0x1] %vm27_vm4, %v26_v19  }
  0x7c   :  { %v32_v20 = vpop.permute.xlu0 %31   ;;  %v38_v21 = vpop.permute.xlu1 %37  }
  0x7d   :  { %34 = vst.msk [vmem:[#allocation0] sm:$0x1] %vm33_vm5, %v32_v20  }
  0x7e   :  { %40 = vst.msk [vmem:[#allocation0] sm:$0x1] %vm39_vm6, %v38_v21  }
  0x80   :  { %v44_v22 = vpop.permute.xlu0 %43   ;;  %v50_v23 = vpop.permute.xlu1 %49  }
  0x81   :  { %46 = vst.msk [vmem:[#allocation0] sm:$0x1] %vm45_vm7, %v44_v22  }
  0x82   :  { %52 = vst.msk [vmem:[#allocation0] sm:$0x1] %vm51_vm8, %v50_v23  }
  0x84   :  { %v56_v24 = vpop.permute.xlu0 %55   ;;  %v62_v25 = vpop.permute.xlu1 %61  }
  0x85   :  { %58 = vst.msk [vmem:[#allocation0] sm:$0x1] %vm57_vm9, %v56_v24  }
  0x86   :  { %64 = vst.msk [vmem:[#allocation0] sm:$0x1] %vm63_vm10, %v62_v25  }
  0x88   :  { %v68_v26 = vpop.permute.xlu0 %67   ;;  %v74_v27 = vpop.permute.xlu1 %73  }
  0x89   :  { %70 = vst.msk [vmem:[#allocation0] sm:$0x1] %vm69_vm11, %v68_v26  }
  0x8a   :  { %76 = vst.msk [vmem:[#allocation0] sm:$0x1] %vm75_vm12, %v74_v27  }
  0x8c   :  { %v80_v28 = vpop.permute.xlu0 %79   ;;  %v86_v29 = vpop.permute.xlu1 %85  }
  0x8d   :  { %82 = vst.msk [vmem:[#allocation0] sm:$0x1] %vm81_vm13, %v80_v28  }
  0x8e   :  { %88 = vst.msk [vmem:[#allocation0] sm:$0x1] %vm87_vm14, %v86_v29  }
  0x90   :  { %v92_v30 = vpop.permute.xlu0 %91  }
  0x91   :  { %94 = vst.msk [vmem:[#allocation0] sm:$0x1] %vm93_vm15, %v92_v30  }
  0x98   :  { %v98_v31 = vld [vmem:[#allocation0] sm:$0x1] }
  0x99   :  { %100 = vst [vmem:[%s208_s1] sm:$0x1] %v98_v31 }

// kernel: rcab3d_forward.3
= control target key start
LH: loop header
LB: loop body
LE: loop exit
PB: predicated region body
PF: predicated region fallthrough
CT: control target
= control target key end

     0   :  { %s3904_s15 = smov 0   ;;  %s3906_s16 = smov 0   ;;  %s4571_s0 = inlined_call_operand.vmem [shape: bf16[2,128,128], index: 0, kind: input, shape index: {}, may-alias: {0,1}]   ;;  %s4572_s1 = inlined_call_operand.vmem [shape: bf16[2,128,128], index: 1, kind: input, shape index: {}, may-alias: {0,1}]   ;;  %s4573_s2 = inlined_call_operand.vmem [shape: bf16[9,128,128], index: 2, kind: input, shape index: {}]   ;;  %s4574_s3 = inlined_call_operand.vmem [shape: f32[1,128], index: 3, kind: input, shape index: {}]   ;;  %s4575_s4 = inlined_call_operand.vmem [shape: bf16[2,128,128], index: 4, kind: output, shape index: {}]  }
   0x1   :  { %s3908_s17 = smov 0  }
   0x2 LB: > { %s26_s1 = sadd.s32 1, %s3872_s16  ;;  %p2899_p0 = scmp.ge.s32.totalorder %s3876_s17, 1  ;;  %s3876_s17 = sphi %s3908_s17, %s14_s17   ;;  %s3872_s16 = sphi %s3906_s16, %s4589_s16   ;;  %s3868_s15 = sphi %s3904_s15, %s4588_s15  }
   0x3   : > { %p28_p1 = scmp.ge.s32.totalorder %s26_s1, 2  ;;  %p159_p2 = scmp.lt.s32.totalorder %s3876_s17, 3 }
   0x5   : > { %s4591_s1 = smov (%p28_p1, %s26_s1), 0  ;;  %p160_p3 = pnand %p2899_p0, %p159_p2 }
   0x6   : > { %v3773_v0 = vld [vmem:[%s4573_s2 + $0xc0] sm:$0xff] (!%p160_p3)   ;;  %v3775_v2 = vld [vmem:[%s4573_s2 + $0xc8] sm:$0xff] (!%p160_p3)   ;;  %p192_p4 = scmp.lt.s32.totalorder (!%p160_p3), %s3868_s15, 1  ;;  %v3878_v3 = vmov (!%p160_p3), 0   ;;  %v3777_v5 = vld [vmem:[%s4573_s2 + $0xd0] sm:$0xff] (!%p160_p3)  }
   0x7   : > { %163 = sbr.rel (%p160_p3) target bundleno = 406 (0x196), region = 32  ;;  %v3774_v1 = vld [vmem:[%s4573_s2] sm:$0xff] (!%p160_p3)   ;;  %3348 = vmatprep.subr.bf16.mxu1 (!%p160_p3), %v3773_v0  ;;  %401 = vst [vmem:[#allocation2 + $0x8] sm:$0xff] (!%p160_p3), %v3878_v3  ;;  %395 = vst [vmem:[#allocation2] sm:$0xff] (!%p160_p3), %v3878_v3  ;;  %v3776_v4 = vld [vmem:[%s4573_s2 + $0x8] sm:$0xff] (!%p160_p3)   ;;  %v3951_v8 = vrot.slane (!%p160_p3), %v3878_v3, 1 }
   0x8   : > { %396 = vst [vmem:[#allocation2 + $0x58] sm:$0xff] (!%p160_p3), %v3878_v3  ;;  %402 = vst [vmem:[#allocation2 + $0x50] sm:$0xff] (!%p160_p3), %v3878_v3  ;;  %3380 = vmatprep.subr.bf16.mxu0 (!%p160_p3), %v3774_v1  ;;  %3349 = vmatpush3.bf16.msra.mxu1 (!%p160_p3), %v3773_v0  ;;  %v3778_v6 = vld [vmem:[%s4573_s2 + $0x10] sm:$0xff] (!%p160_p3)   ;;  %v3779_v7 = vld [vmem:[%s4573_s2 + $0xd8] sm:$0xff] (!%p160_p3)   ;;  %v3971_v12 = vrot.slane (!%p160_p3), %v3878_v3, 7 }
   0x9   : > { %3381 = vmatpush3.bf16.msra.mxu0 (!%p160_p3), %v3774_v1  ;;  %3350 = vmatprep.subr.bf16.mxu1 (!%p160_p3), %v3775_v2  ;;  %v3780_v9 = vld [vmem:[%s4573_s2 + $0x18] sm:$0xff] (!%p160_p3)   ;;  %v3781_v10 = vld [vmem:[%s4573_s2 + $0xe0] sm:$0xff] (!%p160_p3)   ;;  %v3783_v13 = vld [vmem:[%s4573_s2 + $0xe8] sm:$0xff] (!%p160_p3)   ;;  %vm704_vm0 = vsmask.f32 (!%p160_p3), 256 }
   0xa   : > { %3382 = vmatprep.subr.bf16.mxu0 (!%p160_p3), %v3776_v4  ;;  %v3782_v11 = vld [vmem:[%s4573_s2 + $0x20] sm:$0xff] (!%p160_p3)   ;;  %v3784_v14 = vld [vmem:[%s4573_s2 + $0x28] sm:$0xff] (!%p160_p3)   ;;  %v3785_v23 = vld [vmem:[%s4573_s2 + $0xf0] sm:$0xff] (!%p160_p3)   ;;  %vm1953_vm1 = vsmask.f32 (!%p160_p3), 7424 }
   0xb   : > { %v3786_v27 = vld [vmem:[%s4573_s2 + $0x30] sm:$0xff] (!%p160_p3)   ;;  %v3787_v29 = vld [vmem:[%s4573_s2 + $0xf8] sm:$0xff] (!%p160_p3)   ;;  %v3792_v44 = vld [vmem:[%s4573_s2 + $0x100] sm:$0xff] (!%p160_p3)  }
   0xc   : > { %3351 = vmatpush3.bf16.msra.mxu1 (!%p160_p3), %v3775_v2  ;;  %v3788_v35 = vld [vmem:[%s4573_s2 + $0x38] sm:$0xff] (!%p160_p3)   ;;  %v3791_v47 = vld [vmem:[%s4573_s2 + $0x180] sm:$0xff] (!%p160_p3)   ;;  %v3794_v49 = vld [vmem:[%s4573_s2 + $0x108] sm:$0xff] (!%p160_p3)  }
   0xd   : > { %3383 = vmatpush3.bf16.msra.mxu0 (!%p160_p3), %v3776_v4  ;;  %3352 = vmatprep.subr.bf16.mxu1 (!%p160_p3), %v3777_v5  ;;  %v3793_v57 = vld [vmem:[%s4573_s2 + $0x188] sm:$0xff] (!%p160_p3)   ;;  %v3797_v62 = vld [vmem:[%s4573_s2 + $0x190] sm:$0xff] (!%p160_p3)  }
   0xe   : > { %s4593_s15 = smov (!%p192_p4, %s3868_s15), 1  ;;  %3384 = vmatprep.subr.bf16.mxu0 %v3778_v6  ;;  %v685_v16 = vld [vmem:[#allocation2 + $0x8] sm:$0x80]  ;;  %v660_v17 = vld [vmem:[#allocation2] sm:$0x80]  ;;  %v3798_v1 = vld [vmem:[%s4573_s2 + $0x110] sm:$0xff]  }
   0xf   : > { %s3137_s8 = sshll.u32 %s4593_s15, 6  ;;  %v706_v18 = vshrl.u32 %v685_v16, 16  ;;  %v927_v21 = vshrl.u32 %v660_v17, 16 }
  0x10   : > { %3353 = vmatpush3.bf16.msra.mxu1 %v3777_v5  ;;  %s3968_s18 = scalar_lea.vmem %s4571_s0, %s3137_s8  ;;  %s4528_s12 = scalar_lea.vmem %s4575_s4, %s3137_s8 }
  0x11   : > { %3385 = vmatpush3.bf16.msra.mxu0 %v3778_v6  ;;  %3354 = vmatprep.subr.bf16.mxu1 %v3779_v7  ;;  %v3980_v15 = vld [vmem:[%s3968_s18] sm:$0xff]   ;;  %v3986_v22 = vld [vmem:[%s3968_s18 + $0x8] sm:$0xff]   ;;  %v708_v24 = vrot.slane %v706_v18, 7  ;;  %v929_v26 = vrot.slane %v927_v21, 7  ;;  %v4012_v38 = vld [vmem:[%s3968_s18 + $0x10] sm:$0xff]  }
  0x12   : > { %3386 = vmatprep.subr.bf16.mxu0 %v3780_v9  ;;  %387 = vst [vmem:[#allocation2 + $0x10] sm:$0xff] %v3980_v15  ;;  %v710_v19 = vshrl.u32 %v3980_v15, 16  ;;  %v713_v20 = vshll.u32 %v3980_v15, 16  ;;  %388 = vst [vmem:[#allocation2 + $0x18] sm:$0xff] %v3986_v22  ;;  %v718_v28 = vshrl.u32 %v3986_v22, 16  ;;  %v721_v34 = vshll.u32 %v3986_v22, 16 }
  0x13   : > { %v937_v31 = vsel %vm704_vm0, %v929_v26, %v3971_v12  ;;  %v4015_v39 = vld [vmem:[%s3968_s18 + $0x18] sm:$0xff]   ;;  %v726_v42 = vshrl.u32 %v4012_v38, 16  ;;  %v729_v43 = vshll.u32 %v4012_v38, 16  ;;  %v4047_v54 = vld [vmem:[%s3968_s18 + $0x20] sm:$0xff]   ;;  %v4052_v56 = vld [vmem:[%s3968_s18 + $0x28] sm:$0xff]  }
  0x14   : > { %3355 = vmatpush3.bf16.msra.mxu1 %v3779_v7  ;;  %v712_v25 = vrot.slane %v710_v19, 7  ;;  %v4001_v32 = vrot.slane %v713_v20, 1  ;;  %3396 = vmatprep.mubr.bf16.mxu0 %v937_v31  ;;  %v720_v33 = vrot.slane %v718_v28, 7  ;;  %v4017_v40 = vrot.slane %v721_v34, 1  ;;  %390 = vst [vmem:[#allocation2 + $0x28] sm:$0xff] %v4015_v39  ;;  %v4075_v2 = vld [vmem:[%s3968_s18 + $0x30] sm:$0xff]  }
  0x15   : > { %3387 = vmatpush3.bf16.msra.mxu0 %v3780_v9  ;;  %3356 = vmatprep.subr.bf16.mxu1 %v3781_v10  ;;  %v734_v45 = vshrl.u32 %v4015_v39, 16  ;;  %v728_v48 = vrot.slane %v726_v42, 7  ;;  %v737_v50 = vshll.u32 %v4015_v39, 16  ;;  %v742_v58 = vshrl.u32 %v4047_v54, 16  ;;  %v4079_v6 = vld [vmem:[%s3968_s18 + $0x38] sm:$0xff]   ;;  %v3804_v21 = vld [vmem:[%s4573_s2 + $0x120] sm:$0xff]  }
  0x16   : > { %3388 = vmatprep.subr.bf16.mxu0 %v3782_v11  ;;  %v715_v30 = vor.u32 %v713_v20, %v712_v25  ;;  %v4009_v37 = vor.u32 %v4001_v32, %v710_v19  ;;  %v4019_v41 = vor.u32 %v721_v34, %v720_v33  ;;  %v4029_v46 = vor.u32 %v4017_v40, %v718_v28 }
  0x17   : > { %v731_v52 = vor.u32 %v729_v43, %v728_v48  ;;  %v736_v53 = vrot.slane %v734_v45, 7  ;;  %v745_v60 = vshll.u32 %v4047_v54, 16  ;;  %v744_v63 = vrot.slane %v742_v58, 7  ;;  %394 = vst [vmem:[#allocation2 + $0x48] sm:$0xff] %v4079_v6 }
  0x18   : > { %3357 = vmatpush3.bf16.msra.mxu1 %v3781_v10  ;;  %v716_v36 = vsel %vm704_vm0, %v708_v24, %v715_v30  ;;  %v724_v51 = vsel %vm704_vm0, %v712_v25, %v4019_v41  ;;  %v938_v55 = vsel %vm704_vm0, %v3971_v12, %v715_v30  ;;  %v750_v0 = vshrl.u32 %v4052_v56, 16  ;;  %v3803_v24 = vld [vmem:[%s4573_s2 + $0x1a0] sm:$0xff]  }
  0x19   : > { %3389 = vmatpush3.bf16.msra.mxu0 %v3782_v11  ;;  %3358 = vmatprep.subr.bf16.mxu1 %v3783_v13  ;;  %v4059_v59 = vsel %vm704_vm0, %v720_v33, %v731_v52  ;;  %v739_v61 = vor.u32 %v737_v50, %v736_v53  ;;  %v747_v4 = vor.u32 %v745_v60, %v744_v63  ;;  %v753_v5 = vshll.u32 %v4052_v56, 16  ;;  %v3800_v11 = vld [vmem:[%s4573_s2 + $0x118] sm:$0xff]   ;;  %v1086_v26 = vld [vmem:[#allocation2 + $0x10] sm:$0x80] }
  0x1a   : > { %3390 = vmatprep.subr.bf16.mxu0 %v3784_v14  ;;  %3364 = vmatprep.mubr.bf16.mxu1 %v716_v36  ;;  %v752_v9 = vrot.slane %v750_v0, 7  ;;  %v758_v10 = vshrl.u32 %v4075_v2, 16  ;;  %v761_v16 = vshll.u32 %v4075_v2, 16  ;;  %v769_v28 = vshll.u32 %v4079_v6, 16 }
  0x1b   : > { %v4082_v7 = vsel %vm704_vm0, %v728_v48, %v739_v61  ;;  %v4098_v17 = vsel %vm704_vm0, %v736_v53, %v747_v4  ;;  %v4125_v30 = vrot.slane %v729_v43, 1  ;;  %v1113_v31 = vshrl.u32 %v1086_v26, 16  ;;  %v3810_v48 = vld [vmem:[%s4573_s2 + $0x130] sm:$0xff]  }
  0x1c   : > { %3359 = vmatpush3.bf16.msra.mxu1 %v3783_v13  ;;  %v766_v13 = vshrl.u32 %v4079_v6, 16  ;;  %v760_v18 = vrot.slane %v758_v10, 7  ;;  %v755_v20 = vor.u32 %v753_v5, %v752_v9  ;;  %v2156_v33 = vrot.slane %v737_v50, 1  ;;  %v3809_v50 = vld [vmem:[%s4573_s2 + $0x1b0] sm:$0xff]  }
  0x1d   : > { %3391 = vmatpush3.bf16.msra.mxu0 %v3784_v14  ;;  %3360 = vmatprep.subr.bf16.mxu1 %v3785_v23  ;;  %v3799_v14 = vld [vmem:[%s4573_s2 + $0x198] sm:$0xff]   ;;  %v4138_v36 = vrot.slane %v745_v60, 1  ;;  %v1115_v52 = vrot.slane %v1113_v31, 7 }
  0x1e   : > { %3392 = vmatprep.subr.bf16.mxu0 %v3786_v27  ;;  %v768_v19 = vrot.slane %v766_v13, 7  ;;  %v763_v25 = vor.u32 %v761_v16, %v760_v18  ;;  %v3811_v60 = vld [vmem:[%s4573_s2 + $0x1b8] sm:$0xff]  }
  0x1f   : > { %v1123_v61 = vsel %vm704_vm0, %v1115_v52, %v4019_v41  ;;  %v4183_v41 = vsel %vm1953_vm1, %v3951_v8, %v4001_v32  ;;  %v3842_v52 = vld [vmem:[%s4573_s2 + $0xb0] sm:$0xff]  }
  0x20   : > { %3361 = vmatpush3.bf16.msra.mxu1 %v3785_v23  ;;  %v4106_v23 = vsel %vm704_vm0, %v768_v19, %v3971_v12  ;;  %v3805_v12 = vld [vmem:[%s4573_s2 + $0x1a8] sm:$0xff]   ;;  %v4131_v34 = vsel %vm704_vm0, %v752_v9, %v763_v25  ;;  %v771_v43 = vor.u32 %v769_v28, %v768_v19  ;;  %v3825_v19 = vld [vmem:[%s4573_s2 + $0x70] sm:$0xff]  }
  0x21   : > { %3393 = vmatpush3.bf16.msra.mxu0 %v3786_v27  ;;  %3362 = vmatprep.subr.bf16.mxu1 %v3787_v29  ;;  %v4114_v27 = vsel %vm704_vm0, %v744_v63, %v755_v20  ;;  %v3814_v63 = vld [vmem:[%s4573_s2 + $0x140] sm:$0xff]   ;;  %v2328_v20 = vld [vmem:[#allocation2 + $0x28] sm:$0xff] }
  0x22   : > { %3394 = vmatprep.subr.bf16.mxu0 %v3788_v35  ;;  %v2372_v25 = vshrl.u32 %v2328_v20, 16 }
  0x24   : > { %3363 = vmatpush3.bf16.msra.mxu1 %v3787_v29  ;;  %v3806_v29 = vld [vmem:[%s4573_s2 + $0x128] sm:$0xff]  }
  0x25   : > { %3395 = vmatpush3.bf16.msra.mxu0 %v3788_v35  ;;  %3444 = vmatprep.subr.bf16.mxu1 %v3792_v44  ;;  %v4136_v35 = vor.u32 %v4125_v30, %v726_v42  ;;  %v2161_v42 = vor.u32 %v4138_v36, %v742_v58  ;;  %v3812_v58 = vld [vmem:[%s4573_s2 + $0x138] sm:$0xff]  }
  0x26   : > { %3412 = vmatprep.subr.bf16.mxu0 %v3791_v47 }
  0x27   : > { %3365 = vmatmul.mubr.bf16.vlgmr.msra.gmra.mrb[0].mxu1 %v724_v51  ;;  %v4197_v4 = vsel %vm1953_vm1, %v4136_v35, %v2156_v33 }
  0x28   : > { %3397 = vmatmul.mubr.bf16.vlgmr.msra.gmra.mrb[0].mxu0 %v938_v55  ;;  %3445 = vmatpush3.bf16.msra.mxu1 %v3792_v44  ;;  %v2158_v44 = vor.u32 %v2156_v33, %v734_v45  ;;  %v4159_v55 = vsel %vm704_vm0, %v760_v18, %v771_v43  ;;  %v3824_v18 = vld [vmem:[%s4573_s2 + $0x168] sm:$0xff]   ;;  %v3829_v33 = vld [vmem:[%s4573_s2 + $0x1c0] sm:$0xff]   ;;  %v3836_v43 = vld [vmem:[%s4573_s2 + $0x98] sm:$0xff]  }
  0x29   : > { %3413 = vmatpush3.bf16.msra.mxu0 %v3791_v47  ;;  %3446 = vmatprep.subr.bf16.mxu1 %v3794_v49  ;;  %v2162_v47 = vrot.slane %v753_v5, 1 }
  0x2a   : > { %3414 = vmatprep.subr.bf16.mxu0 %v3793_v57  ;;  %3368 = vmatprep.mubr.bf16.mxu1 %v4059_v59  ;;  %v4201_v5 = vsel %vm1953_vm1, %v2158_v44, %v4138_v36  ;;  %v3837_v44 = vld [vmem:[%s4573_s2 + $0x1e0] sm:$0xff]  }
  0x2b   : > { %3400 = vmatprep.mubr.bf16.mxu0 %v724_v51  ;;  %v2164_v45 = vor.u32 %v2162_v47, %v750_v0  ;;  %v2402_v51 = vrot.slane %v769_v28, 1  ;;  %v4188_v0 = vsel %vm1953_vm1, %v4009_v37, %v4017_v40  ;;  %v4204_v32 = vsel %vm1953_vm1, %v2161_v42, %v2162_v47  ;;  %v3815_v40 = vld [vmem:[%s4573_s2 + $0x48] sm:$0xff]   ;;  %v3838_v47 = vld [vmem:[%s4573_s2 + $0xa0] sm:$0xff]  }
  0x2c   : > { %3447 = vmatpush3.bf16.msra.mxu1 %v3794_v49  ;;  %v2165_v49 = vrot.slane %v761_v16, 1  ;;  %v3822_v16 = vld [vmem:[%s4573_s2 + $0x160] sm:$0xff]   ;;  %v3839_v42 = vld [vmem:[%s4573_s2 + $0x1e8] sm:$0xff]  }
  0x2d   : > { %3415 = vmatpush3.bf16.msra.mxu0 %v3793_v57  ;;  %3448 = vmatprep.subr.bf16.mxu1 %v3798_v1  ;;  %v4161_v57 = vor.u32 %v2402_v51, %v766_v13  ;;  %v3818_v13 = vld [vmem:[%s4573_s2 + $0x150] sm:$0xff]  }
  0x2e   : > { %3416 = vmatprep.subr.bf16.mxu0 %v3797_v62  ;;  %v4156_v53 = vor.u32 %v2165_v49, %v758_v10  ;;  %v4207_v37 = vsel %vm1953_vm1, %v2164_v45, %v2165_v49  ;;  %v3816_v10 = vld [vmem:[%s4573_s2 + $0x148] sm:$0xff]   ;;  %v3841_v45 = vld [vmem:[%s4573_s2 + $0x1f0] sm:$0xff]  }
  0x2f   : > { %3369 = vmatmul.mubr.bf16.gmra.mrb[4].mxu1 %v4082_v7  ;;  %v4219_v9 = vsel %vm1953_vm1, %v4161_v57, %v3951_v8 }
  0x30   : > { %3401 = vmatmul.mubr.bf16.gmra.mrb[4].mxu0 %v4059_v59  ;;  %3449 = vmatpush3.bf16.msra.mxu1 %v3798_v1  ;;  %v4193_v1 = vsel %vm1953_vm1, %v4029_v46, %v4125_v30  ;;  %v4214_v46 = vsel %vm1953_vm1, %v4156_v53, %v2402_v51 }
  0x31   : > { %3417 = vmatpush3.bf16.msra.mxu0 %v3797_v62  ;;  %3450 = vmatprep.subr.bf16.mxu1 %v3800_v11  ;;  %v3813_v62 = vld [vmem:[%s4573_s2 + $0x40] sm:$0xff]  }
  0x32   : > { %3418 = vmatprep.subr.bf16.mxu0 %v3799_v14  ;;  %3372 = vmatprep.mubr.bf16.mxu1 %v4098_v17 }
  0x33   : > { %3404 = vmatprep.mubr.bf16.mxu0 %v4082_v7 }
  0x34   : > { %3451 = vmatpush3.bf16.msra.mxu1 %v3800_v11  ;;  %v3817_v11 = vld [vmem:[%s4573_s2 + $0x50] sm:$0xff]  }
  0x35   : > { %3419 = vmatpush3.bf16.msra.mxu0 %v3799_v14  ;;  %3452 = vmatprep.subr.bf16.mxu1 %v3804_v21  ;;  %v3820_v14 = vld [vmem:[%s4573_s2 + $0x158] sm:$0xff]  }
  0x36   : > { %3420 = vmatprep.subr.bf16.mxu0 %v3803_v24 }
  0x37   : > { %3373 = vmatmul.mubr.bf16.gmra.mrb[8].mxu1 %v4114_v27 }
  0x38   : > { %3405 = vmatmul.mubr.bf16.gmra.mrb[8].mxu0 %v4098_v17  ;;  %3453 = vmatpush3.bf16.msra.mxu1 %v3804_v21  ;;  %v3826_v21 = vld [vmem:[%s4573_s2 + $0x170] sm:$0xff]  }
  0x39   : > { %3421 = vmatpush3.bf16.msra.mxu0 %v3803_v24  ;;  %3454 = vmatprep.subr.bf16.mxu1 %v3806_v29  ;;  %v2368_v24 = vshll.u32 %v2328_v20, 16 }
  0x3a   : > { %3422 = vmatprep.subr.bf16.mxu0 %v3805_v12  ;;  %3376 = vmatprep.mubr.bf16.mxu1 %v4131_v34 }
  0x3b   : > { %3408 = vmatprep.mubr.bf16.mxu0 %v4114_v27  ;;  %v2370_v26 = vrot.slane %v2368_v24, 1 }
  0x3c   : > { %3455 = vmatpush3.bf16.msra.mxu1 %v3806_v29 }
  0x3d   : > { %3423 = vmatpush3.bf16.msra.mxu0 %v3805_v12  ;;  %3456 = vmatprep.subr.bf16.mxu1 %v3810_v48  ;;  %v3828_v12 = vld [vmem:[%s4573_s2 + $0x178] sm:$0xff]   ;;  %v4274_v28 = vsel %vm1953_vm1, %v4136_v35, %v2370_v26  ;;  %v2374_v29 = vor.u32 %v2372_v25, %v2370_v26  ;;  %v3832_v35 = vld [vmem:[%s4573_s2 + $0x88] sm:$0xff]  }
  0x3e   : > { %3424 = vmatprep.subr.bf16.mxu0 %v3809_v50 }
  0x3f   : > { %3377 = vmatmul.mubr.bf16.gmra.mrb[12].mxu1 %v4159_v55  ;;  %v4280_v31 = vsel %vm1953_vm1, %v2374_v29, %v4138_v36  ;;  %v3834_v36 = vld [vmem:[%s4573_s2 + $0x90] sm:$0xff]  }
  0x40   : > { %3409 = vmatmul.mubr.bf16.gmra.mrb[12].mxu0 %v4131_v34  ;;  %3457 = vmatpush3.bf16.msra.mxu1 %v3810_v48  ;;  %v1935_v48 = vld [vmem:[#allocation2 + $0x50] sm:$0x1] }
  0x41   : > { %3425 = vmatpush3.bf16.msra.mxu0 %v3809_v50  ;;  %3458 = vmatprep.subr.bf16.mxu1 %v3812_v58  ;;  %v1983_v49 = vshll.u32 %v1935_v48, 16  ;;  %v3840_v50 = vld [vmem:[%s4573_s2 + $0xa8] sm:$0xff]  }
  0x42   : > { %3426 = vmatprep.subr.bf16.mxu0 %v3811_v60  ;;  %3428 = vmatprep.mubr.bf16.mxu0 %v1123_v61  ;;  %v3845_v61 = vld [vmem:[%s4573_s2 + $0x200] sm:$0xff]  }
  0x43   : > { %3460 = vmatprep.mubr.bf16.mxu1 %v3980_v15  ;;  %v1985_v51 = vrot.slane %v1983_v49, 1 }
  0x44   : > { %3459 = vmatpush3.bf16.msra.mxu1 %v3812_v58  ;;  %v3843_v58 = vld [vmem:[%s4573_s2 + $0x1f8] sm:$0xff]  }
  0x45   : > { %3427 = vmatpush3.bf16.msra.mxu0 %v3811_v60  ;;  %3476 = vmatprep.subr.bf16.mxu1 %v3813_v62  ;;  %v3844_v60 = vld [vmem:[%s4573_s2 + $0xb8] sm:$0xff]  }
  0x46   : > { %3540 = vmatprep.subr.bf16.mxu0 %v3814_v63 }
  0x47   : > { %3461 = vmatmul.mubr.bf16.vlgmr.msra.gmra.mrb[16].mxu1 %v3986_v22 }
  0x48   : > { %3429 = vmatmul.mubr.bf16.vlgmr.msra.gmra.mrb[0].mxu0 %v4059_v59  ;;  %3477 = vmatpush3.bf16.msra.mxu1 %v3813_v62  ;;  %v3819_v59 = vld [vmem:[%s4573_s2 + $0x58] sm:$0xff]  }
  0x49   : > { %3541 = vmatpush3.bf16.msra.mxu0 %v3814_v63  ;;  %3478 = vmatprep.subr.bf16.mxu1 %v3815_v40  ;;  %v2326_v62 = vld [vmem:[#allocation2 + $0x18] sm:$0xff]  ;;  %v1916_v63 = vld [vmem:[#allocation2 + $0x48] sm:$0x1] }
  0x4a   : > { %3542 = vmatprep.subr.bf16.mxu0 %v3816_v10  ;;  %3432 = vmatprep.mubr.bf16.mxu0 %v4082_v7  ;;  %v3821_v7 = vld [vmem:[%s4573_s2 + $0x60] sm:$0xff]  }
  0x4b   : > { %3464 = vmatprep.mubr.bf16.mxu1 %v4012_v38 }
  0x4c   : > { %3479 = vmatpush3.bf16.msra.mxu1 %v3815_v40 }
  0x4d   : > { %3543 = vmatpush3.bf16.msra.mxu0 %v3816_v10  ;;  %3480 = vmatprep.subr.bf16.mxu1 %v3817_v11  ;;  %v3852_v10 = vld [vmem:[%s4573_s2 + $0x238] sm:$0xff]  }
  0x4e   : > { %3544 = vmatprep.subr.bf16.mxu0 %v3818_v13 }
  0x4f   : > { %3465 = vmatmul.mubr.bf16.gmra.mrb[20].mxu1 %v4015_v39 }
  0x50   : > { %3433 = vmatmul.mubr.bf16.gmra.mrb[4].mxu0 %v4098_v17  ;;  %3481 = vmatpush3.bf16.msra.mxu1 %v3817_v11  ;;  %v3823_v17 = vld [vmem:[%s4573_s2 + $0x68] sm:$0xff]  }
  0x51   : > { %3545 = vmatpush3.bf16.msra.mxu0 %v3818_v13  ;;  %3482 = vmatprep.subr.bf16.mxu1 %v3819_v59  ;;  %v3853_v11 = vld [vmem:[#allocation2 + $0x8] sm:$0xff] }
  0x52   : > { %3546 = vmatprep.subr.bf16.mxu0 %v3820_v14  ;;  %3436 = vmatprep.mubr.bf16.mxu0 %v4114_v27  ;;  %v3827_v27 = vld [vmem:[%s4573_s2 + $0x78] sm:$0xff]  }
  0x53   : > { %3468 = vmatprep.mubr.bf16.mxu1 %v4047_v54 }
  0x54   : > { %3483 = vmatpush3.bf16.msra.mxu1 %v3819_v59 }
  0x55   : > { %3547 = vmatpush3.bf16.msra.mxu0 %v3820_v14  ;;  %3484 = vmatprep.subr.bf16.mxu1 %v3821_v7 }
  0x56   : > { %3548 = vmatprep.subr.bf16.mxu0 %v3822_v16 }
  0x57   : > { %3469 = vmatmul.mubr.bf16.gmra.mrb[24].mxu1 %v4052_v56 }
  0x58   : > { %3437 = vmatmul.mubr.bf16.gmra.mrb[8].mxu0 %v4131_v34  ;;  %3485 = vmatpush3.bf16.msra.mxu1 %v3821_v7  ;;  %v3830_v34 = vld [vmem:[%s4573_s2 + $0x80] sm:$0xff]  }
  0x59   : > { %3549 = vmatpush3.bf16.msra.mxu0 %v3822_v16  ;;  %3486 = vmatprep.subr.bf16.mxu1 %v3823_v17 }
  0x5a   : > { %3550 = vmatprep.subr.bf16.mxu0 %v3824_v18  ;;  %3440 = vmatprep.mubr.bf16.mxu0 %v4159_v55  ;;  %v1986_v55 = vsel %vm1953_vm1, %v4161_v57, %v1985_v51  ;;  %v3846_v57 = vld [vmem:[%s4573_s2 + $0x208] sm:$0xff]  }
  0x5b   : > { %3472 = vmatprep.mubr.bf16.mxu1 %v4075_v2 }
  0x5c   : > { %3487 = vmatpush3.bf16.msra.mxu1 %v3823_v17 }
  0x5d   : > { %3551 = vmatpush3.bf16.msra.mxu0 %v3824_v18  ;;  %3488 = vmatprep.subr.bf16.mxu1 %v3825_v19 }
  0x5e   : > { %3552 = vmatprep.subr.bf16.mxu0 %v3826_v21 }
  0x5f   : > { %3473 = vmatmul.mubr.bf16.gmra.mrb[28].mxu1 %v4079_v6 }
  0x60   : > { %3441 = vmatmul.mubr.bf16.gmra.mrb[12].mxu0 %v4106_v23  ;;  %3489 = vmatpush3.bf16.msra.mxu1 %v3825_v19  ;;  %v3831_v23 = vld [vmem:[%s4573_s2 + $0x1c8] sm:$0xff]  }
  0x61   : > { %3553 = vmatpush3.bf16.msra.mxu0 %v3826_v21  ;;  %3490 = vmatprep.subr.bf16.mxu1 %v3827_v27 }
  0x62   : > { %3554 = vmatprep.subr.bf16.mxu0 %v3828_v12  ;;  %3492 = vmatprep.mubr.bf16.mxu1 %v3878_v3  ;;  %v3833_v3 = vld [vmem:[%s4573_s2 + $0x1d0] sm:$0xff]  }
  0x63   : > { %3556 = vmatprep.mubr.bf16.mxu0 %v4188_v0 }
  0x64   : > { %3491 = vmatpush3.bf16.msra.mxu1 %v3827_v27 }
  0x65   : > { %3555 = vmatpush3.bf16.msra.mxu0 %v3828_v12  ;;  %3508 = vmatprep.subr.bf16.mxu1 %v3829_v33 }
  0x66   : > { %3572 = vmatprep.subr.bf16.mxu0 %v3830_v34 }
  0x67   : > { %3493 = vmatmul.mubr.bf16.vlgmr.msra.gmra.mrb[16].mxu1 %v3980_v15  ;;  %v3835_v15 = vld [vmem:[%s4573_s2 + $0x1d8] sm:$0xff]  }
  0x68   : > { %3557 = vmatmul.mubr.bf16.vlgmr.msra.gmra.mrb[16].mxu0 %v4193_v1  ;;  %3509 = vmatpush3.bf16.msra.mxu1 %v3829_v33 }
  0x69   : > { %3573 = vmatpush3.bf16.msra.mxu0 %v3830_v34  ;;  %3510 = vmatprep.subr.bf16.mxu1 %v3831_v23 }
  0x6a   : > { %3574 = vmatprep.subr.bf16.mxu0 %v3832_v35  ;;  %3496 = vmatprep.mubr.bf16.mxu1 %v3986_v22 }
  0x6b   : > { %3560 = vmatprep.mubr.bf16.mxu0 %v4197_v4 }
  0x6c   : > { %3511 = vmatpush3.bf16.msra.mxu1 %v3831_v23 }
  0x6d   : > { %3575 = vmatpush3.bf16.msra.mxu0 %v3832_v35  ;;  %3512 = vmatprep.subr.bf16.mxu1 %v3833_v3 }
  0x6e   : > { %3576 = vmatprep.subr.bf16.mxu0 %v3834_v36 }
  0x6f   : > { %3497 = vmatmul.mubr.bf16.gmra.mrb[20].mxu1 %v4012_v38 }
  0x70   : > { %3561 = vmatmul.mubr.bf16.gmra.mrb[20].mxu0 %v4201_v5  ;;  %3513 = vmatpush3.bf16.msra.mxu1 %v3833_v3 }
  0x71   : > { %3577 = vmatpush3.bf16.msra.mxu0 %v3834_v36  ;;  %3514 = vmatprep.subr.bf16.mxu1 %v3835_v15 }
  0x72   : > { %3578 = vmatprep.subr.bf16.mxu0 %v3836_v43  ;;  %3500 = vmatprep.mubr.bf16.mxu1 %v4015_v39 }
  0x73   : > { %3564 = vmatprep.mubr.bf16.mxu0 %v4204_v32 }
  0x74   : > { %3515 = vmatpush3.bf16.msra.mxu1 %v3835_v15 }
  0x75   : > { %3579 = vmatpush3.bf16.msra.mxu0 %v3836_v43  ;;  %3516 = vmatprep.subr.bf16.mxu1 %v3837_v44 }
  0x76   : > { %3580 = vmatprep.subr.bf16.mxu0 %v3838_v47 }
  0x77   : > { %3501 = vmatmul.mubr.bf16.gmra.mrb[24].mxu1 %v4047_v54 }
  0x78   : > { %3565 = vmatmul.mubr.bf16.gmra.mrb[24].mxu0 %v4207_v37  ;;  %3517 = vmatpush3.bf16.msra.mxu1 %v3837_v44 }
  0x79   : > { %3581 = vmatpush3.bf16.msra.mxu0 %v3838_v47  ;;  %3518 = vmatprep.subr.bf16.mxu1 %v3839_v42 }
  0x7a   : > { %3582 = vmatprep.subr.bf16.mxu0 %v3840_v50  ;;  %3504 = vmatprep.mubr.bf16.mxu1 %v4052_v56 }
  0x7b   : > { %3568 = vmatprep.mubr.bf16.mxu0 %v4214_v46 }
  0x7c   : > { %3519 = vmatpush3.bf16.msra.mxu1 %v3839_v42 }
  0x7d   : > { %3583 = vmatpush3.bf16.msra.mxu0 %v3840_v50  ;;  %3520 = vmatprep.subr.bf16.mxu1 %v3841_v45 }
  0x7e   : > { %3584 = vmatprep.subr.bf16.mxu0 %v3842_v52 }
  0x7f   : > { %3505 = vmatmul.mubr.bf16.gmra.mrb[28].mxu1 %v4075_v2 }
  0x80   : > { %3569 = vmatmul.mubr.bf16.gmra.mrb[28].mxu0 %v1986_v55  ;;  %3521 = vmatpush3.bf16.msra.mxu1 %v3841_v45 }
  0x81   : > { %3585 = vmatpush3.bf16.msra.mxu0 %v3842_v52  ;;  %3522 = vmatprep.subr.bf16.mxu1 %v3843_v58 }
  0x82   : > { %3586 = vmatprep.subr.bf16.mxu0 %v3844_v60  ;;  %3524 = vmatprep.mubr.bf16.mxu1 %v3986_v22  ;;  %v3847_v22 = vld [vmem:[%s4573_s2 + $0x210] sm:$0xff]  }
  0x83   : > { %3588 = vmatprep.mubr.bf16.mxu0 %v4183_v41  ;;  %v2355_v41 = vshll.u32 %v2326_v62, 16 }
  0x84   : > { %3523 = vmatpush3.bf16.msra.mxu1 %v3843_v58 }
  0x85   : > { %3587 = vmatpush3.bf16.msra.mxu0 %v3844_v60  ;;  %3636 = vmatprep.subr.bf16.mxu1 %v3845_v61 }
  0x86   : > { %3604 = vmatprep.subr.bf16.mxu0 %v3845_v61 }
  0x87   : > { %3525 = vmatmul.mubr.bf16.vlgmr.msra.gmra.mrb[16].mxu1 %v4012_v38  ;;  %v3848_v38 = vld [vmem:[%s4573_s2 + $0x218] sm:$0xff]  }
  0x88   : > { %3589 = vmatmul.mubr.bf16.vlgmr.msra.gmra.mrb[16].mxu0 %v4188_v0  ;;  %3644 = vmatpush3.bf16.msra.mxu1 %v3845_v61  ;;  %v2169_v0 = vshll.u32 %v1916_v63, 16 }
  0x89   : > { %3605 = vmatpush3.bf16.msra.mxu0 %v3845_v61  ;;  %3637 = vmatprep.subr.bf16.mxu1 %v3846_v57 }
  0x8a   : > { %3606 = vmatprep.subr.bf16.mxu0 %v3846_v57  ;;  %3528 = vmatprep.mubr.bf16.mxu1 %v4015_v39  ;;  %v3849_v39 = vld [vmem:[%s4573_s2 + $0x220] sm:$0xff]  }
  0x8b   : > { %3592 = vmatprep.mubr.bf16.mxu0 %v4193_v1  ;;  %v2353_v1 = vshrl.u32 %v2326_v62, 16 }
  0x8c   : > { %3645 = vmatpush3.bf16.msra.mxu1 %v3846_v57 }
  0x8d   : > { %3607 = vmatpush3.bf16.msra.mxu0 %v3846_v57  ;;  %3638 = vmatprep.subr.bf16.mxu1 %v3847_v22 }
  0x8e   : > { %3608 = vmatprep.subr.bf16.mxu0 %v3847_v22 }
  0x8f   : > { %3529 = vmatmul.mubr.bf16.gmra.mrb[20].mxu1 %v4047_v54  ;;  %v3850_v54 = vld [vmem:[%s4573_s2 + $0x228] sm:$0xff]  }
  0x90   : > { %3593 = vmatmul.mubr.bf16.gmra.mrb[20].mxu0 %v4197_v4  ;;  %3646 = vmatpush3.bf16.msra.mxu1 %v3847_v22  ;;  %v2357_v4 = vrot.slane %v2355_v41, 1 }
  0x91   : > { %3609 = vmatpush3.bf16.msra.mxu0 %v3847_v22  ;;  %3639 = vmatprep.subr.bf16.mxu1 %v3848_v38 }
  0x92   : > { %3610 = vmatprep.subr.bf16.mxu0 %v3848_v38  ;;  %3532 = vmatprep.mubr.bf16.mxu1 %v4052_v56  ;;  %v2171_v56 = vrot.slane %v2169_v0, 1  ;;  %v2358_v40 = vor.u32 %v2357_v4, %v2353_v1  ;;  %v419_v0 = vlaneseq }
  0x93   : > { %3596 = vmatprep.mubr.bf16.mxu0 %v4201_v5  ;;  %v3851_v5 = vld [vmem:[%s4573_s2 + $0x230] sm:$0xff]  }
  0x94   : > { %3647 = vmatpush3.bf16.msra.mxu1 %v3848_v38  ;;  %v2363_v13 = vsel %vm1953_vm1, %v2358_v40, %v4125_v30  ;;  %v4409_v1 = vshrl.u32 %v419_v0, 7 }
  0x95   : > { %3611 = vmatpush3.bf16.msra.mxu0 %v3848_v38  ;;  %3640 = vmatprep.subr.bf16.mxu1 %v3849_v39 }
  0x96   : > { %3612 = vmatprep.subr.bf16.mxu0 %v3849_v39  ;;  %v422_v4 = vadd.s32 16, %v4409_v1  ;;  %v426_v40 = vadd.s32 48, %v4409_v1 }
  0x97   : > { %3533 = vmatmul.mubr.bf16.gmra.mrb[24].mxu1 %v4075_v2  ;;  %v2172_v2 = vsel %vm1953_vm1, %v4156_v53, %v2171_v56  ;;  %v2412_v53 = vshrl.u32 %v3853_v11, 16 }
  0x98   : > { %3597 = vmatmul.mubr.bf16.gmra.mrb[24].mxu0 %v4204_v32  ;;  %3648 = vmatpush3.bf16.msra.mxu1 %v3849_v39  ;;  %v454_v56 = vand.u32 15, %v422_v4 }
  0x99   : > { %3613 = vmatpush3.bf16.msra.mxu0 %v3849_v39  ;;  %3641 = vmatprep.subr.bf16.mxu1 %v3850_v54  ;;  %v2414_v30 = vor.u32 %v2412_v53, %v3951_v8 }
  0x9a   : > { %3614 = vmatprep.subr.bf16.mxu0 %v3850_v54  ;;  %3536 = vmatprep.mubr.bf16.mxu1 %v4079_v6  ;;  %v2334_v6 = vld [vmem:[#allocation2 + $0x58] sm:$0x1]  ;;  %vm630_vm2 = vcmp.ge.s32.totalorder %v454_v56, 1 }
  0x9b   : > { %3600 = vmatprep.mubr.bf16.mxu0 %v4207_v37  ;;  %v2416_v59 = vshll.u32 %v2334_v6, 16 }
  0x9c   : > { %3649 = vmatpush3.bf16.msra.mxu1 %v3850_v54 }
  0x9d   : > { %3615 = vmatpush3.bf16.msra.mxu0 %v3850_v54  ;;  %3642 = vmatprep.subr.bf16.mxu1 %v3851_v5  ;;  %v2418_v14 = vrot.slane %v2416_v59, 1  ;;  %v482_v59 = vand.u32 15, %v426_v40 }
  0x9e   : > { %3616 = vmatprep.subr.bf16.mxu0 %v3851_v5 }
  0x9f   : > { %3537 = vmatmul.mubr.bf16.gmra.mrb[28].mxu1 %v3853_v11  ;;  %v2419_v7 = vsel %vm1953_vm1, %v2414_v30, %v2418_v14  ;;  %vm634_vm4 = vcmp.ge.s32.totalorder %v482_v59, 1 }
  0xa0   : > { %3601 = vmatmul.mubr.bf16.gmra.mrb[28].mxu0 %v2172_v2  ;;  %3650 = vmatpush3.bf16.msra.mxu1 %v3851_v5  ;;  %v424_v2 = vadd.s32 32, %v4409_v1 }
  0xa1   : > { %3617 = vmatpush3.bf16.msra.mxu0 %v3851_v5  ;;  %3643 = vmatprep.subr.bf16.mxu1 %v3852_v10  ;;  %v440_v5 = vand.u32 15, %v4409_v1 }
  0xa2   : > { %3618 = vmatprep.subr.bf16.mxu0 %v3852_v10  ;;  %3620 = vmatprep.mubr.bf16.mxu0 %v2363_v13 }
  0xa3   : > { %3628 = vmatprep.mubr.bf16.mxu1 %v4207_v37  ;;  %vm628_vm3 = vcmp.ge.s32.totalorder %v440_v5, 1  ;;  %v427_v5 = vadd.s32 56, %v4409_v1 }
  0xa4   : > { %3651 = vmatpush3.bf16.msra.mxu1 %v3852_v10 }
  0xa5   : > { %3619 = vmatpush3.bf16.msra.mxu0 %v3852_v10 }
  0xa7   : > { %3629 = vmatmul.mubr.bf16.vlgmr.msra.gmra.mrb[32].mxu1 %v4214_v46 }
  0xa8   : > { %3621 = vmatmul.mubr.bf16.vlgmr.msra.gmra.mrb[16].mxu0 %v4274_v28  ;;  %3632 = vmatprep.mubr.bf16.mxu1 %v4219_v9 }
  0xa9   : > { %3624 = vmatprep.mubr.bf16.mxu0 %v4280_v31 }
  0xaf   : > { %3633 = vmatmul.mubr.bf16.gmra.mrb[36].mxu1 %v2419_v7  ;;  %v468_v7 = vand.u32 15, %v424_v2 }
  0xb0   : > { %3625 = vmatmul.mubr.bf16.gmra.mrb[20].mxu0 %v4204_v32 }
  0xb1   : > { %vm632_vm5 = vcmp.ge.s32.totalorder %v468_v7, 1  ;;  %v489_v7 = vand.u32 15, %v427_v5 }
  0xb3   : > { %vm4492_vm14 = vcmp.le.s32.totalorder %v489_v7, 14 }
  0xfa   : > { %v3366_v37 = vpop.f32.mrb[0].mxu1 }
  0xfb   : > { %v863_v16 = vpop.f32.mrb[1].mxu1 }
  0xfc   : > { %v3367_v17 = vpop.f32.mrb[2].mxu1 }
  0xfd   : > { %v866_v18 = vpop.f32.mrb[3].mxu1 }
 0x102   : > { %v3370_v19 = vpop.f32.mrb[4].mxu1 }
 0x103   : > { %v879_v46 = vpop.f32.mrb[5].mxu1 }
 0x104   : > { %v3371_v20 = vpop.f32.mrb[6].mxu1 }
 0x105   : > { %v882_v21 = vpop.f32.mrb[7].mxu1 }
 0x10a   : > { %v3374_v24 = vpop.f32.mrb[8].mxu1 }
 0x10b   : > { %v895_v9 = vpop.f32.mrb[9].mxu1 }
 0x10c   : > { %v3375_v25 = vpop.f32.mrb[10].mxu1 }
 0x10d   : > { %v898_v8 = vpop.f32.mrb[11].mxu1 }
 0x112   : > { %v3378_v26 = vpop.f32.mrb[12].mxu1 }
 0x113   : > { %v911_v27 = vpop.f32.mrb[13].mxu1 }
 0x114   : > { %v3379_v12 = vpop.f32.mrb[14].mxu1 }
 0x115   : > { %v914_v28 = vpop.f32.mrb[15].mxu1 }
 0x11b   : > { %v3430_v29 = vpop.f32.mrb[0].mxu0 }
 0x11c   : > { %v3652_v31 = vadd.f32 %v3430_v29, %v3366_v37  ;;  %v1270_v33 = vpop.f32.mrb[1].mxu0 }
 0x11d   : > { %v3653_v32 = vadd.f32 %v1270_v33, %v863_v16  ;;  %v3431_v34 = vpop.f32.mrb[2].mxu0  ;;  %v432_v33 = vadd.s32 96, %v4409_v1 }
 0x11e   : > { %v3654_v23 = vadd.f32 %v3431_v34, %v3367_v17  ;;  %v1273_v35 = vpop.f32.mrb[3].mxu0  ;;  %v1383_v10 = vsel %vm630_vm2, %v3652_v31, 0.0  ;;  %v434_v31 = vadd.s32 112, %v4409_v1 }
 0x11f   : > { %v3655_v3 = vadd.f32 %v1273_v35, %v866_v18  ;;  %v1381_v6 = vsel %vm628_vm3, %v3653_v32, 0.0  ;;  %v430_v18 = vadd.s32 80, %v4409_v1 }
 0x123   : > { %v3434_v36 = vpop.f32.mrb[4].mxu0 }
 0x124   : > { %v3656_v15 = vadd.f32 %v3434_v36, %v3370_v19  ;;  %v1286_v43 = vpop.f32.mrb[5].mxu0  ;;  %v428_v19 = vadd.s32 64, %v4409_v1 }
 0x125   : > { %v3657_v44 = vadd.f32 %v1286_v43, %v879_v46  ;;  %v3435_v47 = vpop.f32.mrb[6].mxu0 }
 0x126   : > { %v3658_v48 = vadd.f32 %v3435_v47, %v3371_v20  ;;  %v1289_v42 = vpop.f32.mrb[7].mxu0  ;;  %v1387_v46 = vsel %vm634_vm4, %v3656_v15, 0.0  ;;  %v538_v15 = vand.u32 15, %v434_v31 }
 0x127   : > { %v3659_v49 = vadd.f32 %v1289_v42, %v882_v21 }
 0x128   : > { %vm642_vm8 = vcmp.ge.s32.totalorder %v538_v15, 1 }
 0x12b   : > { %v3438_v50 = vpop.f32.mrb[8].mxu0 }
 0x12c   : > { %v3660_v45 = vadd.f32 %v3438_v50, %v3374_v24  ;;  %v1302_v51 = vpop.f32.mrb[9].mxu0  ;;  %v1385_v24 = vsel %vm632_vm5, %v3657_v44, 0.0 }
 0x12d   : > { %v3661_v52 = vadd.f32 %v1302_v51, %v895_v9  ;;  %v3439_v55 = vpop.f32.mrb[10].mxu0 }
 0x12e   : > { %v4397_v58 = vadd.f32 %v3439_v55, %v3375_v25  ;;  %v1305_v60 = vpop.f32.mrb[11].mxu0  ;;  %v510_v25 = vand.u32 15, %v430_v18 }
 0x12f   : > { %v4399_v61 = vadd.f32 %v1305_v60, %v898_v8  ;;  %v423_v60 = vadd.s32 24, %v4409_v1 }
 0x130   : > { %vm638_vm6 = vcmp.ge.s32.totalorder %v510_v25, 1  ;;  %v4485_v25 = vadd.s32 120, %v4409_v1 }
 0x131   : > { %v1391_v32 = vsel %vm638_vm6, %v3660_v45, 0.0 }
 0x133   : > { %v3442_v57 = vpop.f32.mrb[12].mxu0 }
 0x134   : > { %v4401_v22 = vadd.f32 %v3442_v57, %v3378_v26  ;;  %v1318_v38 = vpop.f32.mrb[13].mxu0 }
 0x135   : > { %v4403_v62 = vadd.f32 %v1318_v38, %v911_v27  ;;  %v3443_v39 = vpop.f32.mrb[14].mxu0  ;;  %v496_v27 = vand.u32 15, %v428_v19 }
 0x136   : > { %v4405_v63 = vadd.f32 %v3443_v39, %v3379_v12  ;;  %v1321_v41 = vpop.f32.mrb[15].mxu0  ;;  %v1395_v45 = vsel %vm642_vm8, %v4401_v22, 0.0  ;;  %v429_v22 = vadd.s32 72, %v4409_v1 }
 0x137   : > { %v4407_v54 = vadd.f32 %v1321_v41, %v914_v28  ;;  %vm636_vm7 = vcmp.ge.s32.totalorder %v496_v27, 1  ;;  %v431_v41 = vadd.s32 88, %v4409_v1 }
 0x15a   : > { %v3526_v11 = vpop.f32.mrb[16].mxu1 }
 0x15b   : > { %v4415_v13 = vadd.f32 %v3526_v11, %v1383_v10  ;;  %v1820_v53 = vpop.f32.mrb[17].mxu1 }
 0x15c   : > { %v4417_v30 = vadd.f32 %v1820_v53, %v1381_v6  ;;  %v3527_v14 = vpop.f32.mrb[18].mxu1  ;;  %v461_v6 = vand.u32 15, %v423_v60  ;;  %v517_v53 = vand.u32 15, %v431_v41 }
 0x15d   : > { %v4419_v37 = vadd.f32 %v3654_v23, %v3527_v14  ;;  %v1823_v16 = vpop.f32.mrb[19].mxu1  ;;  %v503_v14 = vand.u32 15, %v429_v22 }
 0x15e   : > { %v4421_v17 = vadd.f32 %v3655_v3, %v1823_v16  ;;  %v1389_v3 = vsel %vm636_vm7, %v3661_v52, 0.0  ;;  %v425_v16 = vadd.s32 40, %v4409_v1  ;;  %vm4472_vm10 = vcmp.le.s32.totalorder %v461_v6, 14 }
 0x15f   : > { %vm4476_vm11 = vcmp.le.s32.totalorder %v517_v53, 14  ;;  %vm4488_vm13 = vcmp.le.s32.totalorder %v503_v14, 14 }
 0x162   : > { %v3530_v20 = vpop.f32.mrb[20].mxu1 }
 0x163   : > { %v4425_v21 = vadd.f32 %v3530_v20, %v1387_v46  ;;  %v1836_v9 = vpop.f32.mrb[21].mxu1 }
 0x164   : > { %v4427_v8 = vadd.f32 %v1836_v9, %v1385_v24  ;;  %v3531_v26 = vpop.f32.mrb[22].mxu1 }
 0x165   : > { %v4429_v12 = vadd.f32 %v3658_v48, %v3531_v26  ;;  %v1839_v28 = vpop.f32.mrb[23].mxu1  ;;  %v524_v48 = vand.u32 15, %v432_v33 }
 0x166   : > { %v4431_v29 = vadd.f32 %v3659_v49, %v1839_v28 }
 0x167   : > { %vm640_vm9 = vcmp.ge.s32.totalorder %v524_v48, 1 }
 0x16a   : > { %v3534_v34 = vpop.f32.mrb[24].mxu1 }
 0x16b   : > { %v1909_v23 = vadd.f32 %v3534_v34, %v1391_v32  ;;  %v3598_v35 = vpop.f32.mrb[24].mxu0  ;;  %v1852_v36 = vpop.f32.mrb[25].mxu1 }
 0x16c   : > { %v1907_v43 = vadd.f32 %v1852_v36, %v1389_v3  ;;  %v2295_v44 = vpop.f32.mrb[25].mxu0  ;;  %v3535_v47 = vpop.f32.mrb[26].mxu1 }
 0x16d   : > { %v4436_v42 = vadd.f32 %v4397_v58, %v3535_v47  ;;  %v3599_v49 = vpop.f32.mrb[26].mxu0  ;;  %v1855_v50 = vpop.f32.mrb[27].mxu1  ;;  %v1393_v58 = vsel %vm640_vm9, %v4403_v62, 0.0  ;;  %v475_v47 = vand.u32 15, %v425_v16 }
 0x16e   : > { %v4439_v51 = vadd.f32 %v4399_v61, %v1855_v50  ;;  %v2298_v55 = vpop.f32.mrb[27].mxu0  ;;  %v421_v61 = vadd.s32 8, %v4409_v1 }
 0x16f   : > { %vm4512_vm15 = vcmp.le.s32.totalorder %v475_v47, 14 }
 0x170   : > { %v447_v59 = vand.u32 15, %v421_v61 }
 0x172   : > { %v3538_v52 = vpop.f32.mrb[28].mxu1  ;;  %vm4480_vm12 = vcmp.le.s32.totalorder %v447_v59, 14 }
 0x173   : > { %v4443_v57 = vadd.f32 %v3538_v52, %v1395_v45  ;;  %v4445_v38 = vpop.f32.mrb[28].mxu0  ;;  %v1868_v39 = vpop.f32.mrb[29].mxu1 }
 0x174   : > { %v4450_v0 = vadd.f32 %v1868_v39, %v1393_v58  ;;  %v4452_v4 = vpop.f32.mrb[29].mxu0  ;;  %v3539_v56 = vpop.f32.mrb[30].mxu1  ;;  %v433_v39 = vadd.s32 104, %v4409_v1 }
 0x175   : > { %v4457_v40 = vadd.f32 %v4405_v63, %v3539_v56  ;;  %v4459_v2 = vpop.f32.mrb[30].mxu0  ;;  %v1871_v62 = vpop.f32.mrb[31].mxu1  ;;  %v4470_v63 = vld [vmem:[%s4574_s3] ss:$0 sm:$0xff] }
 0x176   : > { %v4462_v10 = vadd.f32 %v4407_v54, %v1871_v62  ;;  %v4464_v11 = vpop.f32.mrb[31].mxu0 }
 0x17a   : > { %v3630_v18 = vpop.f32.mrb[32].mxu1 }
 0x17b   : > { %v3622_v54 = vpop.f32.mrb[16].mxu0  ;;  %v3668_v46 = vadd.f32 %v3630_v18, %v3598_v35  ;;  %v2542_v20 = vpop.f32.mrb[33].mxu1 }
 0x17c   : > { %v2639_v26 = vadd.f32 %v3622_v54, %v4415_v13  ;;  %v2510_v27 = vpop.f32.mrb[17].mxu0  ;;  %v3669_v28 = vadd.f32 %v2542_v20, %v2295_v44  ;;  %v3631_v31 = vpop.f32.mrb[34].mxu1 }
 0x17d   : > { %v2647_v34 = vadd.f32 %v3668_v46, %v1909_v23  ;;  %v2637_v35 = vadd.f32 %v2510_v27, %v4417_v30  ;;  %v3623_v3 = vpop.f32.mrb[18].mxu0  ;;  %v3670_v36 = vadd.f32 %v3631_v31, %v3599_v49  ;;  %v2545_v15 = vpop.f32.mrb[35].mxu1  ;;  %v545_v30 = vand.u32 15, %v4485_v25 }
 0x17e   : > { %v2661_v13 = vadd.f32 %v4470_v63, %v2639_v26  ;;  %v2645_v48 = vadd.f32 %v3669_v28, %v1907_v43  ;;  %v2624_v44 = vsel %vm4472_vm10, %v3623_v3, 0.0  ;;  %v2513_v50 = vpop.f32.mrb[19].mxu0  ;;  %v3671_v45 = vadd.f32 %v2545_v15, %v2298_v55 }
 0x17f   : > { %v2669_v52 = vadd.f32 %v4470_v63, %v2647_v34  ;;  %v2640_v60 = vadd.f32 %v2624_v44, %v4419_v37  ;;  %v2632_v23 = vsel %vm4476_vm11, %v3670_v36, 0.0  ;;  %v2659_v49 = vadd.f32 %v4470_v63, %v2637_v35 }
 0x180   : > { %v2648_v58 = vadd.f32 %v2632_v23, %v4436_v42  ;;  %v2622_v43 = vsel %vm4480_vm12, %v2513_v50, 0.0  ;;  %v2677_v41 = vmax.f32 %v2661_v13, 0.0  ;;  %v2667_v22 = vadd.f32 %v4470_v63, %v2645_v48 }
 0x181   : > { %v2662_v55 = vadd.f32 %v4470_v63, %v2640_v60  ;;  %v2638_v37 = vadd.f32 %v2622_v43, %v4421_v17  ;;  %v2685_v56 = vmax.f32 %v2669_v52, 0.0  ;;  %v2630_v5 = vsel %vm4488_vm13, %v3671_v45, 0.0 }
 0x182   : > { %v2670_v42 = vadd.f32 %v4470_v63, %v2648_v58  ;;  %v3634_v62 = vpop.f32.mrb[36].mxu1  ;;  %v2646_v53 = vadd.f32 %v2630_v5, %v4439_v51  ;;  %v2675_v7 = vmax.f32 %v2659_v49, 0.0  ;;  %v531_v31 = vand.u32 15, %v433_v39 }
 0x183   : > { %v2678_v1 = vmax.f32 %v2662_v55, 0.0  ;;  %v2660_v6 = vadd.f32 %v4470_v63, %v2638_v37  ;;  %v3626_v59 = vpop.f32.mrb[20].mxu0  ;;  %v3672_v17 = vadd.f32 %v3634_v62, %v4445_v38  ;;  %v2558_v14 = vpop.f32.mrb[37].mxu1  ;;  %v2683_v33 = vmax.f32 %v2667_v22, 0.0 }
 0x184   : > { %v2686_v16 = vmax.f32 %v2670_v42, 0.0  ;;  %v2643_v18 = vadd.f32 %v3626_v59, %v4425_v21  ;;  %v2526_v19 = vpop.f32.mrb[21].mxu0  ;;  %v3673_v54 = vadd.f32 %v2558_v14, %v4452_v4  ;;  %v3635_v46 = vpop.f32.mrb[38].mxu1  ;;  %v2668_v38 = vadd.f32 %v4470_v63, %v2646_v53 }
 0x185   : > { %v3165_v51 = vpack.c.bf16 %v2678_v1, %v2677_v41  ;;  %v2676_v20 = vmax.f32 %v2660_v6, 0.0  ;;  %v2651_v24 = vadd.f32 %v3672_v17, %v4443_v57  ;;  %v3627_v9 = vpop.f32.mrb[22].mxu0  ;;  %v2561_v25 = vpop.f32.mrb[39].mxu1  ;;  %v2641_v27 = vadd.f32 %v2526_v19, %v4427_v8 }
 0x186   : > { %v3185_v26 = vpack.c.bf16 %v2686_v16, %v2685_v56  ;;  %v2649_v21 = vadd.f32 %v3673_v54, %v4450_v0  ;;  %v2529_v28 = vpop.f32.mrb[23].mxu0  ;;  %v2684_v34 = vmax.f32 %v2668_v38, 0.0  ;;  %v2628_v35 = vsel %vm4492_vm14, %v3627_v9, 0.0 }
 0x187   : > { %3197 = vst [vmem:[%s4528_s12 + $0x8] sm:$0xff] %v3165_v51   ;;  %v3160_v4 = vpack.c.bf16 %v2676_v20, %v2675_v7  ;;  %v2665_v57 = vadd.f32 %v4470_v63, %v2643_v18  ;;  %v2644_v3 = vadd.f32 %v2628_v35, %v4429_v12  ;;  %vm659_vm0 = vcmp.le.s32.totalorder %v545_v30, 14 }
 0x188   : > { %3201 = vst [vmem:[%s4528_s12 + $0x28] sm:$0xff] %v3185_v26   ;;  %v3180_v8 = vpack.c.bf16 %v2684_v34, %v2683_v33  ;;  %v2663_v0 = vadd.f32 %v4470_v63, %v2641_v27  ;;  %v3674_v36 = vadd.f32 %v3635_v46, %v4459_v2  ;;  %v2626_v15 = vsel %vm4512_vm15, %v2529_v28, 0.0 }
 0x189   : > { %3161 = vst [vmem:[%s4528_s12] sm:$0xff] %v3160_v4   ;;  %v2666_v47 = vadd.f32 %v4470_v63, %v2644_v3  ;;  %v2642_v32 = vadd.f32 %v2626_v15, %v4431_v29  ;;  %vm657_vm1 = vcmp.le.s32.totalorder %v531_v31, 14  ;;  %v2673_v13 = vadd.f32 %v4470_v63, %v2651_v24 }
 0x18a   : > { %3200 = vst [vmem:[%s4528_s12 + $0x20] sm:$0xff] %v3180_v8   ;;  %v2636_v12 = vsel %vm659_vm0, %v3674_v36, 0.0  ;;  %v3675_v48 = vadd.f32 %v2561_v25, %v4464_v11  ;;  %v2681_v44 = vmax.f32 %v2665_v57, 0.0  ;;  %v2679_v52 = vmax.f32 %v2663_v0, 0.0 }
 0x18b   : > { %v2682_v50 = vmax.f32 %v2666_v47, 0.0  ;;  %v2652_v45 = vadd.f32 %v2636_v12, %v4457_v40  ;;  %v2664_v2 = vadd.f32 %v4470_v63, %v2642_v32  ;;  %v2671_v60 = vadd.f32 %v4470_v63, %v2649_v21 }
 0x18c   : > { %v2634_v29 = vsel %vm657_vm1, %v3675_v48, 0.0  ;;  %v2689_v11 = vmax.f32 %v2673_v13, 0.0 }
 0x18d   : > { %v3175_v23 = vpack.c.bf16 %v2682_v50, %v2681_v44  ;;  %v2674_v30 = vadd.f32 %v4470_v63, %v2652_v45  ;;  %v2680_v49 = vmax.f32 %v2664_v2, 0.0  ;;  %v2650_v58 = vadd.f32 %v2634_v29, %v4462_v10 }
 0x18e   : > { %v2687_v41 = vmax.f32 %v2671_v60, 0.0 }
 0x18f   : > { %3199 = vst [vmem:[%s4528_s12 + $0x18] sm:$0xff] %v3175_v23   ;;  %v2690_v43 = vmax.f32 %v2674_v30, 0.0  ;;  %v3170_v39 = vpack.c.bf16 %v2680_v49, %v2679_v52  ;;  %v2672_v40 = vadd.f32 %v4470_v63, %v2650_v58 }
 0x191   : > { %v3195_v55 = vpack.c.bf16 %v2690_v43, %v2689_v11  ;;  %3198 = vst [vmem:[%s4528_s12 + $0x10] sm:$0xff] %v3170_v39   ;;  %v2688_v37 = vmax.f32 %v2672_v40, 0.0 }
 0x193   : > { %3203 = vst [vmem:[%s4528_s12 + $0x38] sm:$0xff] %v3195_v55   ;;  %v3190_v61 = vpack.c.bf16 %v2688_v37, %v2687_v41 }
 0x195   : > { %3202 = vst [vmem:[%s4528_s12 + $0x30] sm:$0xff] %v3190_v61  }
 0x196 PF: > { %s14_s17 = sadd.s32 1, %s3876_s17   ;;  %s4588_s15 = smov %s3872_s16 }
 0x197   : > { %p11_p5 = scmp.ge.s32.totalorder %s14_s17, 4   ;;  %s4589_s16 = smov %s4591_s1 }
 0x199   :  { %13 = sbr.rel (!%p11_p5) target bundleno = 2 (0x2), region = 181 }
 0x1a0   :  { %2801 = vsyncmov [#allocation3] }
 0x1a3   :  { %s2802_s8 = vpop.sfrf %2801 }
 0x1a4   :  { %p3135_p6 = scmp.ne.s32.totalorder %s2802_s8, 0 }
 0x1a6   :  { %2806 = shalt.err (%p3135_p6)  }
 0x1a7   :  { %2808 = vsyncmov [#allocation3 + $0x1] }
 0x1aa   :  { %s2809_s13 = vpop.sfrf %2808 }
 0x1ab   :  { %p3136_p7 = scmp.ne.s32.totalorder %s2809_s13, 0 }
 0x1ad   :  { %2813 = shalt.err (%p3136_p7)  }

// kernel: rcab3d_forward.4
= control target key start
LH: loop header
LB: loop body
LE: loop exit
PB: predicated region body
PF: predicated region fallthrough
CT: control target
= control target key end

     0   :  { %s4003_s18 = smov 0   ;;  %s4005_s19 = smov 0   ;;  %s4686_s0 = inlined_call_operand.vmem [shape: bf16[2,128,128], index: 0, kind: input, shape index: {}, may-alias: {0,1}]   ;;  %s4687_s1 = inlined_call_operand.vmem [shape: bf16[2,128,128], index: 1, kind: input, shape index: {}, may-alias: {0,1}]   ;;  %s4688_s2 = inlined_call_operand.vmem [shape: bf16[9,128,128], index: 2, kind: input, shape index: {}]   ;;  %s4689_s3 = inlined_call_operand.vmem [shape: f32[1,128], index: 3, kind: input, shape index: {}]   ;;  %s4690_s4 = inlined_call_operand.vmem [shape: bf16[2,128,128], index: 4, kind: output, shape index: {0}]   ;;  %s4691_s5 = inlined_call_operand.vmem [shape: f32[2,8,128], index: 5, kind: output, shape index: {1}]  }
   0x1   :  { %s4007_s20 = smov 0  }
   0x2 LB: > { %s28_s1 = sadd.s32 1, %s3966_s19  ;;  %p2992_p0 = scmp.ge.s32.totalorder %s3970_s20, 1  ;;  %s3970_s20 = sphi %s4007_s20, %s16_s20   ;;  %s3966_s19 = sphi %s4005_s19, %s4707_s19   ;;  %s3962_s18 = sphi %s4003_s18, %s4706_s18  }
   0x3   : > { %p30_p1 = scmp.ge.s32.totalorder %s28_s1, 2  ;;  %p189_p2 = scmp.lt.s32.totalorder %s3970_s20, 3 }
   0x5   : > { %s4709_s1 = smov (%p30_p1, %s28_s1), 0  ;;  %p190_p3 = pnand %p2992_p0, %p189_p2 }
   0x6   : > { %v3867_v0 = vld [vmem:[%s4688_s2 + $0xc0] sm:$0xff] (!%p190_p3)   ;;  %v3869_v2 = vld [vmem:[%s4688_s2 + $0xc8] sm:$0xff] (!%p190_p3)   ;;  %p231_p4 = scmp.lt.s32.totalorder (!%p190_p3), %s3962_s18, 1  ;;  %v3972_v3 = vmov (!%p190_p3), 0   ;;  %v3871_v5 = vld [vmem:[%s4688_s2 + $0xd0] sm:$0xff] (!%p190_p3)  }
   0x7   : > { %193 = sbr.rel (%p190_p3) target bundleno = 432 (0x1b0), region = 32  ;;  %v3868_v1 = vld [vmem:[%s4688_s2] sm:$0xff] (!%p190_p3)   ;;  %3442 = vmatprep.subr.bf16.mxu1 (!%p190_p3), %v3867_v0  ;;  %447 = vst [vmem:[#allocation2 + $0x8] sm:$0xff] (!%p190_p3), %v3972_v3  ;;  %441 = vst [vmem:[#allocation2] sm:$0xff] (!%p190_p3), %v3972_v3  ;;  %v3870_v4 = vld [vmem:[%s4688_s2 + $0x8] sm:$0xff] (!%p190_p3)   ;;  %v4050_v8 = vrot.slane (!%p190_p3), %v3972_v3, 1 }
   0x8   : > { %442 = vst [vmem:[#allocation2 + $0x58] sm:$0xff] (!%p190_p3), %v3972_v3  ;;  %448 = vst [vmem:[#allocation2 + $0x50] sm:$0xff] (!%p190_p3), %v3972_v3  ;;  %3474 = vmatprep.subr.bf16.mxu0 (!%p190_p3), %v3868_v1  ;;  %3443 = vmatpush3.bf16.msra.mxu1 (!%p190_p3), %v3867_v0  ;;  %v3872_v6 = vld [vmem:[%s4688_s2 + $0x10] sm:$0xff] (!%p190_p3)   ;;  %v3873_v7 = vld [vmem:[%s4688_s2 + $0xd8] sm:$0xff] (!%p190_p3)   ;;  %v4070_v12 = vrot.slane (!%p190_p3), %v3972_v3, 7 }
   0x9   : > { %3475 = vmatpush3.bf16.msra.mxu0 (!%p190_p3), %v3868_v1  ;;  %3444 = vmatprep.subr.bf16.mxu1 (!%p190_p3), %v3869_v2  ;;  %v3874_v9 = vld [vmem:[%s4688_s2 + $0x18] sm:$0xff] (!%p190_p3)   ;;  %v3875_v10 = vld [vmem:[%s4688_s2 + $0xe0] sm:$0xff] (!%p190_p3)   ;;  %v3877_v13 = vld [vmem:[%s4688_s2 + $0xe8] sm:$0xff] (!%p190_p3)   ;;  %vm750_vm0 = vsmask.f32 (!%p190_p3), 256 }
   0xa   : > { %3476 = vmatprep.subr.bf16.mxu0 (!%p190_p3), %v3870_v4  ;;  %v3876_v11 = vld [vmem:[%s4688_s2 + $0x20] sm:$0xff] (!%p190_p3)   ;;  %v3878_v14 = vld [vmem:[%s4688_s2 + $0x28] sm:$0xff] (!%p190_p3)   ;;  %v3879_v23 = vld [vmem:[%s4688_s2 + $0xf0] sm:$0xff] (!%p190_p3)   ;;  %vm1999_vm1 = vsmask.f32 (!%p190_p3), 7424 }
   0xb   : > { %v3880_v27 = vld [vmem:[%s4688_s2 + $0x30] sm:$0xff] (!%p190_p3)   ;;  %v3881_v29 = vld [vmem:[%s4688_s2 + $0xf8] sm:$0xff] (!%p190_p3)   ;;  %v3886_v44 = vld [vmem:[%s4688_s2 + $0x100] sm:$0xff] (!%p190_p3)  }
   0xc   : > { %3445 = vmatpush3.bf16.msra.mxu1 (!%p190_p3), %v3869_v2  ;;  %v3882_v35 = vld [vmem:[%s4688_s2 + $0x38] sm:$0xff] (!%p190_p3)   ;;  %v3885_v47 = vld [vmem:[%s4688_s2 + $0x180] sm:$0xff] (!%p190_p3)   ;;  %v3888_v49 = vld [vmem:[%s4688_s2 + $0x108] sm:$0xff] (!%p190_p3)  }
   0xd   : > { %3477 = vmatpush3.bf16.msra.mxu0 (!%p190_p3), %v3870_v4  ;;  %3446 = vmatprep.subr.bf16.mxu1 (!%p190_p3), %v3871_v5  ;;  %v3887_v57 = vld [vmem:[%s4688_s2 + $0x188] sm:$0xff] (!%p190_p3)   ;;  %v3891_v62 = vld [vmem:[%s4688_s2 + $0x190] sm:$0xff] (!%p190_p3)  }
   0xe   : > { %s4711_s18 = smov (!%p231_p4, %s3962_s18), 1  ;;  %3478 = vmatprep.subr.bf16.mxu0 %v3872_v6  ;;  %v731_v16 = vld [vmem:[#allocation2 + $0x8] sm:$0x80]  ;;  %v706_v17 = vld [vmem:[#allocation2] sm:$0x80]  ;;  %v3892_v1 = vld [vmem:[%s4688_s2 + $0x110] sm:$0xff]  }
   0xf   : > { %s3231_s12 = sshll.u32 %s4711_s18, 6  ;;  %v752_v18 = vshrl.u32 %v731_v16, 16  ;;  %v973_v21 = vshrl.u32 %v706_v17, 16 }
  0x10   : > { %3447 = vmatpush3.bf16.msra.mxu1 %v3871_v5  ;;  %s4067_s22 = scalar_lea.vmem %s4686_s0, %s3231_s12  ;;  %s4618_s26 = scalar_lea.vmem %s4690_s4, %s3231_s12 }
  0x11   : > { %3479 = vmatpush3.bf16.msra.mxu0 %v3872_v6  ;;  %3448 = vmatprep.subr.bf16.mxu1 %v3873_v7  ;;  %v4079_v15 = vld [vmem:[%s4067_s22] sm:$0xff]   ;;  %v4085_v22 = vld [vmem:[%s4067_s22 + $0x8] sm:$0xff]   ;;  %v754_v24 = vrot.slane %v752_v18, 7  ;;  %v975_v26 = vrot.slane %v973_v21, 7  ;;  %v4111_v38 = vld [vmem:[%s4067_s22 + $0x10] sm:$0xff]   ;;  %s2997_s12 = sshll.u32 %s4711_s18, 3 }
  0x12   : > { %3480 = vmatprep.subr.bf16.mxu0 %v3874_v9  ;;  %433 = vst [vmem:[#allocation2 + $0x10] sm:$0xff] %v4079_v15  ;;  %v756_v19 = vshrl.u32 %v4079_v15, 16  ;;  %v759_v20 = vshll.u32 %v4079_v15, 16  ;;  %434 = vst [vmem:[#allocation2 + $0x18] sm:$0xff] %v4085_v22  ;;  %v764_v28 = vshrl.u32 %v4085_v22, 16  ;;  %v767_v34 = vshll.u32 %v4085_v22, 16 }
  0x13   : > { %v983_v31 = vsel %vm750_vm0, %v975_v26, %v4070_v12  ;;  %v4114_v39 = vld [vmem:[%s4067_s22 + $0x18] sm:$0xff]   ;;  %v772_v42 = vshrl.u32 %v4111_v38, 16  ;;  %v775_v43 = vshll.u32 %v4111_v38, 16  ;;  %v4146_v54 = vld [vmem:[%s4067_s22 + $0x20] sm:$0xff]   ;;  %v4151_v56 = vld [vmem:[%s4067_s22 + $0x28] sm:$0xff]  }
  0x14   : > { %3449 = vmatpush3.bf16.msra.mxu1 %v3873_v7  ;;  %v758_v25 = vrot.slane %v756_v19, 7  ;;  %v4100_v32 = vrot.slane %v759_v20, 1  ;;  %3490 = vmatprep.mubr.bf16.mxu0 %v983_v31  ;;  %v766_v33 = vrot.slane %v764_v28, 7  ;;  %v4116_v40 = vrot.slane %v767_v34, 1  ;;  %436 = vst [vmem:[#allocation2 + $0x28] sm:$0xff] %v4114_v39  ;;  %v4174_v2 = vld [vmem:[%s4067_s22 + $0x30] sm:$0xff]  }
  0x15   : > { %3481 = vmatpush3.bf16.msra.mxu0 %v3874_v9  ;;  %3450 = vmatprep.subr.bf16.mxu1 %v3875_v10  ;;  %v780_v45 = vshrl.u32 %v4114_v39, 16  ;;  %v774_v48 = vrot.slane %v772_v42, 7  ;;  %v783_v50 = vshll.u32 %v4114_v39, 16  ;;  %v788_v58 = vshrl.u32 %v4146_v54, 16  ;;  %v4178_v6 = vld [vmem:[%s4067_s22 + $0x38] sm:$0xff]   ;;  %v3898_v21 = vld [vmem:[%s4688_s2 + $0x120] sm:$0xff]   ;;  %s256_s22 = scalar_lea.vmem %s4691_s5, %s2997_s12 }
  0x16   : > { %3482 = vmatprep.subr.bf16.mxu0 %v3876_v11  ;;  %v761_v30 = vor.u32 %v759_v20, %v758_v25  ;;  %v4108_v37 = vor.u32 %v4100_v32, %v756_v19  ;;  %v4118_v41 = vor.u32 %v767_v34, %v766_v33  ;;  %v4128_v46 = vor.u32 %v4116_v40, %v764_v28 }
  0x17   : > { %v777_v52 = vor.u32 %v775_v43, %v774_v48  ;;  %v782_v53 = vrot.slane %v780_v45, 7  ;;  %v791_v60 = vshll.u32 %v4146_v54, 16  ;;  %v790_v63 = vrot.slane %v788_v58, 7  ;;  %440 = vst [vmem:[#allocation2 + $0x48] sm:$0xff] %v4178_v6 }
  0x18   : > { %3451 = vmatpush3.bf16.msra.mxu1 %v3875_v10  ;;  %v762_v36 = vsel %vm750_vm0, %v754_v24, %v761_v30  ;;  %v770_v51 = vsel %vm750_vm0, %v758_v25, %v4118_v41  ;;  %v984_v55 = vsel %vm750_vm0, %v4070_v12, %v761_v30  ;;  %v796_v0 = vshrl.u32 %v4151_v56, 16  ;;  %v3897_v24 = vld [vmem:[%s4688_s2 + $0x1a0] sm:$0xff]  }
  0x19   : > { %3483 = vmatpush3.bf16.msra.mxu0 %v3876_v11  ;;  %3452 = vmatprep.subr.bf16.mxu1 %v3877_v13  ;;  %v4158_v59 = vsel %vm750_vm0, %v766_v33, %v777_v52  ;;  %v785_v61 = vor.u32 %v783_v50, %v782_v53  ;;  %v793_v4 = vor.u32 %v791_v60, %v790_v63  ;;  %v799_v5 = vshll.u32 %v4151_v56, 16  ;;  %v3894_v11 = vld [vmem:[%s4688_s2 + $0x118] sm:$0xff]   ;;  %v1132_v26 = vld [vmem:[#allocation2 + $0x10] sm:$0x80] }
  0x1a   : > { %3484 = vmatprep.subr.bf16.mxu0 %v3878_v14  ;;  %3458 = vmatprep.mubr.bf16.mxu1 %v762_v36  ;;  %v798_v9 = vrot.slane %v796_v0, 7  ;;  %v804_v10 = vshrl.u32 %v4174_v2, 16  ;;  %v807_v16 = vshll.u32 %v4174_v2, 16  ;;  %v815_v28 = vshll.u32 %v4178_v6, 16 }
  0x1b   : > { %v4181_v7 = vsel %vm750_vm0, %v774_v48, %v785_v61  ;;  %v4197_v17 = vsel %vm750_vm0, %v782_v53, %v793_v4  ;;  %v4224_v30 = vrot.slane %v775_v43, 1  ;;  %v1159_v31 = vshrl.u32 %v1132_v26, 16  ;;  %v3904_v48 = vld [vmem:[%s4688_s2 + $0x130] sm:$0xff]  }
  0x1c   : > { %3453 = vmatpush3.bf16.msra.mxu1 %v3877_v13  ;;  %v812_v13 = vshrl.u32 %v4178_v6, 16  ;;  %v806_v18 = vrot.slane %v804_v10, 7  ;;  %v801_v20 = vor.u32 %v799_v5, %v798_v9  ;;  %v2202_v33 = vrot.slane %v783_v50, 1  ;;  %v3903_v50 = vld [vmem:[%s4688_s2 + $0x1b0] sm:$0xff]  }
  0x1d   : > { %3485 = vmatpush3.bf16.msra.mxu0 %v3878_v14  ;;  %3454 = vmatprep.subr.bf16.mxu1 %v3879_v23  ;;  %v3893_v14 = vld [vmem:[%s4688_s2 + $0x198] sm:$0xff]   ;;  %v4237_v36 = vrot.slane %v791_v60, 1  ;;  %v1161_v52 = vrot.slane %v1159_v31, 7 }
  0x1e   : > { %3486 = vmatprep.subr.bf16.mxu0 %v3880_v27  ;;  %v814_v19 = vrot.slane %v812_v13, 7  ;;  %v809_v25 = vor.u32 %v807_v16, %v806_v18  ;;  %v3905_v60 = vld [vmem:[%s4688_s2 + $0x1b8] sm:$0xff]  }
  0x1f   : > { %v1169_v61 = vsel %vm750_vm0, %v1161_v52, %v4118_v41  ;;  %v4282_v41 = vsel %vm1999_vm1, %v4050_v8, %v4100_v32  ;;  %v3936_v52 = vld [vmem:[%s4688_s2 + $0xb0] sm:$0xff]  }
  0x20   : > { %3455 = vmatpush3.bf16.msra.mxu1 %v3879_v23  ;;  %v4205_v23 = vsel %vm750_vm0, %v814_v19, %v4070_v12  ;;  %v3899_v12 = vld [vmem:[%s4688_s2 + $0x1a8] sm:$0xff]   ;;  %v4230_v34 = vsel %vm750_vm0, %v798_v9, %v809_v25  ;;  %v817_v43 = vor.u32 %v815_v28, %v814_v19  ;;  %v3919_v19 = vld [vmem:[%s4688_s2 + $0x70] sm:$0xff]  }
  0x21   : > { %3487 = vmatpush3.bf16.msra.mxu0 %v3880_v27  ;;  %3456 = vmatprep.subr.bf16.mxu1 %v3881_v29  ;;  %v4213_v27 = vsel %vm750_vm0, %v790_v63, %v801_v20  ;;  %v3908_v63 = vld [vmem:[%s4688_s2 + $0x140] sm:$0xff]   ;;  %v2374_v20 = vld [vmem:[#allocation2 + $0x28] sm:$0xff] }
  0x22   : > { %3488 = vmatprep.subr.bf16.mxu0 %v3882_v35  ;;  %v2418_v25 = vshrl.u32 %v2374_v20, 16 }
  0x24   : > { %3457 = vmatpush3.bf16.msra.mxu1 %v3881_v29  ;;  %v3900_v29 = vld [vmem:[%s4688_s2 + $0x128] sm:$0xff]  }
  0x25   : > { %3489 = vmatpush3.bf16.msra.mxu0 %v3882_v35  ;;  %3538 = vmatprep.subr.bf16.mxu1 %v3886_v44  ;;  %v4235_v35 = vor.u32 %v4224_v30, %v772_v42  ;;  %v2207_v42 = vor.u32 %v4237_v36, %v788_v58  ;;  %v3906_v58 = vld [vmem:[%s4688_s2 + $0x138] sm:$0xff]  }
  0x26   : > { %3506 = vmatprep.subr.bf16.mxu0 %v3885_v47 }
  0x27   : > { %3459 = vmatmul.mubr.bf16.vlgmr.msra.gmra.mrb[0].mxu1 %v770_v51  ;;  %v4296_v4 = vsel %vm1999_vm1, %v4235_v35, %v2202_v33 }
  0x28   : > { %3491 = vmatmul.mubr.bf16.vlgmr.msra.gmra.mrb[0].mxu0 %v984_v55  ;;  %3539 = vmatpush3.bf16.msra.mxu1 %v3886_v44  ;;  %v2204_v44 = vor.u32 %v2202_v33, %v780_v45  ;;  %v4258_v55 = vsel %vm750_vm0, %v806_v18, %v817_v43  ;;  %v3918_v18 = vld [vmem:[%s4688_s2 + $0x168] sm:$0xff]   ;;  %v3923_v33 = vld [vmem:[%s4688_s2 + $0x1c0] sm:$0xff]   ;;  %v3930_v43 = vld [vmem:[%s4688_s2 + $0x98] sm:$0xff]  }
  0x29   : > { %3507 = vmatpush3.bf16.msra.mxu0 %v3885_v47  ;;  %3540 = vmatprep.subr.bf16.mxu1 %v3888_v49  ;;  %v2208_v47 = vrot.slane %v799_v5, 1 }
  0x2a   : > { %3508 = vmatprep.subr.bf16.mxu0 %v3887_v57  ;;  %3462 = vmatprep.mubr.bf16.mxu1 %v4158_v59  ;;  %v4300_v5 = vsel %vm1999_vm1, %v2204_v44, %v4237_v36  ;;  %v3931_v44 = vld [vmem:[%s4688_s2 + $0x1e0] sm:$0xff]  }
  0x2b   : > { %3494 = vmatprep.mubr.bf16.mxu0 %v770_v51  ;;  %v2210_v45 = vor.u32 %v2208_v47, %v796_v0  ;;  %v2448_v51 = vrot.slane %v815_v28, 1  ;;  %v4287_v0 = vsel %vm1999_vm1, %v4108_v37, %v4116_v40  ;;  %v4303_v32 = vsel %vm1999_vm1, %v2207_v42, %v2208_v47  ;;  %v3909_v40 = vld [vmem:[%s4688_s2 + $0x48] sm:$0xff]   ;;  %v3932_v47 = vld [vmem:[%s4688_s2 + $0xa0] sm:$0xff]  }
  0x2c   : > { %3541 = vmatpush3.bf16.msra.mxu1 %v3888_v49  ;;  %v2211_v49 = vrot.slane %v807_v16, 1  ;;  %v3916_v16 = vld [vmem:[%s4688_s2 + $0x160] sm:$0xff]   ;;  %v3933_v42 = vld [vmem:[%s4688_s2 + $0x1e8] sm:$0xff]  }
  0x2d   : > { %3509 = vmatpush3.bf16.msra.mxu0 %v3887_v57  ;;  %3542 = vmatprep.subr.bf16.mxu1 %v3892_v1  ;;  %v4260_v57 = vor.u32 %v2448_v51, %v812_v13  ;;  %v3912_v13 = vld [vmem:[%s4688_s2 + $0x150] sm:$0xff]  }
  0x2e   : > { %3510 = vmatprep.subr.bf16.mxu0 %v3891_v62  ;;  %v4255_v53 = vor.u32 %v2211_v49, %v804_v10  ;;  %v4306_v37 = vsel %vm1999_vm1, %v2210_v45, %v2211_v49  ;;  %v3910_v10 = vld [vmem:[%s4688_s2 + $0x148] sm:$0xff]   ;;  %v3935_v45 = vld [vmem:[%s4688_s2 + $0x1f0] sm:$0xff]  }
  0x2f   : > { %3463 = vmatmul.mubr.bf16.gmra.mrb[4].mxu1 %v4181_v7  ;;  %v4318_v9 = vsel %vm1999_vm1, %v4260_v57, %v4050_v8 }
  0x30   : > { %3495 = vmatmul.mubr.bf16.gmra.mrb[4].mxu0 %v4158_v59  ;;  %3543 = vmatpush3.bf16.msra.mxu1 %v3892_v1  ;;  %v4292_v1 = vsel %vm1999_vm1, %v4128_v46, %v4224_v30  ;;  %v4313_v46 = vsel %vm1999_vm1, %v4255_v53, %v2448_v51 }
  0x31   : > { %3511 = vmatpush3.bf16.msra.mxu0 %v3891_v62  ;;  %3544 = vmatprep.subr.bf16.mxu1 %v3894_v11  ;;  %v3907_v62 = vld [vmem:[%s4688_s2 + $0x40] sm:$0xff]  }
  0x32   : > { %3512 = vmatprep.subr.bf16.mxu0 %v3893_v14  ;;  %3466 = vmatprep.mubr.bf16.mxu1 %v4197_v17 }
  0x33   : > { %3498 = vmatprep.mubr.bf16.mxu0 %v4181_v7 }
  0x34   : > { %3545 = vmatpush3.bf16.msra.mxu1 %v3894_v11  ;;  %v3911_v11 = vld [vmem:[%s4688_s2 + $0x50] sm:$0xff]  }
  0x35   : > { %3513 = vmatpush3.bf16.msra.mxu0 %v3893_v14  ;;  %3546 = vmatprep.subr.bf16.mxu1 %v3898_v21  ;;  %v3914_v14 = vld [vmem:[%s4688_s2 + $0x158] sm:$0xff]  }
  0x36   : > { %3514 = vmatprep.subr.bf16.mxu0 %v3897_v24 }
  0x37   : > { %3467 = vmatmul.mubr.bf16.gmra.mrb[8].mxu1 %v4213_v27 }
  0x38   : > { %3499 = vmatmul.mubr.bf16.gmra.mrb[8].mxu0 %v4197_v17  ;;  %3547 = vmatpush3.bf16.msra.mxu1 %v3898_v21  ;;  %v3920_v21 = vld [vmem:[%s4688_s2 + $0x170] sm:$0xff]  }
  0x39   : > { %3515 = vmatpush3.bf16.msra.mxu0 %v3897_v24  ;;  %3548 = vmatprep.subr.bf16.mxu1 %v3900_v29  ;;  %v2414_v24 = vshll.u32 %v2374_v20, 16 }
  0x3a   : > { %3516 = vmatprep.subr.bf16.mxu0 %v3899_v12  ;;  %3470 = vmatprep.mubr.bf16.mxu1 %v4230_v34 }
  0x3b   : > { %3502 = vmatprep.mubr.bf16.mxu0 %v4213_v27  ;;  %v2416_v26 = vrot.slane %v2414_v24, 1 }
  0x3c   : > { %3549 = vmatpush3.bf16.msra.mxu1 %v3900_v29 }
  0x3d   : > { %3517 = vmatpush3.bf16.msra.mxu0 %v3899_v12  ;;  %3550 = vmatprep.subr.bf16.mxu1 %v3904_v48  ;;  %v3922_v12 = vld [vmem:[%s4688_s2 + $0x178] sm:$0xff]   ;;  %v4373_v28 = vsel %vm1999_vm1, %v4235_v35, %v2416_v26  ;;  %v2420_v29 = vor.u32 %v2418_v25, %v2416_v26  ;;  %v3926_v35 = vld [vmem:[%s4688_s2 + $0x88] sm:$0xff]  }
  0x3e   : > { %3518 = vmatprep.subr.bf16.mxu0 %v3903_v50 }
  0x3f   : > { %3471 = vmatmul.mubr.bf16.gmra.mrb[12].mxu1 %v4258_v55  ;;  %v4379_v31 = vsel %vm1999_vm1, %v2420_v29, %v4237_v36  ;;  %v3928_v36 = vld [vmem:[%s4688_s2 + $0x90] sm:$0xff]  }
  0x40   : > { %3503 = vmatmul.mubr.bf16.gmra.mrb[12].mxu0 %v4230_v34  ;;  %3551 = vmatpush3.bf16.msra.mxu1 %v3904_v48  ;;  %v1981_v48 = vld [vmem:[#allocation2 + $0x50] sm:$0x1] }
  0x41   : > { %3519 = vmatpush3.bf16.msra.mxu0 %v3903_v50  ;;  %3552 = vmatprep.subr.bf16.mxu1 %v3906_v58  ;;  %v2029_v49 = vshll.u32 %v1981_v48, 16  ;;  %v3934_v50 = vld [vmem:[%s4688_s2 + $0xa8] sm:$0xff]  }
  0x42   : > { %3520 = vmatprep.subr.bf16.mxu0 %v3905_v60  ;;  %3522 = vmatprep.mubr.bf16.mxu0 %v1169_v61  ;;  %v3939_v61 = vld [vmem:[%s4688_s2 + $0x200] sm:$0xff]  }
  0x43   : > { %3554 = vmatprep.mubr.bf16.mxu1 %v4079_v15  ;;  %v2031_v51 = vrot.slane %v2029_v49, 1 }
  0x44   : > { %3553 = vmatpush3.bf16.msra.mxu1 %v3906_v58  ;;  %v3937_v58 = vld [vmem:[%s4688_s2 + $0x1f8] sm:$0xff]  }
  0x45   : > { %3521 = vmatpush3.bf16.msra.mxu0 %v3905_v60  ;;  %3570 = vmatprep.subr.bf16.mxu1 %v3907_v62  ;;  %v3938_v60 = vld [vmem:[%s4688_s2 + $0xb8] sm:$0xff]  }
  0x46   : > { %3634 = vmatprep.subr.bf16.mxu0 %v3908_v63 }
  0x47   : > { %3555 = vmatmul.mubr.bf16.vlgmr.msra.gmra.mrb[16].mxu1 %v4085_v22 }
  0x48   : > { %3523 = vmatmul.mubr.bf16.vlgmr.msra.gmra.mrb[0].mxu0 %v4158_v59  ;;  %3571 = vmatpush3.bf16.msra.mxu1 %v3907_v62  ;;  %v3913_v59 = vld [vmem:[%s4688_s2 + $0x58] sm:$0xff]  }
  0x49   : > { %3635 = vmatpush3.bf16.msra.mxu0 %v3908_v63  ;;  %3572 = vmatprep.subr.bf16.mxu1 %v3909_v40  ;;  %v2372_v62 = vld [vmem:[#allocation2 + $0x18] sm:$0xff]  ;;  %v1962_v63 = vld [vmem:[#allocation2 + $0x48] sm:$0x1] }
  0x4a   : > { %3636 = vmatprep.subr.bf16.mxu0 %v3910_v10  ;;  %3526 = vmatprep.mubr.bf16.mxu0 %v4181_v7  ;;  %v3915_v7 = vld [vmem:[%s4688_s2 + $0x60] sm:$0xff]  }
  0x4b   : > { %3558 = vmatprep.mubr.bf16.mxu1 %v4111_v38 }
  0x4c   : > { %3573 = vmatpush3.bf16.msra.mxu1 %v3909_v40 }
  0x4d   : > { %3637 = vmatpush3.bf16.msra.mxu0 %v3910_v10  ;;  %3574 = vmatprep.subr.bf16.mxu1 %v3911_v11  ;;  %v3946_v10 = vld [vmem:[%s4688_s2 + $0x238] sm:$0xff]  }
  0x4e   : > { %3638 = vmatprep.subr.bf16.mxu0 %v3912_v13 }
  0x4f   : > { %3559 = vmatmul.mubr.bf16.gmra.mrb[20].mxu1 %v4114_v39 }
  0x50   : > { %3527 = vmatmul.mubr.bf16.gmra.mrb[4].mxu0 %v4197_v17  ;;  %3575 = vmatpush3.bf16.msra.mxu1 %v3911_v11  ;;  %v3917_v17 = vld [vmem:[%s4688_s2 + $0x68] sm:$0xff]  }
  0x51   : > { %3639 = vmatpush3.bf16.msra.mxu0 %v3912_v13  ;;  %3576 = vmatprep.subr.bf16.mxu1 %v3913_v59  ;;  %v3947_v11 = vld [vmem:[#allocation2 + $0x8] sm:$0xff] }
  0x52   : > { %3640 = vmatprep.subr.bf16.mxu0 %v3914_v14  ;;  %3530 = vmatprep.mubr.bf16.mxu0 %v4213_v27  ;;  %v3921_v27 = vld [vmem:[%s4688_s2 + $0x78] sm:$0xff]  }
  0x53   : > { %3562 = vmatprep.mubr.bf16.mxu1 %v4146_v54 }
  0x54   : > { %3577 = vmatpush3.bf16.msra.mxu1 %v3913_v59 }
  0x55   : > { %3641 = vmatpush3.bf16.msra.mxu0 %v3914_v14  ;;  %3578 = vmatprep.subr.bf16.mxu1 %v3915_v7 }
  0x56   : > { %3642 = vmatprep.subr.bf16.mxu0 %v3916_v16 }
  0x57   : > { %3563 = vmatmul.mubr.bf16.gmra.mrb[24].mxu1 %v4151_v56 }
  0x58   : > { %3531 = vmatmul.mubr.bf16.gmra.mrb[8].mxu0 %v4230_v34  ;;  %3579 = vmatpush3.bf16.msra.mxu1 %v3915_v7  ;;  %v3924_v34 = vld [vmem:[%s4688_s2 + $0x80] sm:$0xff]  }
  0x59   : > { %3643 = vmatpush3.bf16.msra.mxu0 %v3916_v16  ;;  %3580 = vmatprep.subr.bf16.mxu1 %v3917_v17 }
  0x5a   : > { %3644 = vmatprep.subr.bf16.mxu0 %v3918_v18  ;;  %3534 = vmatprep.mubr.bf16.mxu0 %v4258_v55  ;;  %v2032_v55 = vsel %vm1999_vm1, %v4260_v57, %v2031_v51  ;;  %v3940_v57 = vld [vmem:[%s4688_s2 + $0x208] sm:$0xff]  }
  0x5b   : > { %3566 = vmatprep.mubr.bf16.mxu1 %v4174_v2 }
  0x5c   : > { %3581 = vmatpush3.bf16.msra.mxu1 %v3917_v17 }
  0x5d   : > { %3645 = vmatpush3.bf16.msra.mxu0 %v3918_v18  ;;  %3582 = vmatprep.subr.bf16.mxu1 %v3919_v19 }
  0x5e   : > { %3646 = vmatprep.subr.bf16.mxu0 %v3920_v21 }
  0x5f   : > { %3567 = vmatmul.mubr.bf16.gmra.mrb[28].mxu1 %v4178_v6 }
  0x60   : > { %3535 = vmatmul.mubr.bf16.gmra.mrb[12].mxu0 %v4205_v23  ;;  %3583 = vmatpush3.bf16.msra.mxu1 %v3919_v19  ;;  %v3925_v23 = vld [vmem:[%s4688_s2 + $0x1c8] sm:$0xff]  }
  0x61   : > { %3647 = vmatpush3.bf16.msra.mxu0 %v3920_v21  ;;  %3584 = vmatprep.subr.bf16.mxu1 %v3921_v27 }
  0x62   : > { %3648 = vmatprep.subr.bf16.mxu0 %v3922_v12  ;;  %3586 = vmatprep.mubr.bf16.mxu1 %v3972_v3  ;;  %v3927_v3 = vld [vmem:[%s4688_s2 + $0x1d0] sm:$0xff]  }
  0x63   : > { %3650 = vmatprep.mubr.bf16.mxu0 %v4287_v0 }
  0x64   : > { %3585 = vmatpush3.bf16.msra.mxu1 %v3921_v27 }
  0x65   : > { %3649 = vmatpush3.bf16.msra.mxu0 %v3922_v12  ;;  %3602 = vmatprep.subr.bf16.mxu1 %v3923_v33 }
  0x66   : > { %3666 = vmatprep.subr.bf16.mxu0 %v3924_v34 }
  0x67   : > { %3587 = vmatmul.mubr.bf16.vlgmr.msra.gmra.mrb[16].mxu1 %v4079_v15  ;;  %v3929_v15 = vld [vmem:[%s4688_s2 + $0x1d8] sm:$0xff]  }
  0x68   : > { %3651 = vmatmul.mubr.bf16.vlgmr.msra.gmra.mrb[16].mxu0 %v4292_v1  ;;  %3603 = vmatpush3.bf16.msra.mxu1 %v3923_v33 }
  0x69   : > { %3667 = vmatpush3.bf16.msra.mxu0 %v3924_v34  ;;  %3604 = vmatprep.subr.bf16.mxu1 %v3925_v23 }
  0x6a   : > { %3668 = vmatprep.subr.bf16.mxu0 %v3926_v35  ;;  %3590 = vmatprep.mubr.bf16.mxu1 %v4085_v22 }
  0x6b   : > { %3654 = vmatprep.mubr.bf16.mxu0 %v4296_v4 }
  0x6c   : > { %3605 = vmatpush3.bf16.msra.mxu1 %v3925_v23 }
  0x6d   : > { %3669 = vmatpush3.bf16.msra.mxu0 %v3926_v35  ;;  %3606 = vmatprep.subr.bf16.mxu1 %v3927_v3 }
  0x6e   : > { %3670 = vmatprep.subr.bf16.mxu0 %v3928_v36 }
  0x6f   : > { %3591 = vmatmul.mubr.bf16.gmra.mrb[20].mxu1 %v4111_v38 }
  0x70   : > { %3655 = vmatmul.mubr.bf16.gmra.mrb[20].mxu0 %v4300_v5  ;;  %3607 = vmatpush3.bf16.msra.mxu1 %v3927_v3 }
  0x71   : > { %3671 = vmatpush3.bf16.msra.mxu0 %v3928_v36  ;;  %3608 = vmatprep.subr.bf16.mxu1 %v3929_v15 }
  0x72   : > { %3672 = vmatprep.subr.bf16.mxu0 %v3930_v43  ;;  %3594 = vmatprep.mubr.bf16.mxu1 %v4114_v39 }
  0x73   : > { %3658 = vmatprep.mubr.bf16.mxu0 %v4303_v32 }
  0x74   : > { %3609 = vmatpush3.bf16.msra.mxu1 %v3929_v15 }
  0x75   : > { %3673 = vmatpush3.bf16.msra.mxu0 %v3930_v43  ;;  %3610 = vmatprep.subr.bf16.mxu1 %v3931_v44 }
  0x76   : > { %3674 = vmatprep.subr.bf16.mxu0 %v3932_v47 }
  0x77   : > { %3595 = vmatmul.mubr.bf16.gmra.mrb[24].mxu1 %v4146_v54 }
  0x78   : > { %3659 = vmatmul.mubr.bf16.gmra.mrb[24].mxu0 %v4306_v37  ;;  %3611 = vmatpush3.bf16.msra.mxu1 %v3931_v44 }
  0x79   : > { %3675 = vmatpush3.bf16.msra.mxu0 %v3932_v47  ;;  %3612 = vmatprep.subr.bf16.mxu1 %v3933_v42 }
  0x7a   : > { %3676 = vmatprep.subr.bf16.mxu0 %v3934_v50  ;;  %3598 = vmatprep.mubr.bf16.mxu1 %v4151_v56 }
  0x7b   : > { %3662 = vmatprep.mubr.bf16.mxu0 %v4313_v46 }
  0x7c   : > { %3613 = vmatpush3.bf16.msra.mxu1 %v3933_v42 }
  0x7d   : > { %3677 = vmatpush3.bf16.msra.mxu0 %v3934_v50  ;;  %3614 = vmatprep.subr.bf16.mxu1 %v3935_v45 }
  0x7e   : > { %3678 = vmatprep.subr.bf16.mxu0 %v3936_v52 }
  0x7f   : > { %3599 = vmatmul.mubr.bf16.gmra.mrb[28].mxu1 %v4174_v2 }
  0x80   : > { %3663 = vmatmul.mubr.bf16.gmra.mrb[28].mxu0 %v2032_v55  ;;  %3615 = vmatpush3.bf16.msra.mxu1 %v3935_v45 }
  0x81   : > { %3679 = vmatpush3.bf16.msra.mxu0 %v3936_v52  ;;  %3616 = vmatprep.subr.bf16.mxu1 %v3937_v58 }
  0x82   : > { %3680 = vmatprep.subr.bf16.mxu0 %v3938_v60  ;;  %3618 = vmatprep.mubr.bf16.mxu1 %v4085_v22  ;;  %v3941_v22 = vld [vmem:[%s4688_s2 + $0x210] sm:$0xff]  }
  0x83   : > { %3682 = vmatprep.mubr.bf16.mxu0 %v4282_v41  ;;  %v2401_v41 = vshll.u32 %v2372_v62, 16 }
  0x84   : > { %3617 = vmatpush3.bf16.msra.mxu1 %v3937_v58 }
  0x85   : > { %3681 = vmatpush3.bf16.msra.mxu0 %v3938_v60  ;;  %3730 = vmatprep.subr.bf16.mxu1 %v3939_v61 }
  0x86   : > { %3698 = vmatprep.subr.bf16.mxu0 %v3939_v61 }
  0x87   : > { %3619 = vmatmul.mubr.bf16.vlgmr.msra.gmra.mrb[16].mxu1 %v4111_v38  ;;  %v3942_v38 = vld [vmem:[%s4688_s2 + $0x218] sm:$0xff]  }
  0x88   : > { %3683 = vmatmul.mubr.bf16.vlgmr.msra.gmra.mrb[16].mxu0 %v4287_v0  ;;  %3738 = vmatpush3.bf16.msra.mxu1 %v3939_v61  ;;  %v2215_v0 = vshll.u32 %v1962_v63, 16 }
  0x89   : > { %3699 = vmatpush3.bf16.msra.mxu0 %v3939_v61  ;;  %3731 = vmatprep.subr.bf16.mxu1 %v3940_v57 }
  0x8a   : > { %3700 = vmatprep.subr.bf16.mxu0 %v3940_v57  ;;  %3622 = vmatprep.mubr.bf16.mxu1 %v4114_v39  ;;  %v3943_v39 = vld [vmem:[%s4688_s2 + $0x220] sm:$0xff]  }
  0x8b   : > { %3686 = vmatprep.mubr.bf16.mxu0 %v4292_v1  ;;  %v2399_v1 = vshrl.u32 %v2372_v62, 16 }
  0x8c   : > { %3739 = vmatpush3.bf16.msra.mxu1 %v3940_v57 }
  0x8d   : > { %3701 = vmatpush3.bf16.msra.mxu0 %v3940_v57  ;;  %3732 = vmatprep.subr.bf16.mxu1 %v3941_v22 }
  0x8e   : > { %3702 = vmatprep.subr.bf16.mxu0 %v3941_v22 }
  0x8f   : > { %3623 = vmatmul.mubr.bf16.gmra.mrb[20].mxu1 %v4146_v54  ;;  %v3944_v54 = vld [vmem:[%s4688_s2 + $0x228] sm:$0xff]  }
  0x90   : > { %3687 = vmatmul.mubr.bf16.gmra.mrb[20].mxu0 %v4296_v4  ;;  %3740 = vmatpush3.bf16.msra.mxu1 %v3941_v22  ;;  %v2403_v4 = vrot.slane %v2401_v41, 1 }
  0x91   : > { %3703 = vmatpush3.bf16.msra.mxu0 %v3941_v22  ;;  %3733 = vmatprep.subr.bf16.mxu1 %v3942_v38 }
  0x92   : > { %3704 = vmatprep.subr.bf16.mxu0 %v3942_v38  ;;  %3626 = vmatprep.mubr.bf16.mxu1 %v4151_v56  ;;  %v2217_v56 = vrot.slane %v2215_v0, 1  ;;  %v2404_v40 = vor.u32 %v2403_v4, %v2399_v1  ;;  %v465_v0 = vlaneseq }
  0x93   : > { %3690 = vmatprep.mubr.bf16.mxu0 %v4300_v5  ;;  %v3945_v5 = vld [vmem:[%s4688_s2 + $0x230] sm:$0xff]  }
  0x94   : > { %3741 = vmatpush3.bf16.msra.mxu1 %v3942_v38  ;;  %v2409_v13 = vsel %vm1999_vm1, %v2404_v40, %v4224_v30  ;;  %v4508_v1 = vshrl.u32 %v465_v0, 7 }
  0x95   : > { %3705 = vmatpush3.bf16.msra.mxu0 %v3942_v38  ;;  %3734 = vmatprep.subr.bf16.mxu1 %v3943_v39 }
  0x96   : > { %3706 = vmatprep.subr.bf16.mxu0 %v3943_v39  ;;  %v468_v4 = vadd.s32 16, %v4508_v1  ;;  %v472_v40 = vadd.s32 48, %v4508_v1 }
  0x97   : > { %3627 = vmatmul.mubr.bf16.gmra.mrb[24].mxu1 %v4174_v2  ;;  %v2218_v2 = vsel %vm1999_vm1, %v4255_v53, %v2217_v56  ;;  %v2458_v53 = vshrl.u32 %v3947_v11, 16 }
  0x98   : > { %3691 = vmatmul.mubr.bf16.gmra.mrb[24].mxu0 %v4303_v32  ;;  %3742 = vmatpush3.bf16.msra.mxu1 %v3943_v39  ;;  %v500_v56 = vand.u32 15, %v468_v4 }
  0x99   : > { %3707 = vmatpush3.bf16.msra.mxu0 %v3943_v39  ;;  %3735 = vmatprep.subr.bf16.mxu1 %v3944_v54  ;;  %v2460_v30 = vor.u32 %v2458_v53, %v4050_v8 }
  0x9a   : > { %3708 = vmatprep.subr.bf16.mxu0 %v3944_v54  ;;  %3630 = vmatprep.mubr.bf16.mxu1 %v4178_v6  ;;  %v2380_v6 = vld [vmem:[#allocation2 + $0x58] sm:$0x1]  ;;  %vm676_vm2 = vcmp.ge.s32.totalorder %v500_v56, 1  ;;  %v477_v56 = vadd.s32 88, %v4508_v1 }
  0x9b   : > { %3694 = vmatprep.mubr.bf16.mxu0 %v4306_v37  ;;  %v2462_v59 = vshll.u32 %v2380_v6, 16 }
  0x9c   : > { %3743 = vmatpush3.bf16.msra.mxu1 %v3944_v54 }
  0x9d   : > { %3709 = vmatpush3.bf16.msra.mxu0 %v3944_v54  ;;  %3736 = vmatprep.subr.bf16.mxu1 %v3945_v5  ;;  %v2464_v14 = vrot.slane %v2462_v59, 1  ;;  %v528_v59 = vand.u32 15, %v472_v40 }
  0x9e   : > { %3710 = vmatprep.subr.bf16.mxu0 %v3945_v5 }
  0x9f   : > { %3631 = vmatmul.mubr.bf16.gmra.mrb[28].mxu1 %v3947_v11  ;;  %v2465_v7 = vsel %vm1999_vm1, %v2460_v30, %v2464_v14  ;;  %vm680_vm4 = vcmp.ge.s32.totalorder %v528_v59, 1  ;;  %v563_v59 = vand.u32 15, %v477_v56 }
  0xa0   : > { %3695 = vmatmul.mubr.bf16.gmra.mrb[28].mxu0 %v2218_v2  ;;  %3744 = vmatpush3.bf16.msra.mxu1 %v3945_v5  ;;  %v470_v2 = vadd.s32 32, %v4508_v1 }
  0xa1   : > { %3711 = vmatpush3.bf16.msra.mxu0 %v3945_v5  ;;  %3737 = vmatprep.subr.bf16.mxu1 %v3946_v10  ;;  %v486_v5 = vand.u32 15, %v4508_v1  ;;  %vm4574_vm12 = vcmp.le.s32.totalorder %v563_v59, 14 }
  0xa2   : > { %3712 = vmatprep.subr.bf16.mxu0 %v3946_v10  ;;  %3714 = vmatprep.mubr.bf16.mxu0 %v2409_v13 }
  0xa3   : > { %3722 = vmatprep.mubr.bf16.mxu1 %v4306_v37  ;;  %vm674_vm3 = vcmp.ge.s32.totalorder %v486_v5, 1 }
  0xa4   : > { %3745 = vmatpush3.bf16.msra.mxu1 %v3946_v10 }
  0xa5   : > { %3713 = vmatpush3.bf16.msra.mxu0 %v3946_v10 }
  0xa7   : > { %3723 = vmatmul.mubr.bf16.vlgmr.msra.gmra.mrb[32].mxu1 %v4313_v46 }
  0xa8   : > { %3715 = vmatmul.mubr.bf16.vlgmr.msra.gmra.mrb[16].mxu0 %v4373_v28  ;;  %3726 = vmatprep.mubr.bf16.mxu1 %v4318_v9 }
  0xa9   : > { %3718 = vmatprep.mubr.bf16.mxu0 %v4379_v31 }
  0xaf   : > { %3727 = vmatmul.mubr.bf16.gmra.mrb[36].mxu1 %v2465_v7  ;;  %v514_v7 = vand.u32 15, %v470_v2  ;;  %v475_v2 = vadd.s32 72, %v4508_v1 }
  0xb0   : > { %3719 = vmatmul.mubr.bf16.gmra.mrb[20].mxu0 %v4303_v32 }
  0xb1   : > { %vm678_vm5 = vcmp.ge.s32.totalorder %v514_v7, 1 }
  0xfa   : > { %v3460_v37 = vpop.f32.mrb[0].mxu1 }
  0xfb   : > { %v909_v16 = vpop.f32.mrb[1].mxu1 }
  0xfc   : > { %v3461_v17 = vpop.f32.mrb[2].mxu1 }
  0xfd   : > { %v912_v18 = vpop.f32.mrb[3].mxu1 }
 0x102   : > { %v3464_v19 = vpop.f32.mrb[4].mxu1 }
 0x103   : > { %v925_v46 = vpop.f32.mrb[5].mxu1 }
 0x104   : > { %v3465_v20 = vpop.f32.mrb[6].mxu1 }
 0x105   : > { %v928_v21 = vpop.f32.mrb[7].mxu1 }
 0x10a   : > { %v3468_v24 = vpop.f32.mrb[8].mxu1 }
 0x10b   : > { %v941_v9 = vpop.f32.mrb[9].mxu1 }
 0x10c   : > { %v3469_v25 = vpop.f32.mrb[10].mxu1 }
 0x10d   : > { %v944_v8 = vpop.f32.mrb[11].mxu1 }
 0x112   : > { %v3472_v26 = vpop.f32.mrb[12].mxu1 }
 0x113   : > { %v957_v27 = vpop.f32.mrb[13].mxu1 }
 0x114   : > { %v3473_v12 = vpop.f32.mrb[14].mxu1 }
 0x115   : > { %v960_v28 = vpop.f32.mrb[15].mxu1 }
 0x11b   : > { %v3524_v29 = vpop.f32.mrb[0].mxu0 }
 0x11c   : > { %v3746_v31 = vadd.f32 %v3524_v29, %v3460_v37  ;;  %v1316_v33 = vpop.f32.mrb[1].mxu0 }
 0x11d   : > { %v3747_v32 = vadd.f32 %v1316_v33, %v909_v16  ;;  %v3525_v34 = vpop.f32.mrb[2].mxu0  ;;  %v478_v33 = vadd.s32 96, %v4508_v1 }
 0x11e   : > { %v3748_v23 = vadd.f32 %v3525_v34, %v3461_v17  ;;  %v1319_v35 = vpop.f32.mrb[3].mxu0  ;;  %v1429_v10 = vsel %vm676_vm2, %v3746_v31, 0.0  ;;  %v480_v31 = vadd.s32 112, %v4508_v1 }
 0x11f   : > { %v3749_v3 = vadd.f32 %v1319_v35, %v912_v18  ;;  %v1427_v6 = vsel %vm674_vm3, %v3747_v32, 0.0  ;;  %v476_v18 = vadd.s32 80, %v4508_v1 }
 0x123   : > { %v3528_v36 = vpop.f32.mrb[4].mxu0 }
 0x124   : > { %v3750_v15 = vadd.f32 %v3528_v36, %v3464_v19  ;;  %v1332_v43 = vpop.f32.mrb[5].mxu0  ;;  %v474_v19 = vadd.s32 64, %v4508_v1 }
 0x125   : > { %v3751_v44 = vadd.f32 %v1332_v43, %v925_v46  ;;  %v3529_v47 = vpop.f32.mrb[6].mxu0 }
 0x126   : > { %v3752_v48 = vadd.f32 %v3529_v47, %v3465_v20  ;;  %v1335_v42 = vpop.f32.mrb[7].mxu0  ;;  %v1433_v46 = vsel %vm680_vm4, %v3750_v15, 0.0  ;;  %v584_v15 = vand.u32 15, %v480_v31  ;;  %v479_v31 = vadd.s32 104, %v4508_v1 }
 0x127   : > { %v3753_v49 = vadd.f32 %v1335_v42, %v928_v21 }
 0x128   : > { %vm688_vm8 = vcmp.ge.s32.totalorder %v584_v15, 1 }
 0x12b   : > { %v3532_v50 = vpop.f32.mrb[8].mxu0 }
 0x12c   : > { %v3754_v45 = vadd.f32 %v3532_v50, %v3468_v24  ;;  %v1348_v51 = vpop.f32.mrb[9].mxu0  ;;  %v1431_v24 = vsel %vm678_vm5, %v3751_v44, 0.0 }
 0x12d   : > { %v3755_v52 = vadd.f32 %v1348_v51, %v941_v9  ;;  %v3533_v55 = vpop.f32.mrb[10].mxu0 }
 0x12e   : > { %v4496_v58 = vadd.f32 %v3533_v55, %v3469_v25  ;;  %v1351_v60 = vpop.f32.mrb[11].mxu0  ;;  %v556_v25 = vand.u32 15, %v476_v18 }
 0x12f   : > { %v4498_v61 = vadd.f32 %v1351_v60, %v944_v8 }
 0x130   : > { %vm684_vm6 = vcmp.ge.s32.totalorder %v556_v25, 1 }
 0x131   : > { %v1437_v32 = vsel %vm684_vm6, %v3754_v45, 0.0 }
 0x133   : > { %v3536_v57 = vpop.f32.mrb[12].mxu0 }
 0x134   : > { %v4500_v22 = vadd.f32 %v3536_v57, %v3472_v26  ;;  %v1364_v38 = vpop.f32.mrb[13].mxu0 }
 0x135   : > { %v4502_v62 = vadd.f32 %v1364_v38, %v957_v27  ;;  %v3537_v39 = vpop.f32.mrb[14].mxu0  ;;  %v542_v27 = vand.u32 15, %v474_v19 }
 0x136   : > { %v4504_v63 = vadd.f32 %v3537_v39, %v3473_v12  ;;  %v1367_v41 = vpop.f32.mrb[15].mxu0  ;;  %v1441_v45 = vsel %vm688_vm8, %v4500_v22, 0.0 }
 0x137   : > { %v4506_v54 = vadd.f32 %v1367_v41, %v960_v28  ;;  %vm682_vm7 = vcmp.ge.s32.totalorder %v542_v27, 1  ;;  %v467_v41 = vadd.s32 8, %v4508_v1 }
 0x15a   : > { %v3620_v11 = vpop.f32.mrb[16].mxu1 }
 0x15b   : > { %v4514_v13 = vadd.f32 %v3620_v11, %v1429_v10  ;;  %v1866_v53 = vpop.f32.mrb[17].mxu1 }
 0x15c   : > { %v4516_v30 = vadd.f32 %v1866_v53, %v1427_v6  ;;  %v3621_v14 = vpop.f32.mrb[18].mxu1  ;;  %v493_v6 = vand.u32 15, %v467_v41  ;;  %v473_v53 = vadd.s32 56, %v4508_v1 }
 0x15d   : > { %v4518_v37 = vadd.f32 %v3748_v23, %v3621_v14  ;;  %v1869_v16 = vpop.f32.mrb[19].mxu1  ;;  %v549_v14 = vand.u32 15, %v475_v2 }
 0x15e   : > { %v4520_v17 = vadd.f32 %v3749_v3, %v1869_v16  ;;  %v1435_v3 = vsel %vm682_vm7, %v3755_v52, 0.0  ;;  %v469_v52 = vadd.s32 24, %v4508_v1  ;;  %v471_v16 = vadd.s32 40, %v4508_v1 }
 0x15f   : > { %vm4568_vm11 = vcmp.le.s32.totalorder %v493_v6, 14  ;;  %vm4580_vm13 = vcmp.le.s32.totalorder %v549_v14, 14 }
 0x160   : > { %v507_v11 = vand.u32 15, %v469_v52 }
 0x162   : > { %v3624_v20 = vpop.f32.mrb[20].mxu1  ;;  %vm4563_vm10 = vcmp.le.s32.totalorder %v507_v11, 14 }
 0x163   : > { %v4524_v21 = vadd.f32 %v3624_v20, %v1433_v46  ;;  %v1882_v9 = vpop.f32.mrb[21].mxu1  ;;  %v535_v20 = vand.u32 15, %v473_v53 }
 0x164   : > { %v4526_v8 = vadd.f32 %v1882_v9, %v1431_v24  ;;  %v3625_v26 = vpop.f32.mrb[22].mxu1  ;;  %v481_v24 = vadd.s32 120, %v4508_v1 }
 0x165   : > { %v4528_v12 = vadd.f32 %v3752_v48, %v3625_v26  ;;  %v1885_v28 = vpop.f32.mrb[23].mxu1  ;;  %v570_v48 = vand.u32 15, %v478_v33  ;;  %vm4594_vm14 = vcmp.le.s32.totalorder %v535_v20, 14 }
 0x166   : > { %v4530_v29 = vadd.f32 %v3753_v49, %v1885_v28 }
 0x167   : > { %vm686_vm9 = vcmp.ge.s32.totalorder %v570_v48, 1 }
 0x168   : > { %v1439_v39 = vsel %vm686_vm9, %v4502_v62, 0.0 }
 0x16a   : > { %v3628_v34 = vpop.f32.mrb[24].mxu1 }
 0x16b   : > { %v1955_v23 = vadd.f32 %v3628_v34, %v1437_v32  ;;  %v3692_v35 = vpop.f32.mrb[24].mxu0  ;;  %v1898_v36 = vpop.f32.mrb[25].mxu1 }
 0x16c   : > { %v1953_v43 = vadd.f32 %v1898_v36, %v1435_v3  ;;  %v2341_v44 = vpop.f32.mrb[25].mxu0  ;;  %v3629_v47 = vpop.f32.mrb[26].mxu1 }
 0x16d   : > { %v1956_v42 = vadd.f32 %v4496_v58, %v3629_v47  ;;  %v3693_v49 = vpop.f32.mrb[26].mxu0  ;;  %v1901_v50 = vpop.f32.mrb[27].mxu1  ;;  %v521_v47 = vand.u32 15, %v471_v16 }
 0x16e   : > { %v4536_v51 = vadd.f32 %v4498_v61, %v1901_v50  ;;  %v2344_v55 = vpop.f32.mrb[27].mxu0  ;;  %v591_v50 = vand.u32 15, %v481_v24 }
 0x16f   : > { %vm4630_vm15 = vcmp.le.s32.totalorder %v521_v47, 14 }
 0x170   : > { %vm4642_vm0 = vcmp.le.s32.totalorder %v591_v50, 14 }
 0x172   : > { %v3632_v60 = vpop.f32.mrb[28].mxu1 }
 0x173   : > { %v4540_v57 = vadd.f32 %v3632_v60, %v1441_v45  ;;  %v4542_v38 = vpop.f32.mrb[28].mxu0  ;;  %v1914_v58 = vpop.f32.mrb[29].mxu1 }
 0x174   : > { %v4546_v0 = vadd.f32 %v1914_v58, %v1439_v39  ;;  %v4548_v61 = vpop.f32.mrb[29].mxu0  ;;  %v3633_v4 = vpop.f32.mrb[30].mxu1 }
 0x175   : > { %v4552_v22 = vadd.f32 %v4504_v63, %v3633_v4  ;;  %v4554_v5 = vpop.f32.mrb[30].mxu0  ;;  %v1917_v40 = vpop.f32.mrb[31].mxu1 }
 0x176   : > { %v4558_v62 = vadd.f32 %v4506_v54, %v1917_v40  ;;  %v4560_v10 = vpop.f32.mrb[31].mxu0 }
 0x17a   : > { %v3724_v7 = vpop.f32.mrb[32].mxu1 }
 0x17b   : > { %v3716_v18 = vpop.f32.mrb[16].mxu0  ;;  %v3762_v19 = vadd.f32 %v3724_v7, %v3692_v35  ;;  %v2588_v46 = vpop.f32.mrb[33].mxu1 }
 0x17c   : > { %v2685_v9 = vadd.f32 %v3716_v18, %v4514_v13  ;;  %v2556_v25 = vpop.f32.mrb[17].mxu0  ;;  %v3763_v26 = vadd.f32 %v2588_v46, %v2341_v44  ;;  %v3725_v28 = vpop.f32.mrb[34].mxu1  ;;  %v4587_v13 = vld [vmem:[%s4689_s3] ss:$0 sm:$0xff] }
 0x17d   : > { %v2693_v33 = vadd.f32 %v3762_v19, %v1955_v23  ;;  %v2683_v32 = vadd.f32 %v2556_v25, %v4516_v30  ;;  %v3717_v34 = vpop.f32.mrb[18].mxu0  ;;  %v3764_v35 = vadd.f32 %v3725_v28, %v3693_v49  ;;  %v2591_v36 = vpop.f32.mrb[35].mxu1 }
 0x17e   : > { %v2691_v15 = vadd.f32 %v3763_v26, %v1953_v43  ;;  %v2670_v44 = vsel %vm4563_vm10, %v3717_v34, 0.0  ;;  %v2559_v1 = vpop.f32.mrb[19].mxu0  ;;  %v3765_v23 = vadd.f32 %v2591_v36, %v2344_v55  ;;  %v577_v55 = vand.u32 15, %v479_v31 }
 0x17f   : > { %v2686_v30 = vadd.f32 %v2670_v44, %v4518_v37  ;;  %v2678_v48 = vsel %vm4574_vm12, %v3764_v35, 0.0  ;;  %v2668_v43 = vsel %vm4568_vm11, %v2559_v1, 0.0  ;;  %v2707_v52 = vadd.f32 %v4587_v13, %v2685_v9 }
 0x180   : > { %v2694_v45 = vadd.f32 %v2678_v48, %v1956_v42  ;;  %v2676_v60 = vsel %vm4580_vm13, %v3765_v23, 0.0  ;;  %v2684_v39 = vadd.f32 %v2668_v43, %v4520_v17  ;;  %v4607_v41 = vadd.f32 %v4587_v13, %v2693_v33 }
 0x181   : > { %v2708_v37 = vadd.f32 %v4587_v13, %v2686_v30  ;;  %v2692_v58 = vadd.f32 %v2676_v60, %v4536_v51  ;;  %v2705_v42 = vadd.f32 %v4587_v13, %v2683_v32  ;;  %v4611_v4 = vadd.f32 %v4587_v13, %v2691_v15 }
 0x182   : > { %v4621_v56 = vadd.f32 %v4587_v13, %v2694_v45  ;;  %v3728_v17 = vpop.f32.mrb[36].mxu1  ;;  %v2706_v40 = vadd.f32 %v4587_v13, %v2684_v39  ;;  %vm703_vm1 = vcmp.le.s32.totalorder %v577_v55, 14 }
 0x183   : > { %v3259_v51 = vpack.c.bf16 %v2708_v37, %v2707_v52  ;;  %v2714_v2 = vadd.f32 %v4587_v13, %v2692_v58  ;;  %v3720_v11 = vpop.f32.mrb[20].mxu0  ;;  %v3766_v6 = vadd.f32 %v3728_v17, %v4542_v38  ;;  %v2604_v53 = vpop.f32.mrb[37].mxu1 }
 0x184   : > { %v3279_v59 = vpack.c.bf16 %v4621_v56, %v4607_v41  ;;  %v2689_v14 = vadd.f32 %v3720_v11, %v4524_v21  ;;  %v2572_v7 = vpop.f32.mrb[21].mxu0  ;;  %v3767_v63 = vadd.f32 %v2604_v53, %v4548_v61  ;;  %v3729_v16 = vpop.f32.mrb[38].mxu1  ;;  %v3254_v19 = vpack.c.bf16 %v2706_v40, %v2705_v42 }
 0x185   : > { %3291 = vst [vmem:[%s4618_s26 + $0x8] sm:$0xff] %v3259_v51   ;;  %v2801_v46 = vadd.f32 %v2706_v40, %v2705_v42  ;;  %v3274_v38 = vpack.c.bf16 %v2714_v2, %v4611_v4  ;;  %v2697_v54 = vadd.f32 %v3766_v6, %v4540_v57  ;;  %v3721_v20 = vpop.f32.mrb[22].mxu0  ;;  %v2607_v24 = vpop.f32.mrb[39].mxu1  ;;  %v2687_v21 = vadd.f32 %v2572_v7, %v4526_v8 }
 0x186   : > { %3295 = vst [vmem:[%s4618_s26 + $0x28] sm:$0xff] %v3279_v59   ;;  %v2695_v61 = vadd.f32 %v3767_v63, %v4546_v0  ;;  %v2674_v9 = vsel %vm4594_vm14, %v3721_v20, 0.0  ;;  %v2575_v26 = vpop.f32.mrb[23].mxu0  ;;  %3255 = vst [vmem:[%s4618_s26] sm:$0xff] %v3254_v19   ;;  %v3768_v28 = vadd.f32 %v3729_v16, %v4554_v5  ;;  %v2711_v8 = vadd.f32 %v4587_v13, %v2689_v14 }
 0x187   : > { %v2802_v27 = vadd.f32 %v2801_v46, %v2707_v52  ;;  %3294 = vst [vmem:[%s4618_s26 + $0x20] sm:$0xff] %v3274_v38   ;;  %v2690_v57 = vadd.f32 %v2674_v9, %v4528_v12  ;;  %v2709_v0 = vadd.f32 %v4587_v13, %v2687_v21  ;;  %v2672_v31 = vsel %vm4630_vm15, %v2575_v26, 0.0 }
 0x188   : > { %v3769_v33 = vadd.f32 %v2607_v24, %v4560_v10  ;;  %v2682_v35 = vsel %vm4642_vm0, %v3768_v28, 0.0  ;;  %v2688_v12 = vadd.f32 %v2672_v31, %v4530_v29  ;;  %v2719_v1 = vadd.f32 %v4587_v13, %v2697_v54 }
 0x189   : > { %v2803_v32 = vadd.f32 %v2802_v27, %v2708_v37  ;;  %v2712_v34 = vadd.f32 %v4587_v13, %v2690_v57  ;;  %v2698_v5 = vadd.f32 %v2682_v35, %v4552_v22  ;;  %v2717_v47 = vadd.f32 %v4587_v13, %v2695_v61 }
 0x18a   : > { %v2680_v3 = vsel %vm703_vm1, %v3769_v33, 0.0  ;;  %v2710_v44 = vadd.f32 %v4587_v13, %v2688_v12 }
 0x18b   : > { %v2804_v36 = vadd.f32 %v2803_v32, %v2709_v0  ;;  %v3269_v15 = vpack.c.bf16 %v2712_v34, %v2711_v8  ;;  %v2696_v10 = vadd.f32 %v2680_v3, %v4558_v62  ;;  %v2720_v23 = vadd.f32 %v4587_v13, %v2698_v5 }
 0x18c   : > { %v3264_v30 = vpack.c.bf16 %v2710_v44, %v2709_v0 }
 0x18d   : > { %3293 = vst [vmem:[%s4618_s26 + $0x18] sm:$0xff] %v3269_v15   ;;  %v2805_v29 = vadd.f32 %v2804_v36, %v2710_v44  ;;  %v2718_v22 = vadd.f32 %v4587_v13, %v2696_v10  ;;  %v3289_v48 = vpack.c.bf16 %v2720_v23, %v2719_v1 }
 0x18e   : > { %3292 = vst [vmem:[%s4618_s26 + $0x10] sm:$0xff] %v3264_v30  }
 0x18f   : > { %v2806_v49 = vadd.f32 %v2805_v29, %v2711_v8  ;;  %v3284_v50 = vpack.c.bf16 %v2718_v22, %v2717_v47  ;;  %3297 = vst [vmem:[%s4618_s26 + $0x38] sm:$0xff] %v3289_v48  }
 0x191   : > { %v2807_v45 = vadd.f32 %v2806_v49, %v2712_v34  ;;  %3296 = vst [vmem:[%s4618_s26 + $0x30] sm:$0xff] %v3284_v50  }
 0x193   : > { %v2808_v62 = vadd.f32 %v2807_v45, %v4611_v4 }
 0x195   : > { %v2809_v43 = vadd.f32 %v2808_v62, %v2714_v2 }
 0x197   : > { %v2810_v60 = vadd.f32 %v2809_v43, %v4607_v41 }
 0x199   : > { %v2811_v55 = vadd.f32 %v2810_v60, %v4621_v56 }
 0x19b   : > { %v2812_v52 = vadd.f32 %v2811_v55, %v2717_v47 }
 0x19d   : > { %v2813_v37 = vadd.f32 %v2812_v52, %v2718_v22 }
 0x19f   : > { %v2814_v39 = vadd.f32 %v2813_v37, %v2719_v1 }
 0x1a1   : > { %v2815_v58 = vadd.f32 %v2814_v39, %v2720_v23 }
 0x1a3   : > { %v2816_v13 = vrot.slane %v2815_v58, 4 }
 0x1a5   : > { %v2817_v42 = vadd.f32 %v2816_v13, %v2815_v58 }
 0x1a7   : > { %v2818_v17 = vrot.slane %v2817_v42, 2 }
 0x1a9   : > { %v2819_v51 = vadd.f32 %v2818_v17, %v2817_v42 }
 0x1ab   : > { %v2820_v40 = vrot.slane %v2819_v51, 1 }
 0x1ad   : > { %v2821_v4 = vadd.f32 %v2820_v40, %v2819_v51 }
 0x1af   : > { %2822 = vst [vmem:[%s256_s22] sm:$0xff] %v2821_v4 }
 0x1b0 PF: > { %s16_s20 = sadd.s32 1, %s3970_s20   ;;  %s4706_s18 = smov %s3966_s19 }
 0x1b1   : > { %p13_p5 = scmp.ge.s32.totalorder %s16_s20, 4   ;;  %s4707_s19 = smov %s4709_s1 }
 0x1b3   :  { %15 = sbr.rel (!%p13_p5) target bundleno = 2 (0x2), region = 193 }
 0x1ba   :  { %2873 = vsyncmov [#allocation3] }
 0x1bd   :  { %s2874_s29 = vpop.sfrf %2873 }
 0x1be   :  { %p3229_p6 = scmp.ne.s32.totalorder %s2874_s29, 0 }
 0x1c0   :  { %2878 = shalt.err (%p3229_p6)  }
 0x1c1   :  { %2880 = vsyncmov [#allocation3 + $0x1] }
 0x1c4   :  { %s2881_s30 = vpop.sfrf %2880 }
 0x1c5   :  { %p3230_p7 = scmp.ne.s32.totalorder %s2881_s30, 0 }
 0x1c7   :  { %2885 = shalt.err (%p3230_p7)  }

// kernel: rcab3d_forward.5
= control target key start
LH: loop header
LB: loop body
LE: loop exit
PB: predicated region body
PF: predicated region fallthrough
CT: control target
= control target key end

     0   :  { %s601_s12 = smov 0   ;;  %s603_s13 = smov 0   ;;  %s704_s0 = inlined_call_operand.vmem [shape: bf16[2,128,128], index: 0, kind: input, shape index: {}]   ;;  %s705_s1 = inlined_call_operand.vmem [shape: f32[2,128,128], index: 1, kind: input, shape index: {}]   ;;  %s706_s2 = inlined_call_operand.vmem [shape: f32[2,1,128], index: 2, kind: input, shape index: {}]   ;;  %s707_s3 = inlined_call_operand.vmem [shape: f32[2,128,128], index: 3, kind: output, shape index: {}]  }
   0x1   :  { %s605_s14 = smov 0  }
   0x2 LB: > { %s25_s15 = sadd.s32 1, %s575_s13  ;;  %p481_p0 = scmp.ge.s32.totalorder %s579_s14, 1  ;;  %s579_s14 = sphi %s605_s14, %s13_s14   ;;  %s575_s13 = sphi %s603_s13, %s709_s13   ;;  %s571_s12 = sphi %s601_s12, %s708_s12  }
   0x3   : > { %p27_p1 = scmp.ge.s32.totalorder %s25_s15, 2  ;;  %p183_p2 = scmp.lt.s32.totalorder %s579_s14, 3 }
   0x5   : > { %s711_s15 = smov (%p27_p1, %s25_s15), 0  ;;  %p184_p3 = pnand %p481_p0, %p183_p2 }
   0x6   : > { %p228_p4 = scmp.lt.s32.totalorder (!%p184_p3), %s571_s12, 1 }
   0x7   : > { %187 = sbr.rel (%p184_p3) target bundleno = 34 (0x22), region = 32 }
   0xe   : > { %s713_s12 = smov (!%p228_p4, %s571_s12), 1 }
   0xf   : > { %s491_s16 = sshll.u32 %s713_s12, 6  ;;  %s492_s17 = sshll.u32 %s713_s12, 7 }
  0x10   : > { %s622_s20 = scalar_lea.vmem %s704_s0, %s491_s16  ;;  %s627_s23 = scalar_lea.vmem %s705_s1, %s492_s17 }
  0x11   : > { %s249_s26 = scalar_lea.vmem %s706_s2, %s713_s12  ;;  %v495_v0 = vld [vmem:[%s622_s20] sm:$0xff]   ;;  %v526_v4 = vld [vmem:[%s622_s20 + $0x8] sm:$0xff]   ;;  %v527_v9 = vld [vmem:[%s622_s20 + $0x10] sm:$0xff]   ;;  %s647_s29 = scalar_lea.vmem %s707_s3, %s492_s17 }
  0x12   : > { %v496_v1 = vunpack.c.l.bf16 %v495_v0  ;;  %v633_v2 = vld [vmem:[%s249_s26] ss:$0 sm:$0xff]  ;;  %v497_v3 = vunpack.c.h.bf16 %v495_v0  ;;  %v316_v6 = vld [vmem:[%s627_s23 + $0x8] sm:$0xff]  ;;  %v500_v7 = vunpack.c.l.bf16 %v526_v4  ;;  %v501_v8 = vunpack.c.h.bf16 %v526_v4  ;;  %v317_v12 = vld [vmem:[%s627_s23 + $0x10] sm:$0xff] }
  0x13   : > { %v315_v5 = vld [vmem:[%s627_s23] sm:$0xff]  ;;  %v318_v13 = vld [vmem:[%s627_s23 + $0x18] sm:$0xff]  ;;  %v504_v14 = vunpack.c.l.bf16 %v527_v9  ;;  %v505_v15 = vunpack.c.h.bf16 %v527_v9  ;;  %v320_v20 = vld [vmem:[%s627_s23 + $0x28] sm:$0xff] }
  0x14   : > { %v299_v10 = vmul.f32 %v496_v1, %v633_v2  ;;  %v300_v11 = vmul.f32 %v497_v3, %v633_v2  ;;  %v528_v16 = vld [vmem:[%s622_s20 + $0x18] sm:$0xff]   ;;  %v301_v17 = vmul.f32 %v500_v7, %v633_v2  ;;  %v302_v18 = vmul.f32 %v501_v8, %v633_v2  ;;  %v319_v19 = vld [vmem:[%s627_s23 + $0x20] sm:$0xff]  ;;  %v321_v28 = vld [vmem:[%s627_s23 + $0x30] sm:$0xff] }
  0x15   : > { %v508_v21 = vunpack.c.l.bf16 %v528_v16  ;;  %v509_v22 = vunpack.c.h.bf16 %v528_v16  ;;  %v529_v23 = vld [vmem:[%s622_s20 + $0x20] sm:$0xff]   ;;  %v303_v26 = vmul.f32 %v504_v14, %v633_v2  ;;  %v304_v27 = vmul.f32 %v505_v15, %v633_v2  ;;  %v322_v29 = vld [vmem:[%s627_s23 + $0x38] sm:$0xff]  ;;  %v530_v30 = vld [vmem:[%s622_s20 + $0x28] sm:$0xff]  }
  0x16   : > { %v331_v24 = vadd.f32 %v315_v5, %v299_v10  ;;  %v332_v25 = vadd.f32 %v316_v6, %v300_v11  ;;  %v333_v31 = vadd.f32 %v317_v12, %v301_v17  ;;  %v334_v32 = vadd.f32 %v318_v13, %v302_v18  ;;  %v531_v35 = vld [vmem:[%s622_s20 + $0x30] sm:$0xff]   ;;  %v532_v40 = vld [vmem:[%s622_s20 + $0x38] sm:$0xff]   ;;  %v323_v43 = vld [vmem:[%s627_s23 + $0x40] sm:$0xff] }
  0x17   : > { %v305_v33 = vmul.f32 %v508_v21, %v633_v2  ;;  %v306_v34 = vmul.f32 %v509_v22, %v633_v2  ;;  %v335_v36 = vadd.f32 %v319_v19, %v303_v26  ;;  %v336_v37 = vadd.f32 %v320_v20, %v304_v27  ;;  %v324_v44 = vld [vmem:[%s627_s23 + $0x48] sm:$0xff]  ;;  %v325_v49 = vld [vmem:[%s627_s23 + $0x50] sm:$0xff]  ;;  %v326_v50 = vld [vmem:[%s627_s23 + $0x58] sm:$0xff] }
  0x18   : > { %347 = vst [vmem:[%s647_s29] sm:$0xff] %v331_v24  ;;  %348 = vst [vmem:[%s647_s29 + $0x8] sm:$0xff] %v332_v25  ;;  %v512_v38 = vunpack.c.l.bf16 %v529_v23  ;;  %v513_v39 = vunpack.c.h.bf16 %v529_v23  ;;  %v516_v45 = vunpack.c.l.bf16 %v530_v30  ;;  %v517_v46 = vunpack.c.h.bf16 %v530_v30  ;;  %v327_v55 = vld [vmem:[%s627_s23 + $0x60] sm:$0xff]  ;;  %v328_v56 = vld [vmem:[%s627_s23 + $0x68] sm:$0xff] }
  0x19   : > { %349 = vst [vmem:[%s647_s29 + $0x10] sm:$0xff] %v333_v31  ;;  %350 = vst [vmem:[%s647_s29 + $0x18] sm:$0xff] %v334_v32  ;;  %v337_v41 = vadd.f32 %v321_v28, %v305_v33  ;;  %v338_v42 = vadd.f32 %v322_v29, %v306_v34  ;;  %v520_v51 = vunpack.c.l.bf16 %v531_v35  ;;  %v521_v52 = vunpack.c.h.bf16 %v531_v35  ;;  %v329_v63 = vld [vmem:[%s627_s23 + $0x70] sm:$0xff]  ;;  %v330_v0 = vld [vmem:[%s627_s23 + $0x78] sm:$0xff] }
  0x1a   : > { %351 = vst [vmem:[%s647_s29 + $0x20] sm:$0xff] %v335_v36  ;;  %352 = vst [vmem:[%s647_s29 + $0x28] sm:$0xff] %v336_v37  ;;  %v307_v47 = vmul.f32 %v512_v38, %v633_v2  ;;  %v308_v48 = vmul.f32 %v513_v39, %v633_v2  ;;  %v309_v53 = vmul.f32 %v516_v45, %v633_v2  ;;  %v524_v57 = vunpack.c.l.bf16 %v532_v40 }
  0x1b   : > { %353 = vst [vmem:[%s647_s29 + $0x30] sm:$0xff] %v337_v41  ;;  %354 = vst [vmem:[%s647_s29 + $0x38] sm:$0xff] %v338_v42  ;;  %v310_v54 = vmul.f32 %v517_v46, %v633_v2  ;;  %v525_v58 = vunpack.c.h.bf16 %v532_v40  ;;  %v311_v61 = vmul.f32 %v520_v51, %v633_v2  ;;  %v312_v62 = vmul.f32 %v521_v52, %v633_v2 }
  0x1c   : > { %v339_v59 = vadd.f32 %v323_v43, %v307_v47  ;;  %v340_v60 = vadd.f32 %v324_v44, %v308_v48  ;;  %v341_v1 = vadd.f32 %v325_v49, %v309_v53  ;;  %v313_v4 = vmul.f32 %v524_v57, %v633_v2 }
  0x1d   : > { %v342_v3 = vadd.f32 %v326_v50, %v310_v54  ;;  %v314_v5 = vmul.f32 %v525_v58, %v633_v2  ;;  %v343_v6 = vadd.f32 %v327_v55, %v311_v61  ;;  %v344_v7 = vadd.f32 %v328_v56, %v312_v62 }
  0x1e   : > { %355 = vst [vmem:[%s647_s29 + $0x40] sm:$0xff] %v339_v59  ;;  %356 = vst [vmem:[%s647_s29 + $0x48] sm:$0xff] %v340_v60  ;;  %v345_v8 = vadd.f32 %v329_v63, %v313_v4 }
  0x1f   : > { %357 = vst [vmem:[%s647_s29 + $0x50] sm:$0xff] %v341_v1  ;;  %358 = vst [vmem:[%s647_s29 + $0x58] sm:$0xff] %v342_v3  ;;  %v346_v9 = vadd.f32 %v330_v0, %v314_v5 }
  0x20   : > { %359 = vst [vmem:[%s647_s29 + $0x60] sm:$0xff] %v343_v6  ;;  %360 = vst [vmem:[%s647_s29 + $0x68] sm:$0xff] %v344_v7 }
  0x21   : > { %361 = vst [vmem:[%s647_s29 + $0x70] sm:$0xff] %v345_v8  ;;  %362 = vst [vmem:[%s647_s29 + $0x78] sm:$0xff] %v346_v9 }
  0x22 PF: > { %s13_s14 = sadd.s32 1, %s579_s14   ;;  %s708_s12 = smov %s575_s13 }
  0x23   : > { %p10_p5 = scmp.ge.s32.totalorder %s13_s14, 4   ;;  %s709_s13 = smov %s711_s15 }
  0x25   :  { %12 = sbr.rel (!%p10_p5) target bundleno = 2 (0x2), region = 68 }

</bundles_post_ra>
